<compile_context>
chip_gen: v7x
topology: tpu7x:2x2x1
jax: 0.10.0
libtpu: 0.0.40
codegen_flags: <defaults>
</compile_context>

<pallas_src>
import jax
import jax.numpy as jnp
from jax import lax
from jax.experimental import pallas as pl
from jax.experimental.pallas import tpu as pltpu


def encoder_gru_kernel(ids_ref, emb_ref, h0_ref, w_ih_ref, w_hh_ref,
                       b_fused_ref, b_hhn_ref, out_ref, gi_sc):
    # ids_ref    : (T, 1) int32  -- token ids
    # emb_ref    : (V, H)  f32   -- VMEM-resident embedding table
    # h0_ref     : (1, H)  f32   -- initial hidden state
    # w_ih_ref   : (H, 3H) bf16  -- input-projection weight (transposed)
    # w_hh_ref   : (H, 3H) f32   -- hidden-projection weight (transposed)
    # b_fused_ref: (1, 3H) f32   -- b_ih + [b_hh_r, b_hh_z, 0]
    # b_hhn_ref  : (1, H)  f32   -- b_hh n-gate slice (needed pre r* multiply)
    # out_ref    : (T, H)  f32   -- per-step hidden states (written once each)
    # gi_sc      : (T, 3H) f32   -- precomputed input projections (scratch)
    T, H = out_ref.shape
    V = emb_ref.shape[0]

    # ---- Prologue (off the sequential path) ------------------------------
    # Embedding gather as a one-hot matmul: fully vectorized, no tiny DMAs,
    # graceful on out-of-range ids (zero row).
    ids = ids_ref[...]                                            # (T, 1) i32
    iota_v = lax.broadcasted_iota(jnp.int32, (T, V), 1)           # (T, V)
    onehot = (ids == iota_v).astype(jnp.float32)                  # (T, V)
    x = jnp.dot(onehot, emb_ref[...],
                preferred_element_type=jnp.float32)               # (T, H) f32

    # One batched input projection for the whole sequence (bf16 MXU, f32 acc),
    # with b_ih and the r/z halves of b_hh already folded in.
    gi_sc[...] = (jnp.dot(x.astype(jnp.bfloat16), w_ih_ref[...],
                          preferred_element_type=jnp.float32)
                  + b_fused_ref[...])                             # (T, 3H)

    b_hh_n = b_hhn_ref[...]                                       # (1, H)

    # ---- Sequential recurrence: only h @ w_hh per step -------------------
    def step(t, h):                                               # h: (1, H) f32
        gi = gi_sc[pl.ds(t, 1), :]                                # (1, 3H)
        gh = jnp.dot(h, w_hh_ref[...],
                     preferred_element_type=jnp.float32)          # (1, 3H) f32
        r = jax.nn.sigmoid(gi[:, 0:H] + gh[:, 0:H])
        z = jax.nn.sigmoid(gi[:, H:2 * H] + gh[:, H:2 * H])
        n = jnp.tanh(gi[:, 2 * H:3 * H] + r * (gh[:, 2 * H:3 * H] + b_hh_n))
        h_new = (1.0 - z) * n + z * h
        out_ref[pl.ds(t, 1), :] = h_new.astype(out_ref.dtype)
        return h_new

    lax.fori_loop(0, T, step, h0_ref[...], unroll=True)


def encoder_rnn_forward(token_ids, hidden, emb_table, w_ih_t, w_hh_t, b_ih, b_hh):
    """Run EncoderRNN.forward over a whole token sequence in ONE pallas_call.

    token_ids: int32 (T,)        -- input tokens
    hidden:    (1, 1, H) float32 -- initial hidden state (initHidden())
    Returns (outputs, hidden): outputs (T, 1, H), hidden (1, 1, H).
    Equivalent to calling the PyTorch forward() T times, threading `hidden`.
    """
    V, H = emb_table.shape
    T = int(token_ids.shape[0])

    ids2d = token_ids.reshape(T, 1).astype(jnp.int32)
    h0 = hidden.reshape(1, H).astype(jnp.float32)
    emb = emb_table.astype(jnp.float32)
    w_ih_bf = w_ih_t.astype(jnp.bfloat16)                         # (H, 3H)
    w_hh_f32 = w_hh_t.astype(jnp.float32)                         # (H, 3H)

    b_ih_f = b_ih.astype(jnp.float32).reshape(3 * H)
    b_hh_f = b_hh.astype(jnp.float32).reshape(3 * H)
    # Fold b_ih and the r/z columns of b_hh into one precomputed bias; only the
    # n-gate half of b_hh stays on the per-step path (needed before the r*).
    b_fused = (b_ih_f + jnp.concatenate(
        [b_hh_f[:2 * H], jnp.zeros((H,), jnp.float32)])).reshape(1, 3 * H)
    b_hh_n = b_hh_f[2 * H:].reshape(1, H)

    out = pl.pallas_call(
        encoder_gru_kernel,
        out_shape=jax.ShapeDtypeStruct((T, H), jnp.float32),
        in_specs=[pl.BlockSpec(memory_space=pltpu.MemorySpace.VMEM)] * 7,
        out_specs=pl.BlockSpec(memory_space=pltpu.MemorySpace.VMEM),
        scratch_shapes=[pltpu.VMEM((T, 3 * H), jnp.float32)],
    )(ids2d, emb, h0, w_ih_bf, w_hh_f32, b_fused, b_hh_n)

    outputs = out.reshape(T, 1, H)
    hidden_out = out[T - 1].reshape(1, 1, H)       # output == hidden for a GRU
    return outputs, hidden_out


def encoder_rnn_step(token_id, hidden, emb_table, w_ih_t, w_hh_t, b_ih, b_hh):
    """Exact analogue of the original single-token forward(input, hidden)."""
    out, hid = encoder_rnn_forward(token_id.reshape(1), hidden, emb_table,
                                   w_ih_t, w_hh_t, b_ih, b_hh)
    return out.reshape(1, 1, -1), hid


def reference_forward(token_ids, hidden, emb_table, w_ih_t, w_hh_t, b_ih, b_hh):
    """Pure-JAX reference mirroring the kernel math (bf16 input proj, f32 rest)."""
    H = hidden.shape[-1]
    T = token_ids.shape[0]
    w_ih_bf = w_ih_t.astype(jnp.bfloat16)
    w_hh = w_hh_t.astype(jnp.float32)
    b_ih2 = b_ih.reshape(1, 3 * H).astype(jnp.float32)
    b_hh2 = b_hh.reshape(1, 3 * H).astype(jnp.float32)
    h = hidden.reshape(1, H).astype(jnp.float32)
    outs = []
    for t in range(T):
        x = emb_table[token_ids[t]].reshape(1, H).astype(jnp.float32)
        gi = jnp.dot(x.astype(jnp.bfloat16), w_ih_bf,
                     preferred_element_type=jnp.float32) + b_ih2
        gh = jnp.dot(h, w_hh, preferred_element_type=jnp.float32) + b_hh2
        r = jax.nn.sigmoid(gi[:, 0:H] + gh[:, 0:H])
        z = jax.nn.sigmoid(gi[:, H:2 * H] + gh[:, H:2 * H])
        n = jnp.tanh(gi[:, 2 * H:3 * H] + r * gh[:, 2 * H:3 * H])
        h = (1.0 - z) * n + z * h
        outs.append(h)
    return jnp.stack(outs, axis=0).reshape(T, 1, H), h.reshape(1, 1, H)


if __name__ == "__main__":
    V = 64          # input_size (vocab)
    H = 256         # hidden_size (matches the module)
    T = 7           # number of chained forward() calls

    key = jax.random.PRNGKey(0)
    k_emb, k_wih, k_whh, k_bih, k_bhh, k_tok = jax.random.split(key, 6)

    scale = 1.0 / jnp.sqrt(jnp.float32(H))
    emb_table = jax.random.normal(k_emb, (V, H), dtype=jnp.float32)
    # PyTorch GRU stores (3H, H); we keep the transposed (H, 3H) layout, gate
    # order [r | z | n] along the 3H axis.
    w_ih_t = jax.random.uniform(k_wih, (H, 3 * H), jnp.float32, -scale, scale)
    w_hh_t = jax.random.uniform(k_whh, (H, 3 * H), jnp.float32, -scale, scale)
    b_ih = jax.random.uniform(k_bih, (3 * H,), jnp.float32, -scale, scale)
    b_hh = jax.random.uniform(k_bhh, (3 * H,), jnp.float32, -scale, scale)

    token_ids = jax.random.randint(k_tok, (T,), 0, V, dtype=jnp.int32)
    hidden0 = jnp.zeros((1, 1, H), dtype=jnp.float32)     # initHidden()

    # Full-sequence run (one pallas_call, one kernel invocation, T steps inside).
    outputs, hidden = encoder_rnn_forward(
        token_ids, hidden0, emb_table, w_ih_t, w_hh_t, b_ih, b_hh)
    jax.block_until_ready((outputs, hidden))

    ref_out, ref_hid = reference_forward(
        token_ids, hidden0, emb_table, w_ih_t, w_hh_t, b_ih, b_hh)
    assert outputs.shape == (T, 1, H) and hidden.shape == (1, 1, H)
    assert jnp.allclose(outputs, ref_out, atol=1e-3, rtol=1e-3)
    assert jnp.allclose(hidden, ref_hid, atol=1e-3, rtol=1e-3)

    # Single-step run (exact original forward(input, hidden) semantics).
    out1, hid1 = encoder_rnn_step(
        token_ids[:1], hidden0, emb_table, w_ih_t, w_hh_t, b_ih, b_hh)
    jax.block_until_ready((out1, hid1))
    assert out1.shape == (1, 1, H) and hid1.shape == (1, 1, H)
    assert jnp.allclose(out1, ref_out[0].reshape(1, 1, H), atol=1e-3, rtol=1e-3)
    assert jnp.allclose(hid1, out1, atol=1e-6)

    print("KERNEL_OK")
</pallas_src>

<mosaic_0001>
module attributes {stable_mosaic.version = 11 : i64} {
  func.func @encoder_gru_kernel(%arg0: memref<7x1xi32, #tpu.memory_space<vmem>>, %arg1: memref<64x256xf32, #tpu.memory_space<vmem>>, %arg2: memref<1x256xf32, #tpu.memory_space<vmem>>, %arg3: memref<256x768xbf16, #tpu.memory_space<vmem>>, %arg4: memref<256x768xf32, #tpu.memory_space<vmem>>, %arg5: memref<1x768xf32, #tpu.memory_space<vmem>>, %arg6: memref<1x256xf32, #tpu.memory_space<vmem>>, %arg7: memref<7x256xf32, #tpu.memory_space<vmem>>, %arg8: memref<7x768xf32, #tpu.memory_space<vmem>>) attributes {dimension_semantics = [], scalar_prefetch = 0 : i64, scratch_operands = 1 : i64, tpu.core_type = #tpu.core_type<tc>} {
    %c0 = arith.constant 0 : index
    %c0_0 = arith.constant 0 : index
    %0 = vector.load %arg0[%c0, %c0_0] : memref<7x1xi32, #tpu.memory_space<vmem>>, vector<7x1xi32>
    %1 = tpu.iota {dimensions = array<i32: 1>} : vector<7x64xi32>
    %2 = vector.broadcast %0 : vector<7x1xi32> to vector<7x64xi32>
    %3 = arith.cmpi eq, %2, %1 : vector<7x64xi32>
    %4 = arith.extui %3 : vector<7x64xi1> to vector<7x64xi32>
    %5 = arith.sitofp %4 : vector<7x64xi32> to vector<7x64xf32>
    %c0_1 = arith.constant 0 : index
    %c0_2 = arith.constant 0 : index
    %6 = vector.load %arg1[%c0_1, %c0_2] : memref<64x256xf32, #tpu.memory_space<vmem>>, vector<64x256xf32>
    %cst = arith.constant dense<0.000000e+00> : vector<7x256xf32>
    %7 = tpu.matmul %5, %6, %cst {dimension_numbers = #tpu.dot_dimension_numbers<[1], [0], [0], [1], [0, 0, 1, 1], [], []>} : vector<7x64xf32>, vector<64x256xf32>, vector<7x256xf32> -> vector<7x256xf32>
    %8 = arith.truncf %7 : vector<7x256xf32> to vector<7x256xbf16>
    %c0_3 = arith.constant 0 : index
    %c0_4 = arith.constant 0 : index
    %9 = vector.load %arg3[%c0_3, %c0_4] : memref<256x768xbf16, #tpu.memory_space<vmem>>, vector<256x768xbf16>
    %cst_5 = arith.constant dense<0.000000e+00> : vector<7x768xf32>
    %10 = tpu.matmul %8, %9, %cst_5 {dimension_numbers = #tpu.dot_dimension_numbers<[1], [0], [0], [1], [0, 0, 1, 1], [], []>} : vector<7x256xbf16>, vector<256x768xbf16>, vector<7x768xf32> -> vector<7x768xf32>
    %c0_6 = arith.constant 0 : index
    %c0_7 = arith.constant 0 : index
    %11 = vector.load %arg5[%c0_6, %c0_7] : memref<1x768xf32, #tpu.memory_space<vmem>>, vector<1x768xf32>
    %12 = vector.broadcast %11 : vector<1x768xf32> to vector<7x768xf32>
    %13 = arith.addf %10, %12 : vector<7x768xf32>
    %c0_8 = arith.constant 0 : index
    %c0_9 = arith.constant 0 : index
    %14 = vector.load %arg8[%c0_8, %c0_9] : memref<7x768xf32, #tpu.memory_space<vmem>>, vector<7x768xf32>
    tpu.vector_store %arg8[%c0_8, %c0_9], %13 {strides = array<i32>} : memref<7x768xf32, #tpu.memory_space<vmem>>, vector<7x768xf32>,
    %c0_10 = arith.constant 0 : index
    %c0_11 = arith.constant 0 : index
    %15 = vector.load %arg6[%c0_10, %c0_11] : memref<1x256xf32, #tpu.memory_space<vmem>>, vector<1x256xf32>
    %c0_12 = arith.constant 0 : index
    %c0_13 = arith.constant 0 : index
    %16 = vector.load %arg2[%c0_12, %c0_13] : memref<1x256xf32, #tpu.memory_space<vmem>>, vector<1x256xf32>
    %c0_i32 = arith.constant 0 : i32
    %17 = arith.index_cast %c0_i32 : i32 to index
    %c0_14 = arith.constant 0 : index
    %18 = vector.load %arg8[%17, %c0_14] : memref<7x768xf32, #tpu.memory_space<vmem>>, vector<1x768xf32>
    %c0_15 = arith.constant 0 : index
    %c0_16 = arith.constant 0 : index
    %19 = vector.load %arg4[%c0_15, %c0_16] : memref<256x768xf32, #tpu.memory_space<vmem>>, vector<256x768xf32>
    %cst_17 = arith.constant dense<0.000000e+00> : vector<1x768xf32>
    %20 = tpu.matmul %16, %19, %cst_17 {dimension_numbers = #tpu.dot_dimension_numbers<[1], [0], [0], [1], [0, 0, 1, 1], [], []>} : vector<1x256xf32>, vector<256x768xf32>, vector<1x768xf32> -> vector<1x768xf32>
    %21 = vector.extract_strided_slice %18 {offsets = [0, 0], sizes = [1, 256], strides = [1, 1]} : vector<1x768xf32> to vector<1x256xf32>
    %22 = vector.extract_strided_slice %20 {offsets = [0, 0], sizes = [1, 256], strides = [1, 1]} : vector<1x768xf32> to vector<1x256xf32>
    %23 = arith.addf %21, %22 : vector<1x256xf32>
    %24 = arith.negf %23 : vector<1x256xf32>
    %25 = math.exp %24 : vector<1x256xf32>
    %cst_18 = arith.constant 1.000000e+00 : f32
    %26 = vector.broadcast %cst_18 : f32 to vector<1x256xf32>
    %27 = arith.addf %26, %25 : vector<1x256xf32>
    %28 = arith.divf %26, %27 : vector<1x256xf32>
    %29 = vector.extract_strided_slice %18 {offsets = [0, 256], sizes = [1, 256], strides = [1, 1]} : vector<1x768xf32> to vector<1x256xf32>
    %30 = vector.extract_strided_slice %20 {offsets = [0, 256], sizes = [1, 256], strides = [1, 1]} : vector<1x768xf32> to vector<1x256xf32>
    %31 = arith.addf %29, %30 : vector<1x256xf32>
    %32 = arith.negf %31 : vector<1x256xf32>
    %33 = math.exp %32 : vector<1x256xf32>
    %cst_19 = arith.constant 1.000000e+00 : f32
    %34 = vector.broadcast %cst_19 : f32 to vector<1x256xf32>
    %35 = arith.addf %34, %33 : vector<1x256xf32>
    %36 = arith.divf %34, %35 : vector<1x256xf32>
    %37 = vector.extract_strided_slice %18 {offsets = [0, 512], sizes = [1, 256], strides = [1, 1]} : vector<1x768xf32> to vector<1x256xf32>
    %38 = vector.extract_strided_slice %20 {offsets = [0, 512], sizes = [1, 256], strides = [1, 1]} : vector<1x768xf32> to vector<1x256xf32>
    %39 = arith.addf %38, %15 : vector<1x256xf32>
    %40 = arith.mulf %28, %39 : vector<1x256xf32>
    %41 = arith.addf %37, %40 : vector<1x256xf32>
    %42 = math.tanh %41 : vector<1x256xf32>
    %cst_20 = arith.constant 1.000000e+00 : f32
    %43 = vector.broadcast %cst_20 : f32 to vector<1x256xf32>
    %44 = arith.subf %43, %36 : vector<1x256xf32>
    %45 = arith.mulf %44, %42 : vector<1x256xf32>
    %46 = arith.mulf %36, %16 : vector<1x256xf32>
    %47 = arith.addf %45, %46 : vector<1x256xf32>
    %48 = arith.index_cast %c0_i32 : i32 to index
    %c0_21 = arith.constant 0 : index
    %49 = vector.load %arg7[%48, %c0_21] : memref<7x256xf32, #tpu.memory_space<vmem>>, vector<1x256xf32>
    tpu.vector_store %arg7[%48, %c0_21], %47 {strides = array<i32>} : memref<7x256xf32, #tpu.memory_space<vmem>>, vector<1x256xf32>,
    %c1_i32 = arith.constant 1 : i32
    %50 = arith.index_cast %c1_i32 : i32 to index
    %c0_22 = arith.constant 0 : index
    %51 = vector.load %arg8[%50, %c0_22] : memref<7x768xf32, #tpu.memory_space<vmem>>, vector<1x768xf32>
    %c0_23 = arith.constant 0 : index
    %c0_24 = arith.constant 0 : index
    %52 = vector.load %arg4[%c0_23, %c0_24] : memref<256x768xf32, #tpu.memory_space<vmem>>, vector<256x768xf32>
    %cst_25 = arith.constant dense<0.000000e+00> : vector<1x768xf32>
    %53 = tpu.matmul %47, %52, %cst_25 {dimension_numbers = #tpu.dot_dimension_numbers<[1], [0], [0], [1], [0, 0, 1, 1], [], []>} : vector<1x256xf32>, vector<256x768xf32>, vector<1x768xf32> -> vector<1x768xf32>
    %54 = vector.extract_strided_slice %51 {offsets = [0, 0], sizes = [1, 256], strides = [1, 1]} : vector<1x768xf32> to vector<1x256xf32>
    %55 = vector.extract_strided_slice %53 {offsets = [0, 0], sizes = [1, 256], strides = [1, 1]} : vector<1x768xf32> to vector<1x256xf32>
    %56 = arith.addf %54, %55 : vector<1x256xf32>
    %57 = arith.negf %56 : vector<1x256xf32>
    %58 = math.exp %57 : vector<1x256xf32>
    %cst_26 = arith.constant 1.000000e+00 : f32
    %59 = vector.broadcast %cst_26 : f32 to vector<1x256xf32>
    %60 = arith.addf %59, %58 : vector<1x256xf32>
    %61 = arith.divf %59, %60 : vector<1x256xf32>
    %62 = vector.extract_strided_slice %51 {offsets = [0, 256], sizes = [1, 256], strides = [1, 1]} : vector<1x768xf32> to vector<1x256xf32>
    %63 = vector.extract_strided_slice %53 {offsets = [0, 256], sizes = [1, 256], strides = [1, 1]} : vector<1x768xf32> to vector<1x256xf32>
    %64 = arith.addf %62, %63 : vector<1x256xf32>
    %65 = arith.negf %64 : vector<1x256xf32>
    %66 = math.exp %65 : vector<1x256xf32>
    %cst_27 = arith.constant 1.000000e+00 : f32
    %67 = vector.broadcast %cst_27 : f32 to vector<1x256xf32>
    %68 = arith.addf %67, %66 : vector<1x256xf32>
    %69 = arith.divf %67, %68 : vector<1x256xf32>
    %70 = vector.extract_strided_slice %51 {offsets = [0, 512], sizes = [1, 256], strides = [1, 1]} : vector<1x768xf32> to vector<1x256xf32>
    %71 = vector.extract_strided_slice %53 {offsets = [0, 512], sizes = [1, 256], strides = [1, 1]} : vector<1x768xf32> to vector<1x256xf32>
    %72 = arith.addf %71, %15 : vector<1x256xf32>
    %73 = arith.mulf %61, %72 : vector<1x256xf32>
    %74 = arith.addf %70, %73 : vector<1x256xf32>
    %75 = math.tanh %74 : vector<1x256xf32>
    %cst_28 = arith.constant 1.000000e+00 : f32
    %76 = vector.broadcast %cst_28 : f32 to vector<1x256xf32>
    %77 = arith.subf %76, %69 : vector<1x256xf32>
    %78 = arith.mulf %77, %75 : vector<1x256xf32>
    %79 = arith.mulf %69, %47 : vector<1x256xf32>
    %80 = arith.addf %78, %79 : vector<1x256xf32>
    %81 = arith.index_cast %c1_i32 : i32 to index
    %c0_29 = arith.constant 0 : index
    %82 = vector.load %arg7[%81, %c0_29] : memref<7x256xf32, #tpu.memory_space<vmem>>, vector<1x256xf32>
    tpu.vector_store %arg7[%81, %c0_29], %80 {strides = array<i32>} : memref<7x256xf32, #tpu.memory_space<vmem>>, vector<1x256xf32>,
    %c2_i32 = arith.constant 2 : i32
    %83 = arith.index_cast %c2_i32 : i32 to index
    %c0_30 = arith.constant 0 : index
    %84 = vector.load %arg8[%83, %c0_30] : memref<7x768xf32, #tpu.memory_space<vmem>>, vector<1x768xf32>
    %c0_31 = arith.constant 0 : index
    %c0_32 = arith.constant 0 : index
    %85 = vector.load %arg4[%c0_31, %c0_32] : memref<256x768xf32, #tpu.memory_space<vmem>>, vector<256x768xf32>
    %cst_33 = arith.constant dense<0.000000e+00> : vector<1x768xf32>
    %86 = tpu.matmul %80, %85, %cst_33 {dimension_numbers = #tpu.dot_dimension_numbers<[1], [0], [0], [1], [0, 0, 1, 1], [], []>} : vector<1x256xf32>, vector<256x768xf32>, vector<1x768xf32> -> vector<1x768xf32>
    %87 = vector.extract_strided_slice %84 {offsets = [0, 0], sizes = [1, 256], strides = [1, 1]} : vector<1x768xf32> to vector<1x256xf32>
    %88 = vector.extract_strided_slice %86 {offsets = [0, 0], sizes = [1, 256], strides = [1, 1]} : vector<1x768xf32> to vector<1x256xf32>
    %89 = arith.addf %87, %88 : vector<1x256xf32>
    %90 = arith.negf %89 : vector<1x256xf32>
    %91 = math.exp %90 : vector<1x256xf32>
    %cst_34 = arith.constant 1.000000e+00 : f32
    %92 = vector.broadcast %cst_34 : f32 to vector<1x256xf32>
    %93 = arith.addf %92, %91 : vector<1x256xf32>
    %94 = arith.divf %92, %93 : vector<1x256xf32>
    %95 = vector.extract_strided_slice %84 {offsets = [0, 256], sizes = [1, 256], strides = [1, 1]} : vector<1x768xf32> to vector<1x256xf32>
    %96 = vector.extract_strided_slice %86 {offsets = [0, 256], sizes = [1, 256], strides = [1, 1]} : vector<1x768xf32> to vector<1x256xf32>
    %97 = arith.addf %95, %96 : vector<1x256xf32>
    %98 = arith.negf %97 : vector<1x256xf32>
    %99 = math.exp %98 : vector<1x256xf32>
    %cst_35 = arith.constant 1.000000e+00 : f32
    %100 = vector.broadcast %cst_35 : f32 to vector<1x256xf32>
    %101 = arith.addf %100, %99 : vector<1x256xf32>
    %102 = arith.divf %100, %101 : vector<1x256xf32>
    %103 = vector.extract_strided_slice %84 {offsets = [0, 512], sizes = [1, 256], strides = [1, 1]} : vector<1x768xf32> to vector<1x256xf32>
    %104 = vector.extract_strided_slice %86 {offsets = [0, 512], sizes = [1, 256], strides = [1, 1]} : vector<1x768xf32> to vector<1x256xf32>
    %105 = arith.addf %104, %15 : vector<1x256xf32>
    %106 = arith.mulf %94, %105 : vector<1x256xf32>
    %107 = arith.addf %103, %106 : vector<1x256xf32>
    %108 = math.tanh %107 : vector<1x256xf32>
    %cst_36 = arith.constant 1.000000e+00 : f32
    %109 = vector.broadcast %cst_36 : f32 to vector<1x256xf32>
    %110 = arith.subf %109, %102 : vector<1x256xf32>
    %111 = arith.mulf %110, %108 : vector<1x256xf32>
    %112 = arith.mulf %102, %80 : vector<1x256xf32>
    %113 = arith.addf %111, %112 : vector<1x256xf32>
    %114 = arith.index_cast %c2_i32 : i32 to index
    %c0_37 = arith.constant 0 : index
    %115 = vector.load %arg7[%114, %c0_37] : memref<7x256xf32, #tpu.memory_space<vmem>>, vector<1x256xf32>
    tpu.vector_store %arg7[%114, %c0_37], %113 {strides = array<i32>} : memref<7x256xf32, #tpu.memory_space<vmem>>, vector<1x256xf32>,
    %c3_i32 = arith.constant 3 : i32
    %116 = arith.index_cast %c3_i32 : i32 to index
    %c0_38 = arith.constant 0 : index
    %117 = vector.load %arg8[%116, %c0_38] : memref<7x768xf32, #tpu.memory_space<vmem>>, vector<1x768xf32>
    %c0_39 = arith.constant 0 : index
    %c0_40 = arith.constant 0 : index
    %118 = vector.load %arg4[%c0_39, %c0_40] : memref<256x768xf32, #tpu.memory_space<vmem>>, vector<256x768xf32>
    %cst_41 = arith.constant dense<0.000000e+00> : vector<1x768xf32>
    %119 = tpu.matmul %113, %118, %cst_41 {dimension_numbers = #tpu.dot_dimension_numbers<[1], [0], [0], [1], [0, 0, 1, 1], [], []>} : vector<1x256xf32>, vector<256x768xf32>, vector<1x768xf32> -> vector<1x768xf32>
    %120 = vector.extract_strided_slice %117 {offsets = [0, 0], sizes = [1, 256], strides = [1, 1]} : vector<1x768xf32> to vector<1x256xf32>
    %121 = vector.extract_strided_slice %119 {offsets = [0, 0], sizes = [1, 256], strides = [1, 1]} : vector<1x768xf32> to vector<1x256xf32>
    %122 = arith.addf %120, %121 : vector<1x256xf32>
    %123 = arith.negf %122 : vector<1x256xf32>
    %124 = math.exp %123 : vector<1x256xf32>
    %cst_42 = arith.constant 1.000000e+00 : f32
    %125 = vector.broadcast %cst_42 : f32 to vector<1x256xf32>
    %126 = arith.addf %125, %124 : vector<1x256xf32>
    %127 = arith.divf %125, %126 : vector<1x256xf32>
    %128 = vector.extract_strided_slice %117 {offsets = [0, 256], sizes = [1, 256], strides = [1, 1]} : vector<1x768xf32> to vector<1x256xf32>
    %129 = vector.extract_strided_slice %119 {offsets = [0, 256], sizes = [1, 256], strides = [1, 1]} : vector<1x768xf32> to vector<1x256xf32>
    %130 = arith.addf %128, %129 : vector<1x256xf32>
    %131 = arith.negf %130 : vector<1x256xf32>
    %132 = math.exp %131 : vector<1x256xf32>
    %cst_43 = arith.constant 1.000000e+00 : f32
    %133 = vector.broadcast %cst_43 : f32 to vector<1x256xf32>
    %134 = arith.addf %133, %132 : vector<1x256xf32>
    %135 = arith.divf %133, %134 : vector<1x256xf32>
    %136 = vector.extract_strided_slice %117 {offsets = [0, 512], sizes = [1, 256], strides = [1, 1]} : vector<1x768xf32> to vector<1x256xf32>
    %137 = vector.extract_strided_slice %119 {offsets = [0, 512], sizes = [1, 256], strides = [1, 1]} : vector<1x768xf32> to vector<1x256xf32>
    %138 = arith.addf %137, %15 : vector<1x256xf32>
    %139 = arith.mulf %127, %138 : vector<1x256xf32>
    %140 = arith.addf %136, %139 : vector<1x256xf32>
    %141 = math.tanh %140 : vector<1x256xf32>
    %cst_44 = arith.constant 1.000000e+00 : f32
    %142 = vector.broadcast %cst_44 : f32 to vector<1x256xf32>
    %143 = arith.subf %142, %135 : vector<1x256xf32>
    %144 = arith.mulf %143, %141 : vector<1x256xf32>
    %145 = arith.mulf %135, %113 : vector<1x256xf32>
    %146 = arith.addf %144, %145 : vector<1x256xf32>
    %147 = arith.index_cast %c3_i32 : i32 to index
    %c0_45 = arith.constant 0 : index
    %148 = vector.load %arg7[%147, %c0_45] : memref<7x256xf32, #tpu.memory_space<vmem>>, vector<1x256xf32>
    tpu.vector_store %arg7[%147, %c0_45], %146 {strides = array<i32>} : memref<7x256xf32, #tpu.memory_space<vmem>>, vector<1x256xf32>,
    %c4_i32 = arith.constant 4 : i32
    %149 = arith.index_cast %c4_i32 : i32 to index
    %c0_46 = arith.constant 0 : index
    %150 = vector.load %arg8[%149, %c0_46] : memref<7x768xf32, #tpu.memory_space<vmem>>, vector<1x768xf32>
    %c0_47 = arith.constant 0 : index
    %c0_48 = arith.constant 0 : index
    %151 = vector.load %arg4[%c0_47, %c0_48] : memref<256x768xf32, #tpu.memory_space<vmem>>, vector<256x768xf32>
    %cst_49 = arith.constant dense<0.000000e+00> : vector<1x768xf32>
    %152 = tpu.matmul %146, %151, %cst_49 {dimension_numbers = #tpu.dot_dimension_numbers<[1], [0], [0], [1], [0, 0, 1, 1], [], []>} : vector<1x256xf32>, vector<256x768xf32>, vector<1x768xf32> -> vector<1x768xf32>
    %153 = vector.extract_strided_slice %150 {offsets = [0, 0], sizes = [1, 256], strides = [1, 1]} : vector<1x768xf32> to vector<1x256xf32>
    %154 = vector.extract_strided_slice %152 {offsets = [0, 0], sizes = [1, 256], strides = [1, 1]} : vector<1x768xf32> to vector<1x256xf32>
    %155 = arith.addf %153, %154 : vector<1x256xf32>
    %156 = arith.negf %155 : vector<1x256xf32>
    %157 = math.exp %156 : vector<1x256xf32>
    %cst_50 = arith.constant 1.000000e+00 : f32
    %158 = vector.broadcast %cst_50 : f32 to vector<1x256xf32>
    %159 = arith.addf %158, %157 : vector<1x256xf32>
    %160 = arith.divf %158, %159 : vector<1x256xf32>
    %161 = vector.extract_strided_slice %150 {offsets = [0, 256], sizes = [1, 256], strides = [1, 1]} : vector<1x768xf32> to vector<1x256xf32>
    %162 = vector.extract_strided_slice %152 {offsets = [0, 256], sizes = [1, 256], strides = [1, 1]} : vector<1x768xf32> to vector<1x256xf32>
    %163 = arith.addf %161, %162 : vector<1x256xf32>
    %164 = arith.negf %163 : vector<1x256xf32>
    %165 = math.exp %164 : vector<1x256xf32>
    %cst_51 = arith.constant 1.000000e+00 : f32
    %166 = vector.broadcast %cst_51 : f32 to vector<1x256xf32>
    %167 = arith.addf %166, %165 : vector<1x256xf32>
    %168 = arith.divf %166, %167 : vector<1x256xf32>
    %169 = vector.extract_strided_slice %150 {offsets = [0, 512], sizes = [1, 256], strides = [1, 1]} : vector<1x768xf32> to vector<1x256xf32>
    %170 = vector.extract_strided_slice %152 {offsets = [0, 512], sizes = [1, 256], strides = [1, 1]} : vector<1x768xf32> to vector<1x256xf32>
    %171 = arith.addf %170, %15 : vector<1x256xf32>
    %172 = arith.mulf %160, %171 : vector<1x256xf32>
    %173 = arith.addf %169, %172 : vector<1x256xf32>
    %174 = math.tanh %173 : vector<1x256xf32>
    %cst_52 = arith.constant 1.000000e+00 : f32
    %175 = vector.broadcast %cst_52 : f32 to vector<1x256xf32>
    %176 = arith.subf %175, %168 : vector<1x256xf32>
    %177 = arith.mulf %176, %174 : vector<1x256xf32>
    %178 = arith.mulf %168, %146 : vector<1x256xf32>
    %179 = arith.addf %177, %178 : vector<1x256xf32>
    %180 = arith.index_cast %c4_i32 : i32 to index
    %c0_53 = arith.constant 0 : index
    %181 = vector.load %arg7[%180, %c0_53] : memref<7x256xf32, #tpu.memory_space<vmem>>, vector<1x256xf32>
    tpu.vector_store %arg7[%180, %c0_53], %179 {strides = array<i32>} : memref<7x256xf32, #tpu.memory_space<vmem>>, vector<1x256xf32>,
    %c5_i32 = arith.constant 5 : i32
    %182 = arith.index_cast %c5_i32 : i32 to index
    %c0_54 = arith.constant 0 : index
    %183 = vector.load %arg8[%182, %c0_54] : memref<7x768xf32, #tpu.memory_space<vmem>>, vector<1x768xf32>
    %c0_55 = arith.constant 0 : index
    %c0_56 = arith.constant 0 : index
    %184 = vector.load %arg4[%c0_55, %c0_56] : memref<256x768xf32, #tpu.memory_space<vmem>>, vector<256x768xf32>
    %cst_57 = arith.constant dense<0.000000e+00> : vector<1x768xf32>
    %185 = tpu.matmul %179, %184, %cst_57 {dimension_numbers = #tpu.dot_dimension_numbers<[1], [0], [0], [1], [0, 0, 1, 1], [], []>} : vector<1x256xf32>, vector<256x768xf32>, vector<1x768xf32> -> vector<1x768xf32>
    %186 = vector.extract_strided_slice %183 {offsets = [0, 0], sizes = [1, 256], strides = [1, 1]} : vector<1x768xf32> to vector<1x256xf32>
    %187 = vector.extract_strided_slice %185 {offsets = [0, 0], sizes = [1, 256], strides = [1, 1]} : vector<1x768xf32> to vector<1x256xf32>
    %188 = arith.addf %186, %187 : vector<1x256xf32>
    %189 = arith.negf %188 : vector<1x256xf32>
    %190 = math.exp %189 : vector<1x256xf32>
    %cst_58 = arith.constant 1.000000e+00 : f32
    %191 = vector.broadcast %cst_58 : f32 to vector<1x256xf32>
    %192 = arith.addf %191, %190 : vector<1x256xf32>
    %193 = arith.divf %191, %192 : vector<1x256xf32>
    %194 = vector.extract_strided_slice %183 {offsets = [0, 256], sizes = [1, 256], strides = [1, 1]} : vector<1x768xf32> to vector<1x256xf32>
    %195 = vector.extract_strided_slice %185 {offsets = [0, 256], sizes = [1, 256], strides = [1, 1]} : vector<1x768xf32> to vector<1x256xf32>
    %196 = arith.addf %194, %195 : vector<1x256xf32>
    %197 = arith.negf %196 : vector<1x256xf32>
    %198 = math.exp %197 : vector<1x256xf32>
    %cst_59 = arith.constant 1.000000e+00 : f32
    %199 = vector.broadcast %cst_59 : f32 to vector<1x256xf32>
    %200 = arith.addf %199, %198 : vector<1x256xf32>
    %201 = arith.divf %199, %200 : vector<1x256xf32>
    %202 = vector.extract_strided_slice %183 {offsets = [0, 512], sizes = [1, 256], strides = [1, 1]} : vector<1x768xf32> to vector<1x256xf32>
    %203 = vector.extract_strided_slice %185 {offsets = [0, 512], sizes = [1, 256], strides = [1, 1]} : vector<1x768xf32> to vector<1x256xf32>
    %204 = arith.addf %203, %15 : vector<1x256xf32>
    %205 = arith.mulf %193, %204 : vector<1x256xf32>
    %206 = arith.addf %202, %205 : vector<1x256xf32>
    %207 = math.tanh %206 : vector<1x256xf32>
    %cst_60 = arith.constant 1.000000e+00 : f32
    %208 = vector.broadcast %cst_60 : f32 to vector<1x256xf32>
    %209 = arith.subf %208, %201 : vector<1x256xf32>
    %210 = arith.mulf %209, %207 : vector<1x256xf32>
    %211 = arith.mulf %201, %179 : vector<1x256xf32>
    %212 = arith.addf %210, %211 : vector<1x256xf32>
    %213 = arith.index_cast %c5_i32 : i32 to index
    %c0_61 = arith.constant 0 : index
    %214 = vector.load %arg7[%213, %c0_61] : memref<7x256xf32, #tpu.memory_space<vmem>>, vector<1x256xf32>
    tpu.vector_store %arg7[%213, %c0_61], %212 {strides = array<i32>} : memref<7x256xf32, #tpu.memory_space<vmem>>, vector<1x256xf32>,
    %c6_i32 = arith.constant 6 : i32
    %215 = arith.index_cast %c6_i32 : i32 to index
    %c0_62 = arith.constant 0 : index
    %216 = vector.load %arg8[%215, %c0_62] : memref<7x768xf32, #tpu.memory_space<vmem>>, vector<1x768xf32>
    %c0_63 = arith.constant 0 : index
    %c0_64 = arith.constant 0 : index
    %217 = vector.load %arg4[%c0_63, %c0_64] : memref<256x768xf32, #tpu.memory_space<vmem>>, vector<256x768xf32>
    %cst_65 = arith.constant dense<0.000000e+00> : vector<1x768xf32>
    %218 = tpu.matmul %212, %217, %cst_65 {dimension_numbers = #tpu.dot_dimension_numbers<[1], [0], [0], [1], [0, 0, 1, 1], [], []>} : vector<1x256xf32>, vector<256x768xf32>, vector<1x768xf32> -> vector<1x768xf32>
    %219 = vector.extract_strided_slice %216 {offsets = [0, 0], sizes = [1, 256], strides = [1, 1]} : vector<1x768xf32> to vector<1x256xf32>
    %220 = vector.extract_strided_slice %218 {offsets = [0, 0], sizes = [1, 256], strides = [1, 1]} : vector<1x768xf32> to vector<1x256xf32>
    %221 = arith.addf %219, %220 : vector<1x256xf32>
    %222 = arith.negf %221 : vector<1x256xf32>
    %223 = math.exp %222 : vector<1x256xf32>
    %cst_66 = arith.constant 1.000000e+00 : f32
    %224 = vector.broadcast %cst_66 : f32 to vector<1x256xf32>
    %225 = arith.addf %224, %223 : vector<1x256xf32>
    %226 = arith.divf %224, %225 : vector<1x256xf32>
    %227 = vector.extract_strided_slice %216 {offsets = [0, 256], sizes = [1, 256], strides = [1, 1]} : vector<1x768xf32> to vector<1x256xf32>
    %228 = vector.extract_strided_slice %218 {offsets = [0, 256], sizes = [1, 256], strides = [1, 1]} : vector<1x768xf32> to vector<1x256xf32>
    %229 = arith.addf %227, %228 : vector<1x256xf32>
    %230 = arith.negf %229 : vector<1x256xf32>
    %231 = math.exp %230 : vector<1x256xf32>
    %cst_67 = arith.constant 1.000000e+00 : f32
    %232 = vector.broadcast %cst_67 : f32 to vector<1x256xf32>
    %233 = arith.addf %232, %231 : vector<1x256xf32>
    %234 = arith.divf %232, %233 : vector<1x256xf32>
    %235 = vector.extract_strided_slice %216 {offsets = [0, 512], sizes = [1, 256], strides = [1, 1]} : vector<1x768xf32> to vector<1x256xf32>
    %236 = vector.extract_strided_slice %218 {offsets = [0, 512], sizes = [1, 256], strides = [1, 1]} : vector<1x768xf32> to vector<1x256xf32>
    %237 = arith.addf %236, %15 : vector<1x256xf32>
    %238 = arith.mulf %226, %237 : vector<1x256xf32>
    %239 = arith.addf %235, %238 : vector<1x256xf32>
    %240 = math.tanh %239 : vector<1x256xf32>
    %cst_68 = arith.constant 1.000000e+00 : f32
    %241 = vector.broadcast %cst_68 : f32 to vector<1x256xf32>
    %242 = arith.subf %241, %234 : vector<1x256xf32>
    %243 = arith.mulf %242, %240 : vector<1x256xf32>
    %244 = arith.mulf %234, %212 : vector<1x256xf32>
    %245 = arith.addf %243, %244 : vector<1x256xf32>
    %246 = arith.index_cast %c6_i32 : i32 to index
    %c0_69 = arith.constant 0 : index
    %247 = vector.load %arg7[%246, %c0_69] : memref<7x256xf32, #tpu.memory_space<vmem>>, vector<1x256xf32>
    tpu.vector_store %arg7[%246, %c0_69], %245 {strides = array<i32>} : memref<7x256xf32, #tpu.memory_space<vmem>>, vector<1x256xf32>,
    %c7_i32 = arith.constant 7 : i32
    return
  }
}

</mosaic_0001>

<bundles_post_ra>
// kernel: tpu_custom_call.1
= control target key start
LH: loop header
LB: loop body
LE: loop exit
PB: predicated region body
PF: predicated region fallthrough
CT: control target
= control target key end

     0   :  { %12 = vsyncpa [#allocation4], 0  ;;  %s7733_s0 = inlined_call_operand.vmem [shape: s32[7,1], index: 0, kind: input, shape index: {}]   ;;  %s7734_s1 = inlined_call_operand.hbm [shape: f32[64,256], index: 1, kind: input, shape index: {}]   ;;  %s7735_s2 = inlined_call_operand.vmem [shape: f32[1,256], index: 2, kind: input, shape index: {}]   ;;  %s7736_s3 = inlined_call_operand.hbm [shape: bf16[256,768], index: 3, kind: input, shape index: {}]   ;;  %s7737_s4 = inlined_call_operand.hbm [shape: f32[256,768], index: 4, kind: input, shape index: {}]   ;;  %s7738_s5 = inlined_call_operand.vmem [shape: f32[1,768], index: 5, kind: input, shape index: {}]   ;;  %s7739_s6 = inlined_call_operand.vmem [shape: f32[1,256], index: 6, kind: input, shape index: {}]   ;;  %s7740_s7 = inlined_call_operand.hbm [shape: f32[7,256], index: 7, kind: output, shape index: {}]  }
   0x1   :  { %13 = vsyncpa [#allocation7], 0 }
   0x2   :  { %14 = vsyncpa [#allocation5], 0  ;;  %s6268_s24 = smov [#allocation6]   ;;  %s6174_s28 = scalar_lea.hbm %s7736_s3, 12288 }
   0x3   :  { %s36_s25 = sshll.u32 %s6268_s24, 4  ;;  %p6175_p0 = scmp.ne.s32.totalorder %s7736_s3, %s6174_s28  ;;  %s37_s25 = int_to_ptr.vmem [resolvable:$true] %s36_s25 }
   0x4   :  { %p6178_p1 = scmp.lt.u32.totalorder %s6174_s28, %s7736_s3 }
   0x6   :  { %p6180_p2 = pnand %p6178_p1, %p6175_p0 }
   0x8   :  { %6183 = shalt.err (!%p6180_p2)
}
   0x9   :  { %s6184_s10 = scalar_lea.vmem %s37_s25, 12288  ;;  %p6189_p4 = scmp.lt.s32.totalorder %s37_s25, %s37_s25 }
   0xa   :  { %p6185_p3 = scmp.ne.s32.totalorder %s37_s25, %s6184_s10  ;;  %p6190_p5 = scmp.lt.s32.totalorder %s6184_s10, %s6184_s10 }
   0xc   :  { %p6191_p6 = por %p6190_p5, %p6189_p4 }
   0xe   :  { %p6192_p7 = pnand %p6191_p6, %p6185_p3 }
  0x10   :  { %6195 = shalt.err (!%p6192_p7)
}
  0x11   :  { %s6269_s11 = smov 384   ;;  %s6270_s12 = smov 24  }
  0x12   :  { %42 = dma.hbm_to_vmem [thread:$0]  %s7736_s3, 12288, %s37_s25, [#allocation7], %s6269_s11, %s6269_s11, %s6270_s12  }
  0x13   :  { %s6271_s15 = smov [#allocation3]   ;;  %s6196_s19 = scalar_lea.hbm %s7734_s1, 2048 }
  0x14   :  { %s22_s16 = sshll.u32 %s6271_s15, 4  ;;  %p6197_p8 = scmp.ne.s32.totalorder %s7734_s1, %s6196_s19  ;;  %s23_s16 = int_to_ptr.vmem [resolvable:$true] %s22_s16 }
  0x15   :  { %p6200_p9 = scmp.lt.u32.totalorder %s6196_s19, %s7734_s1 }
  0x17   :  { %p6202_p10 = pnand %p6200_p9, %p6197_p8 }
  0x19   :  { %6205 = shalt.err (!%p6202_p10)
}
  0x1a   :  { %s6206_s24 = scalar_lea.vmem %s23_s16, 2048  ;;  %p6211_p12 = scmp.lt.s32.totalorder %s23_s16, %s23_s16 }
  0x1b   :  { %p6207_p11 = scmp.ne.s32.totalorder %s23_s16, %s6206_s24  ;;  %p6212_p13 = scmp.lt.s32.totalorder %s6206_s24, %s6206_s24 }
  0x1d   :  { %p6213_p0 = por %p6212_p13, %p6211_p12 }
  0x1f   :  { %p6214_p1 = pnand %p6213_p0, %p6207_p11 }
  0x21   :  { %6217 = shalt.err (!%p6214_p1)
}
  0x22   :  { %s6272_s3 = smov 256   ;;  %s6273_s25 = smov 16  }
  0x23   :  { %28 = dma.hbm_to_vmem [thread:$0]  %s7734_s1, 2048, %s23_s16, [#allocation4], %s6272_s3, %s6272_s3, %s6273_s25  }
  0x24   :  { %s6274_s28 = smov [#allocation8]   ;;  %s6218_s9 = scalar_lea.hbm %s7737_s4, 24576 }
  0x25   :  { %s48_s29 = sshll.u32 %s6274_s28, 4  ;;  %p6219_p2 = scmp.ne.s32.totalorder %s7737_s4, %s6218_s9  ;;  %s49_s29 = int_to_ptr.vmem [resolvable:$true] %s48_s29 }
  0x26   :  { %p6222_p3 = scmp.lt.u32.totalorder %s6218_s9, %s7737_s4 }
  0x28   :  { %p6224_p4 = pnand %p6222_p3, %p6219_p2 }
  0x2a   :  { %6227 = shalt.err (!%p6224_p4)
}
  0x2b   :  { %s6228_s14 = scalar_lea.vmem %s49_s29, 24576  ;;  %p6233_p6 = scmp.lt.s32.totalorder %s49_s29, %s49_s29 }
  0x2c   :  { %p6229_p5 = scmp.ne.s32.totalorder %s49_s29, %s6228_s14  ;;  %p6234_p7 = scmp.lt.s32.totalorder %s6228_s14, %s6228_s14 }
  0x2e   :  { %p6235_p8 = por %p6234_p7, %p6233_p6 }
  0x30   :  { %p6236_p9 = pnand %p6235_p8, %p6229_p5 }
  0x32   :  { %6239 = shalt.err (!%p6236_p9)
}
  0x33   :  { %s6275_s1 = smov 768   ;;  %s6276_s15 = smov 48  }
  0x34   :  { %54 = dma.hbm_to_vmem [thread:$0]  %s7737_s4, 24576, %s49_s29, [#allocation7], %s6275_s1, %s6275_s1, %s6276_s15  }
  0x35   :  { %6262 = dma.done.wait [#allocation4], 2048  }
  0x36   :  { %6263 = vsyncadd [#allocation4], 4294965248 }
  0x37   :  { %6264 = dma.done.wait [#allocation7], 36864  }
  0x38   :  { %6265 = vsyncadd [#allocation7], 4294930432  ;;  %v6277_v0 = vmov 0   ;;  %v68_v1 = vld [vmem:[%s7733_s0] sm:$0x7f]  ;;  %v80_v3 = vld [vmem:[#allocation3 + $0x18] sm:$0xff]  ;;  %v7741_v58 = vlaneseq }
  0x39   :  { %5958 = vset.pattern.permute.xlu0 %v6277_v0  ;;  %v78_v2 = vld [vmem:[#allocation3 + $0x8] sm:$0xff]  ;;  %v77_v5 = vld [vmem:[#allocation3] sm:$0xff]  ;;  %v79_v6 = vld [vmem:[#allocation3 + $0x10] sm:$0xff]  ;;  %v6278_v12 = vmov 0.0   ;;  %vm93_vm0 = vcmask 523264  }
  0x3a   :  { %72 = vperm.xlu0 %5958, %v68_v1   ;;  %v4585_v4 = vpack.c.bf16 %v80_v3, %v78_v2  ;;  %v82_v7 = vld [vmem:[#allocation3 + $0x28] sm:$0xff]  ;;  %v4587_v8 = vpack.c.bf16 %v79_v6, %v77_v5  ;;  %v84_v9 = vld [vmem:[#allocation3 + $0x38] sm:$0xff]  ;;  %v81_v10 = vld [vmem:[#allocation3 + $0x20] sm:$0xff]  ;;  %161 = vmatprep.mubr.f32.mxu0 %v6278_v12  ;;  %v70_v59 = vand.u32 127, %v7741_v58 }
  0x3b   :  { %v83_v11 = vld [vmem:[#allocation3 + $0x30] sm:$0xff]  ;;  %v4589_v13 = vpack.c.bf16 %v84_v9, %v82_v7  ;;  %v86_v14 = vld [vmem:[#allocation3 + $0x48] sm:$0xff]  ;;  %v88_v15 = vld [vmem:[#allocation3 + $0x58] sm:$0xff] }
  0x3c   :  { %4586 = vmatprep.subr.bf16.mxu0 %v4585_v4  ;;  %v4591_v16 = vpack.c.bf16 %v83_v11, %v81_v10  ;;  %v85_v17 = vld [vmem:[#allocation3 + $0x40] sm:$0xff]  ;;  %v87_v18 = vld [vmem:[#allocation3 + $0x50] sm:$0xff]  ;;  %v4593_v19 = vpack.c.bf16 %v88_v15, %v86_v14  ;;  %v90_v20 = vld [vmem:[#allocation3 + $0x68] sm:$0xff] }
  0x3d   :  { %4588 = vmatpush1.bf16.msra.mxu0 %v4587_v8  ;;  %v92_v21 = vld [vmem:[#allocation3 + $0x78] sm:$0xff]  ;;  %v89_v23 = vld [vmem:[#allocation3 + $0x60] sm:$0xff]  ;;  %v91_v24 = vld [vmem:[#allocation3 + $0x70] sm:$0xff]  ;;  %v4595_v25 = vpack.c.bf16 %v87_v18, %v85_v17 }
  0x3e   :  { %4590 = vmatprep.subr.bf16.mxu0 %v4589_v13  ;;  %v5959_v22 = vld [vmem:[#allocation6 + $0x4] ss:$24 sps:$4 sm:$0xff]   ;;  %v5964_v26 = vld [vmem:[#allocation6] ss:$24 sps:$4 sm:$0xff]   ;;  %v4597_v27 = vpack.c.bf16 %v92_v21, %v90_v20  ;;  %v5965_v28 = vld [vmem:[#allocation6 + $0x34] ss:$24 sps:$4 sm:$0xff]   ;;  %v4599_v31 = vpack.c.bf16 %v91_v24, %v89_v23 }
  0x3f   :  { %778 = vmatprep.subr.bf16.mxu1 %v5959_v22  ;;  %v5970_v29 = vld [vmem:[#allocation6 + $0x30] ss:$24 sps:$4 sm:$0xff]   ;;  %v5971_v30 = vld [vmem:[#allocation6 + $0x64] ss:$24 sps:$4 sm:$0xff]   ;;  %v5976_v33 = vld [vmem:[#allocation6 + $0x60] ss:$24 sps:$4 sm:$0xff]  }
  0x40   :  { %779 = vmatpush1.bf16.msra.mxu1 %v5964_v26  ;;  %v5963_v32 = vld [vmem:[#allocation6 + $0xc] ss:$24 sps:$4 sm:$0xff]   ;;  %v5982_v35 = vld [vmem:[#allocation6 + $0x90] ss:$24 sps:$4 sm:$0xff]   ;;  %v5988_v37 = vld [vmem:[#allocation6 + $0xc0] ss:$24 sps:$4 sm:$0xff]  }
  0x41   :  { %4592 = vmatpush1.bf16.msra.mxu0 %v4591_v16  ;;  %780 = vmatprep.subr.bf16.mxu1 %v5965_v28  ;;  %v5977_v34 = vld [vmem:[#allocation6 + $0x94] ss:$24 sps:$4 sm:$0xff]   ;;  %v5983_v36 = vld [vmem:[#allocation6 + $0xc4] ss:$24 sps:$4 sm:$0xff]   ;;  %v5994_v39 = vld [vmem:[#allocation6 + $0xf0] ss:$24 sps:$4 sm:$0xff]  }
  0x42   :  { %4594 = vmatprep.subr.bf16.mxu0 %v4593_v19  ;;  %v5989_v38 = vld [vmem:[#allocation6 + $0xf4] ss:$24 sps:$4 sm:$0xff]   ;;  %v5995_v40 = vld [vmem:[#allocation6 + $0x124] ss:$24 sps:$4 sm:$0xff]   ;;  %v6000_v41 = vld [vmem:[#allocation6 + $0x120] ss:$24 sps:$4 sm:$0xff]  }
  0x43   :  { %v6001_v42 = vld [vmem:[#allocation6 + $0x154] ss:$24 sps:$4 sm:$0xff]   ;;  %v6006_v43 = vld [vmem:[#allocation6 + $0x150] ss:$24 sps:$4 sm:$0xff]   ;;  %v6007_v44 = vld [vmem:[#allocation6 + $0x184] ss:$24 sps:$4 sm:$0xff]  }
  0x44   :  { %781 = vmatpush1.bf16.msra.mxu1 %v5970_v29  ;;  %v6012_v45 = vld [vmem:[#allocation6 + $0x180] ss:$24 sps:$4 sm:$0xff]   ;;  %v6013_v46 = vld [vmem:[#allocation6 + $0x1b4] ss:$24 sps:$4 sm:$0xff]   ;;  %v6018_v47 = vld [vmem:[#allocation6 + $0x1b0] ss:$24 sps:$4 sm:$0xff]  }
  0x45   :  { %4596 = vmatpush1.bf16.msra.mxu0 %v4595_v25  ;;  %782 = vmatprep.subr.bf16.mxu1 %v5971_v30  ;;  %v6019_v48 = vld [vmem:[#allocation6 + $0x1e4] ss:$24 sps:$4 sm:$0xff]   ;;  %v6024_v49 = vld [vmem:[#allocation6 + $0x1e0] ss:$24 sps:$4 sm:$0xff]   ;;  %v6025_v50 = vld [vmem:[#allocation6 + $0x214] ss:$24 sps:$4 sm:$0xff]  }
  0x46   :  { %4598 = vmatprep.subr.bf16.mxu0 %v4597_v27  ;;  %v6030_v51 = vld [vmem:[#allocation6 + $0x210] ss:$24 sps:$4 sm:$0xff]   ;;  %v6031_v52 = vld [vmem:[#allocation6 + $0x244] ss:$24 sps:$4 sm:$0xff]   ;;  %v6036_v53 = vld [vmem:[#allocation6 + $0x240] ss:$24 sps:$4 sm:$0xff]  }
  0x47   :  { %v6037_v54 = vld [vmem:[#allocation6 + $0x274] ss:$24 sps:$4 sm:$0xff]   ;;  %v6042_v55 = vld [vmem:[#allocation6 + $0x270] ss:$24 sps:$4 sm:$0xff]   ;;  %v6043_v56 = vld [vmem:[#allocation6 + $0x2a4] ss:$24 sps:$4 sm:$0xff]  }
  0x48   :  { %783 = vmatpush1.bf16.msra.mxu1 %v5976_v33  ;;  %v6048_v57 = vld [vmem:[#allocation6 + $0x2a0] ss:$24 sps:$4 sm:$0xff]   ;;  %v5969_v62 = vld [vmem:[#allocation6 + $0x3c] ss:$24 sps:$4 sm:$0xff]   ;;  %v5975_v1 = vld [vmem:[#allocation6 + $0x6c] ss:$24 sps:$4 sm:$0xff]  }
  0x49   :  { %4600 = vmatpush1.bf16.msra.mxu0 %v4599_v31  ;;  %784 = vmatprep.subr.bf16.mxu1 %v5977_v34  ;;  %v5961_v61 = vld [vmem:[#allocation6 + $0x8] ss:$24 sps:$4 sm:$0xff]   ;;  %v5967_v0 = vld [vmem:[#allocation6 + $0x38] ss:$24 sps:$4 sm:$0xff]   ;;  %v5981_v3 = vld [vmem:[#allocation6 + $0x9c] ss:$24 sps:$4 sm:$0xff]  }
  0x4a   :  { %819 = vmatprep.subr.bf16.mxu0 %v5963_v32  ;;  %v5973_v2 = vld [vmem:[#allocation6 + $0x68] ss:$24 sps:$4 sm:$0xff]   ;;  %v5979_v4 = vld [vmem:[#allocation6 + $0x98] ss:$24 sps:$4 sm:$0xff]   ;;  %v5987_v5 = vld [vmem:[#allocation6 + $0xcc] ss:$24 sps:$4 sm:$0xff]  }
  0x4b   :  { %v5985_v6 = vld [vmem:[#allocation6 + $0xc8] ss:$24 sps:$4 sm:$0xff]   ;;  %v5993_v7 = vld [vmem:[#allocation6 + $0xfc] ss:$24 sps:$4 sm:$0xff]   ;;  %v5991_v8 = vld [vmem:[#allocation6 + $0xf8] ss:$24 sps:$4 sm:$0xff]  }
  0x4c   :  { %785 = vmatpush1.bf16.msra.mxu1 %v5982_v35  ;;  %v5999_v9 = vld [vmem:[#allocation6 + $0x12c] ss:$24 sps:$4 sm:$0xff]   ;;  %v5997_v10 = vld [vmem:[#allocation6 + $0x128] ss:$24 sps:$4 sm:$0xff]   ;;  %v6005_v11 = vld [vmem:[#allocation6 + $0x15c] ss:$24 sps:$4 sm:$0xff]  }
  0x4d   :  { %786 = vmatprep.subr.bf16.mxu1 %v5983_v36  ;;  %v6011_v13 = vld [vmem:[#allocation6 + $0x18c] ss:$24 sps:$4 sm:$0xff]   ;;  %v6009_v14 = vld [vmem:[#allocation6 + $0x188] ss:$24 sps:$4 sm:$0xff]   ;;  %v6017_v15 = vld [vmem:[#allocation6 + $0x1bc] ss:$24 sps:$4 sm:$0xff]  }
  0x4e   :  { %v6015_v16 = vld [vmem:[#allocation6 + $0x1b8] ss:$24 sps:$4 sm:$0xff]   ;;  %v6023_v17 = vld [vmem:[#allocation6 + $0x1ec] ss:$24 sps:$4 sm:$0xff]   ;;  %v6021_v18 = vld [vmem:[#allocation6 + $0x1e8] ss:$24 sps:$4 sm:$0xff]  }
  0x4f   :  { %v6029_v19 = vld [vmem:[#allocation6 + $0x21c] ss:$24 sps:$4 sm:$0xff]   ;;  %v6027_v20 = vld [vmem:[#allocation6 + $0x218] ss:$24 sps:$4 sm:$0xff]   ;;  %v6035_v21 = vld [vmem:[#allocation6 + $0x24c] ss:$24 sps:$4 sm:$0xff]  }
  0x50   :  { %787 = vmatpush1.bf16.msra.mxu1 %v5988_v37  ;;  %v6033_v22 = vld [vmem:[#allocation6 + $0x248] ss:$24 sps:$4 sm:$0xff]   ;;  %v6041_v23 = vld [vmem:[#allocation6 + $0x27c] ss:$24 sps:$4 sm:$0xff]   ;;  %v6039_v24 = vld [vmem:[#allocation6 + $0x278] ss:$24 sps:$4 sm:$0xff]  }
  0x51   :  { %788 = vmatprep.subr.bf16.mxu1 %v5989_v38  ;;  %v6047_v25 = vld [vmem:[#allocation6 + $0x2ac] ss:$24 sps:$4 sm:$0xff]   ;;  %v6045_v26 = vld [vmem:[#allocation6 + $0x2a8] ss:$24 sps:$4 sm:$0xff]   ;;  %v6053_v28 = vld [vmem:[#allocation6 + $0x2dc] ss:$24 sps:$4 sm:$0xff]  }
  0x52   :  { %v6049_v27 = vld [vmem:[#allocation6 + $0x2d4] ss:$24 sps:$4 sm:$0xff]   ;;  %v6051_v29 = vld [vmem:[#allocation6 + $0x2d8] ss:$24 sps:$4 sm:$0xff]   ;;  %v6364_v35 = vshrl.u32 %v7741_v58, 7  ;;  %v912_v36 = vld [vmem:[#allocation8] sm:$0xff] }
  0x53   :  { %v6054_v30 = vld [vmem:[#allocation6 + $0x2d0] ss:$24 sps:$4 sm:$0xff]   ;;  %v919_v32 = vld [vmem:[#allocation8 + $0x38] sm:$0xff]  ;;  %v6057_v33 = vld [vmem:[#allocation6 + $0x14] ss:$24 sps:$4 sm:$0xff]  }
  0x54   :  { %789 = vmatpush1.bf16.msra.mxu1 %v5994_v39  ;;  %v913_v31 = vld [vmem:[#allocation8 + $0x8] sm:$0xff]  ;;  %v918_v37 = vld [vmem:[#allocation8 + $0x30] sm:$0xff]  ;;  %v6367_v38 = vsub.s32 1, %v6364_v35 }
  0x55   :  { %790 = vmatprep.subr.bf16.mxu1 %v5995_v40  ;;  %v4601_v34 = vpack.c.bf16 %v919_v32, %v913_v31  ;;  %v1003_v31 = vld [vmem:[#allocation8 + $0x2d8] sm:$0xff]  ;;  %v6073_v32 = vld [vmem:[#allocation6 + $0x130] ss:$24 sps:$4 sm:$0xff]  }
  0x58   :  { %791 = vmatpush1.bf16.msra.mxu1 %v6000_v41  ;;  %v925_v41 = vld [vmem:[#allocation8 + $0x68] sm:$0xff] }
  0x59   :  { %792 = vmatprep.subr.bf16.mxu1 %v6001_v42  ;;  %v931_v42 = vld [vmem:[#allocation8 + $0x98] sm:$0xff] }
  0x5c   :  { %793 = vmatpush1.bf16.msra.mxu1 %v6006_v43  ;;  %v6372_v43 = vld [vmem:[%s7735_s2] sm:$0x3] }
  0x5d   :  { %794 = vmatprep.subr.bf16.mxu1 %v6007_v44 }
  0x60   :  { %795 = vmatpush1.bf16.msra.mxu1 %v6012_v45  ;;  %v6055_v45 = vld [vmem:[#allocation6 + $0x10] ss:$24 sps:$4 sm:$0xff]  }
  0x61   :  { %796 = vmatprep.subr.bf16.mxu1 %v6013_v46  ;;  %v4603_v46 = vpack.c.bf16 %v918_v37, %v912_v36  ;;  %v996_v37 = vld [vmem:[#allocation8 + $0x2a0] sm:$0xff] }
  0x64   :  { %797 = vmatpush1.bf16.msra.mxu1 %v6018_v47 }
  0x65   :  { %798 = vmatprep.subr.bf16.mxu1 %v6019_v48  ;;  %v6060_v48 = vld [vmem:[#allocation6 + $0x44] ss:$24 sps:$4 sm:$0xff]  }
  0x68   :  { %799 = vmatpush1.bf16.msra.mxu1 %v6024_v49  ;;  %v924_v49 = vld [vmem:[#allocation8 + $0x60] sm:$0xff] }
  0x69   :  { %800 = vmatprep.subr.bf16.mxu1 %v6025_v50  ;;  %v930_v50 = vld [vmem:[#allocation8 + $0x90] sm:$0xff] }
  0x6c   :  { %801 = vmatpush1.bf16.msra.mxu1 %v6030_v51  ;;  %v4605_v51 = vpack.c.bf16 %v931_v42, %v925_v41  ;;  %v1015_v41 = vld [vmem:[#allocation8 + $0x338] sm:$0xff] }
  0x6d   :  { %802 = vmatprep.subr.bf16.mxu1 %v6031_v52  ;;  %v937_v52 = vld [vmem:[#allocation8 + $0xc8] sm:$0xff]  ;;  %v6076_v42 = vld [vmem:[#allocation6 + $0x160] ss:$24 sps:$4 sm:$0xff]  }
  0x70   :  { %803 = vmatpush1.bf16.msra.mxu1 %v6036_v53  ;;  %v943_v53 = vld [vmem:[#allocation8 + $0xf8] sm:$0xff] }
  0x71   :  { %804 = vmatprep.subr.bf16.mxu1 %v6037_v54  ;;  %v6378_v54 = vrot.slane %v6372_v43, %v6367_v38 }
  0x74   :  { %805 = vmatpush1.bf16.msra.mxu1 %v6042_v55  ;;  %v6058_v55 = vld [vmem:[#allocation6 + $0x40] ss:$24 sps:$4 sm:$0xff]  }
  0x75   :  { %806 = vmatprep.subr.bf16.mxu1 %v6043_v56  ;;  %v4607_v56 = vpack.c.bf16 %v930_v50, %v924_v49  ;;  %v1014_v49 = vld [vmem:[#allocation8 + $0x330] sm:$0xff]  ;;  %v1021_v50 = vld [vmem:[#allocation8 + $0x368] sm:$0xff] }
  0x78   :  { %807 = vmatpush1.bf16.msra.mxu1 %v6048_v57  ;;  %v6063_v57 = vld [vmem:[#allocation6 + $0x74] ss:$24 sps:$4 sm:$0xff]  }
  0x79   :  { %808 = vmatprep.subr.bf16.mxu1 %v6049_v27 }
  0x7c   :  { %809 = vmatpush1.bf16.msra.mxu1 %v6054_v30  ;;  %v997_v30 = vld [vmem:[#allocation8 + $0x2a8] sm:$0xff] }
  0x7d   :  { %860 = vmatprep.subr.bf16.mxu1 %v6057_v33  ;;  %v4629_v36 = vpack.c.bf16 %v1003_v31, %v997_v30  ;;  %v6094_v30 = vld [vmem:[#allocation6 + $0x280] ss:$24 sps:$4 sm:$0xff]  }
  0xb9   :  { %v73_v60 = vpop.permute.xlu0 %72 }
  0xba   :  { %vm74_vm1 = vcmp.eq.s32.totalorder %v73_v60, %v70_v59  ;;  %v4609_v59 = vpack.c.bf16 %v943_v53, %v937_v52  ;;  %v936_v60 = vld [vmem:[#allocation8 + $0xc0] sm:$0xff]  ;;  %v6079_v52 = vld [vmem:[#allocation6 + $0x190] ss:$24 sps:$4 sm:$0xff]  }
  0xbb   :  { %v4473_v63 = vsel %vm74_vm1, 1.0, %v6278_v12  ;;  %v6003_v12 = vld [vmem:[#allocation6 + $0x158] ss:$24 sps:$4 sm:$0xff]  }
  0xbc   :  { %4474 = vmatmul.mubr.msk.f32.vlgmr.msra.gmra.mrb[0].mxu0 %vm93_vm0, %v4473_v63  ;;  %v955_v63 = vld [vmem:[#allocation8 + $0x158] sm:$0xff] }
  0xbd   :  { %820 = vmatpush1.bf16.msra.mxu0 %v5961_v61  ;;  %v942_v61 = vld [vmem:[#allocation8 + $0xf0] sm:$0xff] }
  0xbe   :  { %821 = vmatprep.subr.bf16.mxu0 %v5969_v62  ;;  %v949_v62 = vld [vmem:[#allocation8 + $0x128] sm:$0xff] }
  0xc1   :  { %822 = vmatpush1.bf16.msra.mxu0 %v5967_v0  ;;  %v6061_v0 = vld [vmem:[#allocation6 + $0x70] ss:$24 sps:$4 sm:$0xff]  }
  0xc2   :  { %823 = vmatprep.subr.bf16.mxu0 %v5975_v1  ;;  %v4611_v1 = vpack.c.bf16 %v942_v61, %v936_v60  ;;  %v1033_v60 = vld [vmem:[#allocation8 + $0x3c8] sm:$0xff]  ;;  %v1039_v61 = vld [vmem:[#allocation8 + $0x3f8] sm:$0xff] }
  0xc5   :  { %824 = vmatpush1.bf16.msra.mxu0 %v5973_v2  ;;  %v6066_v2 = vld [vmem:[#allocation6 + $0xa4] ss:$24 sps:$4 sm:$0xff]  }
  0xc6   :  { %825 = vmatprep.subr.bf16.mxu0 %v5981_v3  ;;  %v4613_v3 = vpack.c.bf16 %v955_v63, %v949_v62  ;;  %v6082_v62 = vld [vmem:[#allocation6 + $0x1c0] ss:$24 sps:$4 sm:$0xff]  }
  0xc9   :  { %826 = vmatpush1.bf16.msra.mxu0 %v5979_v4  ;;  %v948_v4 = vld [vmem:[#allocation8 + $0x120] sm:$0xff] }
  0xca   :  { %827 = vmatprep.subr.bf16.mxu0 %v5987_v5  ;;  %v954_v5 = vld [vmem:[#allocation8 + $0x150] sm:$0xff] }
  0xcd   :  { %828 = vmatpush1.bf16.msra.mxu0 %v5985_v6  ;;  %v961_v6 = vld [vmem:[#allocation8 + $0x188] sm:$0xff] }
  0xce   :  { %829 = vmatprep.subr.bf16.mxu0 %v5993_v7  ;;  %v967_v7 = vld [vmem:[#allocation8 + $0x1b8] sm:$0xff] }
  0xd1   :  { %830 = vmatpush1.bf16.msra.mxu0 %v5991_v8  ;;  %v6064_v8 = vld [vmem:[#allocation6 + $0xa0] ss:$24 sps:$4 sm:$0xff]  }
  0xd2   :  { %831 = vmatprep.subr.bf16.mxu0 %v5999_v9  ;;  %v4615_v9 = vpack.c.bf16 %v954_v5, %v948_v4  ;;  %v1045_v4 = vld [vmem:[#allocation8 + $0x428] sm:$0xff]  ;;  %v1051_v5 = vld [vmem:[#allocation8 + $0x458] sm:$0xff] }
  0xd5   :  { %832 = vmatpush1.bf16.msra.mxu0 %v5997_v10  ;;  %v6069_v10 = vld [vmem:[#allocation6 + $0xd4] ss:$24 sps:$4 sm:$0xff]  }
  0xd6   :  { %833 = vmatprep.subr.bf16.mxu0 %v6005_v11  ;;  %v4617_v11 = vpack.c.bf16 %v967_v7, %v961_v6  ;;  %v6085_v6 = vld [vmem:[#allocation6 + $0x1f0] ss:$24 sps:$4 sm:$0xff]  }
  0xd9   :  { %834 = vmatpush1.bf16.msra.mxu0 %v6003_v12  ;;  %v960_v12 = vld [vmem:[#allocation8 + $0x180] sm:$0xff] }
  0xda   :  { %835 = vmatprep.subr.bf16.mxu0 %v6011_v13  ;;  %v966_v13 = vld [vmem:[#allocation8 + $0x1b0] sm:$0xff] }
  0xdd   :  { %836 = vmatpush1.bf16.msra.mxu0 %v6009_v14  ;;  %v973_v14 = vld [vmem:[#allocation8 + $0x1e8] sm:$0xff] }
  0xde   :  { %837 = vmatprep.subr.bf16.mxu0 %v6017_v15  ;;  %v979_v15 = vld [vmem:[#allocation8 + $0x218] sm:$0xff] }
  0xe1   :  { %838 = vmatpush1.bf16.msra.mxu0 %v6015_v16  ;;  %v6067_v16 = vld [vmem:[#allocation6 + $0xd0] ss:$24 sps:$4 sm:$0xff]  }
  0xe2   :  { %839 = vmatprep.subr.bf16.mxu0 %v6023_v17  ;;  %v4619_v17 = vpack.c.bf16 %v966_v13, %v960_v12  ;;  %v1057_v12 = vld [vmem:[#allocation8 + $0x488] sm:$0xff]  ;;  %v1063_v13 = vld [vmem:[#allocation8 + $0x4b8] sm:$0xff] }
  0xe5   :  { %840 = vmatpush1.bf16.msra.mxu0 %v6021_v18  ;;  %v6072_v18 = vld [vmem:[#allocation6 + $0x104] ss:$24 sps:$4 sm:$0xff]  }
  0xe6   :  { %841 = vmatprep.subr.bf16.mxu0 %v6029_v19  ;;  %v4621_v19 = vpack.c.bf16 %v979_v15, %v973_v14  ;;  %v6088_v14 = vld [vmem:[#allocation6 + $0x220] ss:$24 sps:$4 sm:$0xff]  }
  0xe9   :  { %842 = vmatpush1.bf16.msra.mxu0 %v6027_v20  ;;  %v972_v20 = vld [vmem:[#allocation8 + $0x1e0] sm:$0xff] }
  0xea   :  { %843 = vmatprep.subr.bf16.mxu0 %v6035_v21  ;;  %v978_v21 = vld [vmem:[#allocation8 + $0x210] sm:$0xff] }
  0xed   :  { %844 = vmatpush1.bf16.msra.mxu0 %v6033_v22  ;;  %v985_v22 = vld [vmem:[#allocation8 + $0x248] sm:$0xff] }
  0xee   :  { %845 = vmatprep.subr.bf16.mxu0 %v6041_v23  ;;  %v991_v23 = vld [vmem:[#allocation8 + $0x278] sm:$0xff] }
  0xef   :  { %v4625_v27 = vpack.c.bf16 %v991_v23, %v985_v22  ;;  %v6091_v22 = vld [vmem:[#allocation6 + $0x250] ss:$24 sps:$4 sm:$0xff]  }
  0xf1   :  { %846 = vmatpush1.bf16.msra.mxu0 %v6039_v24  ;;  %v6070_v24 = vld [vmem:[#allocation6 + $0x100] ss:$24 sps:$4 sm:$0xff]  }
  0xf2   :  { %847 = vmatprep.subr.bf16.mxu0 %v6047_v25  ;;  %v4623_v25 = vpack.c.bf16 %v978_v21, %v972_v20  ;;  %v1069_v20 = vld [vmem:[#allocation8 + $0x4e8] sm:$0xff]  ;;  %v1075_v21 = vld [vmem:[#allocation8 + $0x518] sm:$0xff] }
  0xf5   :  { %848 = vmatpush1.bf16.msra.mxu0 %v6045_v26  ;;  %v6075_v26 = vld [vmem:[#allocation6 + $0x134] ss:$24 sps:$4 sm:$0xff]  }
  0xf6   :  { %849 = vmatprep.subr.bf16.mxu0 %v6053_v28  ;;  %v984_v28 = vld [vmem:[#allocation8 + $0x240] sm:$0xff] }
  0xf9   :  { %850 = vmatpush1.bf16.msra.mxu0 %v6051_v29  ;;  %v990_v29 = vld [vmem:[#allocation8 + $0x270] sm:$0xff] }
  0xfa   :  { %4602 = vmatprep.subr.bf16.mxu0 %v4601_v34  ;;  %v4627_v33 = vpack.c.bf16 %v990_v29, %v984_v28  ;;  %v6078_v34 = vld [vmem:[#allocation6 + $0x164] ss:$24 sps:$4 sm:$0xff]   ;;  %v1081_v28 = vld [vmem:[#allocation8 + $0x548] sm:$0xff] }
  0xfb   :  { %v1087_v29 = vld [vmem:[#allocation8 + $0x578] sm:$0xff] }
 0x18f   :  { %v163_v39 = vpop.f32.mrb[0].mxu0 }
 0x190   :  { %v165_v40 = vpop.f32.mrb[1].mxu0  ;;  %v6374_v47 = vpack.c.bf16 %v163_v39, %v163_v39  ;;  %v1002_v39 = vld [vmem:[#allocation8 + $0x2d0] sm:$0xff] }
 0x191   :  { %v169_v44 = vpack.c.bf16 %v165_v40, %v165_v40  ;;  %v1009_v40 = vld [vmem:[#allocation8 + $0x308] sm:$0xff] }
 0x193   :  { %810 = vmatprep.mubr.bf16.mxu1 %v169_v44  ;;  %851 = vmatprep.mubr.bf16.mxu0 %v169_v44 }
 0x194   :  { %811 = vmatmul.mubr.bf16.vlgmr.msra.gmra.mrb[0].mxu1 %v6374_v47  ;;  %852 = vmatmul.mubr.bf16.vlgmr.msra.gmra.mrb[4].mxu0 %v6374_v47 }
 0x195   :  { %861 = vmatpush1.bf16.msra.mxu1 %v6055_v45  ;;  %4604 = vmatpush1.bf16.msra.mxu0 %v4603_v46  ;;  %v6081_v45 = vld [vmem:[#allocation6 + $0x194] ss:$24 sps:$4 sm:$0xff]   ;;  %v4633_v46 = vpack.c.bf16 %v1015_v41, %v1009_v40  ;;  %v6097_v40 = vld [vmem:[#allocation6 + $0x2b0] ss:$24 sps:$4 sm:$0xff]  }
 0x196   :  { %892 = vmatprep.mubr.bf16.mxu1 %v169_v44  ;;  %862 = vmatprep.subr.bf16.mxu1 %v6060_v48  ;;  %v4631_v44 = vpack.c.bf16 %v1002_v39, %v996_v37  ;;  %v1008_v48 = vld [vmem:[#allocation8 + $0x300] sm:$0xff]  ;;  %v1093_v37 = vld [vmem:[#allocation8 + $0x5a8] sm:$0xff]  ;;  %v1099_v39 = vld [vmem:[#allocation8 + $0x5d8] sm:$0xff] }
 0x197   :  { %4606 = vmatprep.subr.bf16.mxu0 %v4605_v51  ;;  %1179 = vmatprep.mubr.f32.mxu0 %v6378_v54  ;;  %v1027_v51 = vld [vmem:[#allocation8 + $0x398] sm:$0xff]  ;;  %v4635_v53 = vpack.c.bf16 %v1014_v49, %v1008_v48  ;;  %v921_v49 = vld [vmem:[#allocation8 + $0x48] sm:$0xff] }
 0x198   :  { %v915_v48 = vld [vmem:[#allocation8 + $0x18] sm:$0xff] }
 0x199   :  { %863 = vmatpush1.bf16.msra.mxu1 %v6058_v55  ;;  %4608 = vmatpush1.bf16.msra.mxu0 %v4607_v56  ;;  %v6084_v55 = vld [vmem:[#allocation6 + $0x1c4] ss:$24 sps:$4 sm:$0xff]   ;;  %v4637_v56 = vpack.c.bf16 %v1027_v51, %v1021_v50  ;;  %v917_v50 = vld [vmem:[#allocation8 + $0x28] sm:$0xff] }
 0x19a   :  { %864 = vmatprep.subr.bf16.mxu1 %v6063_v57  ;;  %4610 = vmatprep.subr.bf16.mxu0 %v4609_v59  ;;  %v1020_v57 = vld [vmem:[#allocation8 + $0x360] sm:$0xff]  ;;  %v1026_v59 = vld [vmem:[#allocation8 + $0x390] sm:$0xff]  ;;  %v923_v51 = vld [vmem:[#allocation8 + $0x58] sm:$0xff] }
 0x19b   :  { %v4639_v63 = vpack.c.bf16 %v1026_v59, %v1020_v57  ;;  %v920_v57 = vld [vmem:[#allocation8 + $0x40] sm:$0xff]  ;;  %v6386_v59 = vpack.c.bf16 %v921_v49, %v915_v48  ;;  %v970_v48 = vld [vmem:[#allocation8 + $0x1d0] sm:$0xff]  ;;  %v975_v49 = vld [vmem:[#allocation8 + $0x1f8] sm:$0xff] }
 0x19d   :  { %865 = vmatpush1.bf16.msra.mxu1 %v6061_v0  ;;  %4612 = vmatpush1.bf16.msra.mxu0 %v4611_v1  ;;  %v6087_v0 = vld [vmem:[#allocation6 + $0x1f4] ss:$24 sps:$4 sm:$0xff]   ;;  %v4641_v1 = vpack.c.bf16 %v1039_v61, %v1033_v60  ;;  %v4729_v60 = vpack.c.bf16 %v923_v51, %v917_v50  ;;  %v916_v61 = vld [vmem:[#allocation8 + $0x20] sm:$0xff] }
 0x19e   :  { %866 = vmatprep.subr.bf16.mxu1 %v6066_v2  ;;  %4614 = vmatprep.subr.bf16.mxu0 %v4613_v3  ;;  %v1032_v2 = vld [vmem:[#allocation8 + $0x3c0] sm:$0xff]  ;;  %v1038_v3 = vld [vmem:[#allocation8 + $0x3f0] sm:$0xff]  ;;  %v981_v50 = vld [vmem:[#allocation8 + $0x228] sm:$0xff] }
 0x19f   :  { %v4643_v7 = vpack.c.bf16 %v1038_v3, %v1032_v2  ;;  %v935_v2 = vld [vmem:[#allocation8 + $0xb8] sm:$0xff]  ;;  %v977_v51 = vld [vmem:[#allocation8 + $0x208] sm:$0xff] }
 0x1a1   :  { %867 = vmatpush1.bf16.msra.mxu1 %v6064_v8  ;;  %4616 = vmatpush1.bf16.msra.mxu0 %v4615_v9  ;;  %v6090_v8 = vld [vmem:[#allocation6 + $0x224] ss:$24 sps:$4 sm:$0xff]   ;;  %v4645_v9 = vpack.c.bf16 %v1051_v5, %v1045_v4 }
 0x1a2   :  { %868 = vmatprep.subr.bf16.mxu1 %v6069_v10  ;;  %4618 = vmatprep.subr.bf16.mxu0 %v4617_v11  ;;  %v1044_v10 = vld [vmem:[#allocation8 + $0x420] sm:$0xff]  ;;  %v1050_v11 = vld [vmem:[#allocation8 + $0x450] sm:$0xff] }
 0x1a3   :  { %v4647_v15 = vpack.c.bf16 %v1050_v11, %v1044_v10  ;;  %v928_v10 = vld [vmem:[#allocation8 + $0x80] sm:$0xff]  ;;  %v934_v11 = vld [vmem:[#allocation8 + $0xb0] sm:$0xff] }
 0x1a5   :  { %869 = vmatpush1.bf16.msra.mxu1 %v6067_v16  ;;  %4620 = vmatpush1.bf16.msra.mxu0 %v4619_v17  ;;  %v6093_v16 = vld [vmem:[#allocation6 + $0x254] ss:$24 sps:$4 sm:$0xff]   ;;  %v4649_v17 = vpack.c.bf16 %v1063_v13, %v1057_v12  ;;  %v939_v12 = vld [vmem:[#allocation8 + $0xd8] sm:$0xff] }
 0x1a6   :  { %870 = vmatprep.subr.bf16.mxu1 %v6072_v18  ;;  %4622 = vmatprep.subr.bf16.mxu0 %v4621_v19  ;;  %v1056_v18 = vld [vmem:[#allocation8 + $0x480] sm:$0xff]  ;;  %v1062_v19 = vld [vmem:[#allocation8 + $0x4b0] sm:$0xff]  ;;  %v945_v13 = vld [vmem:[#allocation8 + $0x108] sm:$0xff] }
 0x1a7   :  { %v4651_v23 = vpack.c.bf16 %v1062_v19, %v1056_v18  ;;  %v944_v18 = vld [vmem:[#allocation8 + $0x100] sm:$0xff]  ;;  %v6403_v19 = vpack.c.bf16 %v945_v13, %v939_v12 }
 0x1a9   :  { %871 = vmatpush1.bf16.msra.mxu1 %v6070_v24  ;;  %4624 = vmatpush1.bf16.msra.mxu0 %v4623_v25  ;;  %v6096_v24 = vld [vmem:[#allocation6 + $0x284] ss:$24 sps:$4 sm:$0xff]   ;;  %v4653_v25 = vpack.c.bf16 %v1075_v21, %v1069_v20 }
 0x1aa   :  { %872 = vmatprep.subr.bf16.mxu1 %v6075_v26  ;;  %4626 = vmatprep.subr.bf16.mxu0 %v4625_v27  ;;  %v1068_v26 = vld [vmem:[#allocation8 + $0x4e0] sm:$0xff]  ;;  %v1074_v27 = vld [vmem:[#allocation8 + $0x510] sm:$0xff] }
 0x1ab   :  { %v4655_v31 = vpack.c.bf16 %v1074_v27, %v1068_v26  ;;  %v940_v21 = vld [vmem:[#allocation8 + $0xe0] sm:$0xff] }
 0x1ad   :  { %873 = vmatpush1.bf16.msra.mxu1 %v6073_v32  ;;  %4628 = vmatpush1.bf16.msra.mxu0 %v4627_v33  ;;  %v6099_v32 = vld [vmem:[#allocation6 + $0x2b4] ss:$24 sps:$4 sm:$0xff]   ;;  %v4657_v33 = vpack.c.bf16 %v1087_v29, %v1081_v28  ;;  %v956_v29 = vld [vmem:[#allocation8 + $0x160] sm:$0xff] }
 0x1ae   :  { %874 = vmatprep.subr.bf16.mxu1 %v6078_v34  ;;  %4630 = vmatprep.subr.bf16.mxu0 %v4629_v36  ;;  %v1080_v34 = vld [vmem:[#allocation8 + $0x540] sm:$0xff]  ;;  %v1086_v36 = vld [vmem:[#allocation8 + $0x570] sm:$0xff] }
 0x1af   :  { %v4659_v41 = vpack.c.bf16 %v1086_v36, %v1080_v34  ;;  %v950_v28 = vld [vmem:[#allocation8 + $0x130] sm:$0xff]  ;;  %v963_v34 = vld [vmem:[#allocation8 + $0x198] sm:$0xff]  ;;  %v969_v36 = vld [vmem:[#allocation8 + $0x1c8] sm:$0xff] }
 0x1b1   :  { %875 = vmatpush1.bf16.msra.mxu1 %v6076_v42  ;;  %4632 = vmatpush1.bf16.msra.mxu0 %v4631_v44  ;;  %v6102_v42 = vld [vmem:[#allocation6 + $0x2e4] ss:$24 sps:$4 sm:$0xff]   ;;  %v4661_v44 = vpack.c.bf16 %v1099_v39, %v1093_v37  ;;  %v965_v37 = vld [vmem:[#allocation8 + $0x1a8] sm:$0xff]  ;;  %v6414_v39 = vpack.c.bf16 %v956_v29, %v950_v28  ;;  %v1006_v28 = vld [vmem:[#allocation8 + $0x2f0] sm:$0xff] }
 0x1b2   :  { %876 = vmatprep.subr.bf16.mxu1 %v6081_v45  ;;  %4634 = vmatprep.subr.bf16.mxu0 %v4633_v46  ;;  %v1092_v45 = vld [vmem:[#allocation8 + $0x5a0] sm:$0xff]  ;;  %v1098_v46 = vld [vmem:[#allocation8 + $0x5d0] sm:$0xff]  ;;  %v1011_v29 = vld [vmem:[#allocation8 + $0x318] sm:$0xff] }
 0x1b5   :  { %877 = vmatpush1.bf16.msra.mxu1 %v6079_v52  ;;  %4636 = vmatpush1.bf16.msra.mxu0 %v4635_v53  ;;  %v6384_v52 = vsub.s32 0, %v6364_v35  ;;  %v6100_v53 = vld [vmem:[#allocation6 + $0x2e0] ss:$24 sps:$4 sm:$0xff]  }
 0x1b6   :  { %878 = vmatprep.subr.bf16.mxu1 %v6084_v55  ;;  %4638 = vmatprep.subr.bf16.mxu0 %v4637_v56  ;;  %v4663_v55 = vpack.c.bf16 %v1098_v46, %v1092_v45  ;;  %v914_v56 = vld [vmem:[#allocation8 + $0x10] sm:$0xff]  ;;  %v964_v46 = vld [vmem:[#allocation8 + $0x1a0] sm:$0xff] }
 0x1b7   :  { %v6390_v3 = vrot.slane %v6372_v43, %v6384_v52  ;;  %v6392_v4 = vpack.c.bf16 %v920_v57, %v914_v56  ;;  %v947_v43 = vld [vmem:[#allocation8 + $0x118] sm:$0xff]  ;;  %v4747_v56 = vpack.c.bf16 %v970_v48, %v964_v46  ;;  %v974_v57 = vld [vmem:[#allocation8 + $0x1f0] sm:$0xff]  ;;  %v1029_v48 = vld [vmem:[#allocation8 + $0x3a8] sm:$0xff] }
 0x1b8   :  { %v1023_v46 = vld [vmem:[#allocation8 + $0x378] sm:$0xff] }
 0x1b9   :  { %879 = vmatpush1.bf16.msra.mxu1 %v6082_v62  ;;  %4640 = vmatpush1.bf16.msra.mxu0 %v4639_v63  ;;  %v922_v62 = vld [vmem:[#allocation8 + $0x50] sm:$0xff]  ;;  %v927_v63 = vld [vmem:[#allocation8 + $0x78] sm:$0xff] }
 0x1ba   :  { %880 = vmatprep.subr.bf16.mxu1 %v6087_v0  ;;  %4642 = vmatprep.subr.bf16.mxu0 %v4641_v1  ;;  %v933_v0 = vld [vmem:[#allocation8 + $0xa8] sm:$0xff]  ;;  %v4731_v5 = vpack.c.bf16 %v922_v62, %v916_v61  ;;  %v6423_v61 = vpack.c.bf16 %v981_v50, %v975_v49  ;;  %v1031_v50 = vld [vmem:[#allocation8 + $0x3b8] sm:$0xff] }
 0x1bb   :  { %v929_v1 = vld [vmem:[#allocation8 + $0x88] sm:$0xff] }
 0x1bc   :  { %v1025_v49 = vld [vmem:[#allocation8 + $0x388] sm:$0xff] }
 0x1bd   :  { %881 = vmatpush1.bf16.msra.mxu1 %v6085_v6  ;;  %4644 = vmatpush1.bf16.msra.mxu0 %v4643_v7  ;;  %v926_v6 = vld [vmem:[#allocation8 + $0x70] sm:$0xff]  ;;  %v932_v7 = vld [vmem:[#allocation8 + $0xa0] sm:$0xff] }
 0x1be   :  { %882 = vmatprep.subr.bf16.mxu1 %v6090_v8  ;;  %4646 = vmatprep.subr.bf16.mxu0 %v4645_v9  ;;  %v6395_v8 = vpack.c.bf16 %v933_v0, %v927_v63  ;;  %v4733_v9 = vpack.c.bf16 %v935_v2, %v929_v1  ;;  %v976_v63 = vld [vmem:[#allocation8 + $0x200] sm:$0xff]  ;;  %v982_v0 = vld [vmem:[#allocation8 + $0x230] sm:$0xff]  ;;  %v987_v1 = vld [vmem:[#allocation8 + $0x258] sm:$0xff] }
 0x1bf   :  { %v993_v2 = vld [vmem:[#allocation8 + $0x288] sm:$0xff] }
 0x1c0   :  { %v6429_v12 = vpack.c.bf16 %v993_v2, %v987_v1  ;;  %v1035_v1 = vld [vmem:[#allocation8 + $0x3d8] sm:$0xff]  ;;  %v1041_v2 = vld [vmem:[#allocation8 + $0x408] sm:$0xff] }
 0x1c1   :  { %883 = vmatpush1.bf16.msra.mxu1 %v6088_v14  ;;  %4648 = vmatpush1.bf16.msra.mxu0 %v4647_v15  ;;  %v941_v14 = vld [vmem:[#allocation8 + $0xe8] sm:$0xff]  ;;  %v6400_v15 = vpack.c.bf16 %v932_v7, %v926_v6  ;;  %v995_v6 = vld [vmem:[#allocation8 + $0x298] sm:$0xff] }
 0x1c2   :  { %884 = vmatprep.subr.bf16.mxu1 %v6093_v16  ;;  %4650 = vmatprep.subr.bf16.mxu0 %v4649_v17  ;;  %v4735_v16 = vpack.c.bf16 %v934_v11, %v928_v10  ;;  %v938_v17 = vld [vmem:[#allocation8 + $0xd0] sm:$0xff]  ;;  %v4737_v20 = vpack.c.bf16 %v947_v43, %v941_v14  ;;  %v992_v11 = vld [vmem:[#allocation8 + $0x280] sm:$0xff] }
 0x1c3   :  { %v6408_v26 = vpack.c.bf16 %v944_v18, %v938_v17  ;;  %v986_v10 = vld [vmem:[#allocation8 + $0x250] sm:$0xff]  ;;  %v988_v14 = vld [vmem:[#allocation8 + $0x260] sm:$0xff]  ;;  %v1005_v17 = vld [vmem:[#allocation8 + $0x2e8] sm:$0xff] }
 0x1c4   :  { %v994_v43 = vld [vmem:[#allocation8 + $0x290] sm:$0xff]  ;;  %v1001_v18 = vld [vmem:[#allocation8 + $0x2c8] sm:$0xff] }
 0x1c5   :  { %885 = vmatpush1.bf16.msra.mxu1 %v6091_v22  ;;  %4652 = vmatpush1.bf16.msra.mxu0 %v4651_v23  ;;  %v946_v22 = vld [vmem:[#allocation8 + $0x110] sm:$0xff]  ;;  %v951_v23 = vld [vmem:[#allocation8 + $0x138] sm:$0xff] }
 0x1c6   :  { %886 = vmatprep.subr.bf16.mxu1 %v6096_v24  ;;  %4654 = vmatprep.subr.bf16.mxu0 %v4653_v25  ;;  %v953_v24 = vld [vmem:[#allocation8 + $0x148] sm:$0xff]  ;;  %v959_v25 = vld [vmem:[#allocation8 + $0x178] sm:$0xff]  ;;  %v4739_v27 = vpack.c.bf16 %v946_v22, %v940_v21  ;;  %v6432_v21 = vpack.c.bf16 %v992_v11, %v986_v10  ;;  %v4755_v22 = vpack.c.bf16 %v994_v43, %v988_v14  ;;  %v1034_v11 = vld [vmem:[#allocation8 + $0x3d0] sm:$0xff] }
 0x1c7   :  { %v6453_v14 = vpack.c.bf16 %v1041_v2, %v1035_v1 }
 0x1c9   :  { %887 = vmatpush1.bf16.msra.mxu1 %v6094_v30  ;;  %4656 = vmatpush1.bf16.msra.mxu0 %v4655_v31  ;;  %v4741_v31 = vpack.c.bf16 %v959_v25, %v953_v24 }
 0x1ca   :  { %888 = vmatprep.subr.bf16.mxu1 %v6099_v32  ;;  %4658 = vmatprep.subr.bf16.mxu0 %v4657_v33  ;;  %v952_v32 = vld [vmem:[#allocation8 + $0x140] sm:$0xff]  ;;  %v958_v33 = vld [vmem:[#allocation8 + $0x170] sm:$0xff] }
 0x1cd   :  { %889 = vmatpush1.bf16.msra.mxu1 %v6097_v40  ;;  %4660 = vmatpush1.bf16.msra.mxu0 %v4659_v41  ;;  %v4743_v40 = vpack.c.bf16 %v958_v33, %v952_v32  ;;  %v962_v41 = vld [vmem:[#allocation8 + $0x190] sm:$0xff]  ;;  %v1013_v32 = vld [vmem:[#allocation8 + $0x328] sm:$0xff]  ;;  %v1019_v33 = vld [vmem:[#allocation8 + $0x358] sm:$0xff] }
 0x1ce   :  { %890 = vmatprep.subr.bf16.mxu1 %v6102_v42  ;;  %4662 = vmatprep.subr.bf16.mxu0 %v4661_v44  ;;  %v968_v42 = vld [vmem:[#allocation8 + $0x1c0] sm:$0xff]  ;;  %v6417_v44 = vpack.c.bf16 %v969_v36, %v963_v34 }
 0x1d1   :  { %891 = vmatpush1.bf16.msra.mxu1 %v6100_v53  ;;  %4664 = vmatpush1.bf16.msra.mxu0 %v4663_v55  ;;  %v983_v53 = vld [vmem:[#allocation8 + $0x238] sm:$0xff]  ;;  %v6420_v55 = vpack.c.bf16 %v968_v42, %v962_v41  ;;  %v4761_v41 = vpack.c.bf16 %v1019_v33, %v1013_v32  ;;  %v1012_v42 = vld [vmem:[#allocation8 + $0x320] sm:$0xff]  ;;  %v1054_v33 = vld [vmem:[#allocation8 + $0x470] sm:$0xff] }
 0x1d2   :  { %4666 = vmatprep.subr.bf16.mxu1 %v6386_v59  ;;  %4730 = vmatprep.subr.bf16.mxu0 %v4729_v60  ;;  %v980_v60 = vld [vmem:[#allocation8 + $0x220] sm:$0xff]  ;;  %v4749_v62 = vpack.c.bf16 %v983_v53, %v977_v51 }
 0x1d3   :  { %v6426_v7 = vpack.c.bf16 %v980_v60, %v974_v57  ;;  %v1028_v57 = vld [vmem:[#allocation8 + $0x3a0] sm:$0xff]  ;;  %v6447_v60 = vpack.c.bf16 %v1029_v48, %v1023_v46  ;;  %v1058_v46 = vld [vmem:[#allocation8 + $0x490] sm:$0xff] }
 0x1d4   :  { %893 = vmatmul.mubr.bf16.vlgmr.msra.gmra.mrb[4].mxu1 %v6374_v47  ;;  %1180 = vmatmul.mubr.f32.vlgmr.msra.gmra.mrb[2].mxu0 %v6390_v3  ;;  %v957_v47 = vld [vmem:[#allocation8 + $0x168] sm:$0xff]  ;;  %v1048_v32 = vld [vmem:[#allocation8 + $0x440] sm:$0xff] }
 0x1d5   :  { %4668 = vmatpush1.bf16.msra.mxu1 %v6392_v4  ;;  %4732 = vmatpush1.bf16.msra.mxu0 %v4731_v5  ;;  %v6411_v30 = vpack.c.bf16 %v957_v47, %v951_v23  ;;  %v989_v5 = vld [vmem:[#allocation8 + $0x268] sm:$0xff]  ;;  %v998_v23 = vld [vmem:[#allocation8 + $0x2b0] sm:$0xff]  ;;  %v1004_v47 = vld [vmem:[#allocation8 + $0x2e0] sm:$0xff] }
 0x1d6   :  { %4670 = vmatprep.subr.bf16.mxu1 %v6395_v8  ;;  %4734 = vmatprep.subr.bf16.mxu0 %v4733_v9  ;;  %v4751_v9 = vpack.c.bf16 %v982_v0, %v976_v63  ;;  %v4753_v13 = vpack.c.bf16 %v995_v6, %v989_v5  ;;  %v6438_v34 = vpack.c.bf16 %v1004_v47, %v998_v23  ;;  %v1024_v63 = vld [vmem:[#allocation8 + $0x380] sm:$0xff]  ;;  %v1030_v0 = vld [vmem:[#allocation8 + $0x3b0] sm:$0xff]  ;;  %v1037_v5 = vld [vmem:[#allocation8 + $0x3e8] sm:$0xff] }
 0x1d7   :  { %1250 = vmatprep.mubr.f32.mxu1 %v6378_v54  ;;  %1321 = vmatprep.mubr.f32.mxu0 %v6378_v54  ;;  %v971_v54 = vld [vmem:[#allocation8 + $0x1d8] sm:$0xff]  ;;  %v4767_v10 = vpack.c.bf16 %v1030_v0, %v1024_v63  ;;  %v1064_v48 = vld [vmem:[#allocation8 + $0x4c0] sm:$0xff]  ;;  %v1073_v63 = vld [vmem:[#allocation8 + $0x508] sm:$0xff] }
 0x1d8   :  { %v4745_v45 = vpack.c.bf16 %v971_v54, %v965_v37  ;;  %v1010_v37 = vld [vmem:[#allocation8 + $0x310] sm:$0xff]  ;;  %v1016_v54 = vld [vmem:[#allocation8 + $0x340] sm:$0xff]  ;;  %v1043_v6 = vld [vmem:[#allocation8 + $0x418] sm:$0xff]  ;;  %v6476_v1 = vpack.c.bf16 %v1064_v48, %v1058_v46 }
 0x1d9   :  { %4672 = vmatpush1.bf16.msra.mxu1 %v6400_v15  ;;  %4736 = vmatpush1.bf16.msra.mxu0 %v4735_v16  ;;  %v999_v16 = vld [vmem:[#allocation8 + $0x2b8] sm:$0xff]  ;;  %v6444_v51 = vpack.c.bf16 %v1016_v54, %v1010_v37  ;;  %v4769_v43 = vpack.c.bf16 %v1043_v6, %v1037_v5  ;;  %v1065_v37 = vld [vmem:[#allocation8 + $0x4c8] sm:$0xff]  ;;  %v1070_v5 = vld [vmem:[#allocation8 + $0x4f0] sm:$0xff] }
 0x1da   :  { %4674 = vmatprep.subr.bf16.mxu1 %v6403_v19  ;;  %4738 = vmatprep.subr.bf16.mxu0 %v4737_v20  ;;  %v1007_v20 = vld [vmem:[#allocation8 + $0x2f8] sm:$0xff]  ;;  %v6435_v24 = vpack.c.bf16 %v1005_v17, %v999_v16  ;;  %v1036_v16 = vld [vmem:[#allocation8 + $0x3e0] sm:$0xff]  ;;  %v1042_v17 = vld [vmem:[#allocation8 + $0x410] sm:$0xff] }
 0x1db   :  { %v4757_v25 = vpack.c.bf16 %v1007_v20, %v1001_v18  ;;  %v1047_v18 = vld [vmem:[#allocation8 + $0x438] sm:$0xff]  ;;  %v1053_v20 = vld [vmem:[#allocation8 + $0x468] sm:$0xff]  ;;  %v1076_v6 = vld [vmem:[#allocation8 + $0x520] sm:$0xff] }
 0x1dc   :  { %v1055_v23 = vld [vmem:[#allocation8 + $0x478] sm:$0xff]  ;;  %v1061_v54 = vld [vmem:[#allocation8 + $0x4a8] sm:$0xff] }
 0x1dd   :  { %4676 = vmatpush1.bf16.msra.mxu1 %v6408_v26  ;;  %4740 = vmatpush1.bf16.msra.mxu0 %v4739_v27  ;;  %v1000_v27 = vld [vmem:[#allocation8 + $0x2c0] sm:$0xff]  ;;  %v1079_v0 = vld [vmem:[#allocation8 + $0x538] sm:$0xff] }
 0x1de   :  { %4678 = vmatprep.subr.bf16.mxu1 %v6411_v30  ;;  %4742 = vmatprep.subr.bf16.mxu0 %v4741_v31  ;;  %v1017_v31 = vld [vmem:[#allocation8 + $0x348] sm:$0xff]  ;;  %v4759_v36 = vpack.c.bf16 %v1006_v28, %v1000_v27  ;;  %v1046_v27 = vld [vmem:[#allocation8 + $0x430] sm:$0xff]  ;;  %v1052_v28 = vld [vmem:[#allocation8 + $0x460] sm:$0xff] }
 0x1df   :  { %v1103_v46 = vld [vmem:[#allocation8 + $0x5f8] sm:$0xff] }
 0x1e1   :  { %4680 = vmatpush1.bf16.msra.mxu1 %v6414_v39  ;;  %4744 = vmatpush1.bf16.msra.mxu0 %v4743_v40  ;;  %v6441_v40 = vpack.c.bf16 %v1017_v31, %v1011_v29  ;;  %v6459_v29 = vpack.c.bf16 %v1053_v20, %v1047_v18  ;;  %v1085_v18 = vld [vmem:[#allocation8 + $0x568] sm:$0xff]  ;;  %v1091_v20 = vld [vmem:[#allocation8 + $0x598] sm:$0xff] }
 0x1e2   :  { %4682 = vmatprep.subr.bf16.mxu1 %v6417_v44  ;;  %4746 = vmatprep.subr.bf16.mxu0 %v4745_v45  ;;  %v1018_v45 = vld [vmem:[#allocation8 + $0x350] sm:$0xff] }
 0x1e3   :  { %v4763_v53 = vpack.c.bf16 %v1018_v45, %v1012_v42  ;;  %v6464_v42 = vpack.c.bf16 %v1052_v28, %v1046_v27  ;;  %v6466_v45 = vpack.c.bf16 %v1054_v33, %v1048_v32  ;;  %v1088_v27 = vld [vmem:[#allocation8 + $0x580] sm:$0xff]  ;;  %v6496_v32 = vpack.c.bf16 %v1091_v20, %v1085_v18  ;;  %v6585_v18 = vld [vmem:[%s7738_s5] sm:$0x3f] }
 0x1e4   :  { %v1084_v33 = vld [vmem:[#allocation8 + $0x560] sm:$0xff]  ;;  %v282_v20 = vsub.s32 3, %v6364_v35 }
 0x1e5   :  { %4684 = vmatpush1.bf16.msra.mxu1 %v6420_v55  ;;  %4748 = vmatpush1.bf16.msra.mxu0 %v4747_v56  ;;  %v1022_v56 = vld [vmem:[#allocation8 + $0x370] sm:$0xff] }
 0x1e6   :  { %4686 = vmatprep.subr.bf16.mxu1 %v6423_v61  ;;  %4750 = vmatprep.subr.bf16.mxu0 %v4749_v62  ;;  %v4765_v62 = vpack.c.bf16 %v1031_v50, %v1025_v49 }
 0x1e9   :  { %4688 = vmatpush1.bf16.msra.mxu1 %v6426_v7  ;;  %4752 = vmatpush1.bf16.msra.mxu0 %v4751_v9  ;;  %v6450_v9 = vpack.c.bf16 %v1028_v57, %v1022_v56  ;;  %v1066_v56 = vld [vmem:[#allocation8 + $0x4d0] sm:$0xff]  ;;  %v1071_v57 = vld [vmem:[#allocation8 + $0x4f8] sm:$0xff] }
 0x1ea   :  { %4690 = vmatprep.subr.bf16.mxu1 %v6429_v12  ;;  %4754 = vmatprep.subr.bf16.mxu0 %v4753_v13  ;;  %v1040_v13 = vld [vmem:[#allocation8 + $0x400] sm:$0xff] }
 0x1eb   :  { %v6456_v47 = vpack.c.bf16 %v1040_v13, %v1034_v11  ;;  %v6484_v11 = vpack.c.bf16 %v1079_v0, %v1073_v63  ;;  %v1072_v13 = vld [vmem:[#allocation8 + $0x500] sm:$0xff] }
 0x1ec   :  { %v1100_v63 = vld [vmem:[#allocation8 + $0x5e0] sm:$0xff] }
 0x1ed   :  { %4692 = vmatpush1.bf16.msra.mxu1 %v6432_v21  ;;  %4756 = vmatpush1.bf16.msra.mxu0 %v4755_v22  ;;  %v1049_v22 = vld [vmem:[#allocation8 + $0x448] sm:$0xff]  ;;  %v1096_v0 = vld [vmem:[#allocation8 + $0x5c0] sm:$0xff] }
 0x1ee   :  { %4694 = vmatprep.subr.bf16.mxu1 %v6435_v24  ;;  %4758 = vmatprep.subr.bf16.mxu0 %v4757_v25  ;;  %v4771_v25 = vpack.c.bf16 %v1042_v17, %v1036_v16  ;;  %v6461_v31 = vpack.c.bf16 %v1055_v23, %v1049_v22  ;;  %v1083_v16 = vld [vmem:[#allocation8 + $0x558] sm:$0xff]  ;;  %v1089_v17 = vld [vmem:[#allocation8 + $0x588] sm:$0xff]  ;;  %v6488_v22 = vpack.c.bf16 %v1076_v6, %v1070_v5  ;;  %v1102_v5 = vld [vmem:[#allocation8 + $0x5f0] sm:$0xff] }
 0x1ef   :  { %v6494_v28 = vpack.c.bf16 %v1089_v17, %v1083_v16  ;;  %v278_v17 = vsub.s32 2, %v6364_v35 }
 0x1f1   :  { %4696 = vmatpush1.bf16.msra.mxu1 %v6438_v34  ;;  %4760 = vmatpush1.bf16.msra.mxu0 %v4759_v36  ;;  %v1059_v36 = vld [vmem:[#allocation8 + $0x498] sm:$0xff] }
 0x1f2   :  { %4698 = vmatprep.subr.bf16.mxu1 %v6441_v40  ;;  %4762 = vmatprep.subr.bf16.mxu0 %v4761_v41  ;;  %v1067_v41 = vld [vmem:[#allocation8 + $0x4d8] sm:$0xff]  ;;  %v6470_v49 = vpack.c.bf16 %v1065_v37, %v1059_v36  ;;  %v1090_v36 = vld [vmem:[#allocation8 + $0x590] sm:$0xff] }
 0x1f3   :  { %v6472_v50 = vpack.c.bf16 %v1067_v41, %v1061_v54  ;;  %v1095_v37 = vld [vmem:[#allocation8 + $0x5b8] sm:$0xff]  ;;  %v1101_v54 = vld [vmem:[#allocation8 + $0x5e8] sm:$0xff] }
 0x1f4   :  { %v1097_v41 = vld [vmem:[#allocation8 + $0x5c8] sm:$0xff] }
 0x1f5   :  { %4700 = vmatpush1.bf16.msra.mxu1 %v6444_v51  ;;  %4764 = vmatpush1.bf16.msra.mxu0 %v4763_v53  ;;  %v1060_v53 = vld [vmem:[#allocation8 + $0x4a0] sm:$0xff] }
 0x1f6   :  { %4702 = vmatprep.subr.bf16.mxu1 %v6447_v60  ;;  %4766 = vmatprep.subr.bf16.mxu0 %v4765_v62  ;;  %v1077_v62 = vld [vmem:[#allocation8 + $0x528] sm:$0xff]  ;;  %v6478_v2 = vpack.c.bf16 %v1066_v56, %v1060_v53  ;;  %v6502_v53 = vpack.c.bf16 %v1090_v36, %v1084_v33  ;;  %v1094_v56 = vld [vmem:[#allocation8 + $0x5b0] sm:$0xff]  ;;  %v275_v33 = vrot.slane %v6585_v18, %v6367_v38 }
 0x1f7   :  { %v6512_v6 = vpack.c.bf16 %v1100_v63, %v1094_v56  ;;  %v283_v36 = vrot.slane %v6585_v18, %v282_v20 }
 0x1f9   :  { %4704 = vmatpush1.bf16.msra.mxu1 %v6450_v9  ;;  %4768 = vmatpush1.bf16.msra.mxu0 %v4767_v10  ;;  %v6482_v10 = vpack.c.bf16 %v1077_v62, %v1071_v57  ;;  %v6506_v57 = vpack.c.bf16 %v1101_v54, %v1095_v37  ;;  %v6508_v62 = vpack.c.bf16 %v1103_v46, %v1097_v41  ;;  %v1491_v54 = vld [vmem:[#allocation8 + $0x1e0] sm:$0xff]  ;;  %v1497_v41 = vld [vmem:[#allocation8 + $0x210] sm:$0xff] }
 0x1fa   :  { %4706 = vmatprep.subr.bf16.mxu1 %v6453_v14  ;;  %4770 = vmatprep.subr.bf16.mxu0 %v4769_v43  ;;  %v1078_v43 = vld [vmem:[#allocation8 + $0x530] sm:$0xff]  ;;  %v6596_v46 = vpack.c.bf16 %v1497_v41, %v1491_v54  ;;  %v1552_v54 = vld [vmem:[#allocation8 + $0x3c8] sm:$0xff]  ;;  %v1558_v41 = vld [vmem:[#allocation8 + $0x3f8] sm:$0xff] }
 0x1fb   :  { %v6490_v23 = vpack.c.bf16 %v1078_v43, %v1072_v13  ;;  %v6514_v13 = vpack.c.bf16 %v1102_v5, %v1096_v0  ;;  %v1485_v43 = vld [vmem:[#allocation8 + $0x1b0] sm:$0xff] }
 0x1fd   :  { %4708 = vmatpush1.bf16.msra.mxu1 %v6456_v47  ;;  %4772 = vmatpush1.bf16.msra.mxu0 %v4771_v25  ;;  %v1082_v25 = vld [vmem:[#allocation8 + $0x550] sm:$0xff] }
 0x1fe   :  { %4710 = vmatprep.subr.bf16.mxu1 %v6459_v29  ;;  %4774 = vmatprep.subr.bf16.mxu0 %v6461_v31  ;;  %v6500_v48 = vpack.c.bf16 %v1088_v27, %v1082_v25  ;;  %v279_v25 = vrot.slane %v6585_v18, %v278_v17  ;;  %v1492_v27 = vld [vmem:[#allocation8 + $0x1e8] sm:$0xff]  ;;  %v1533_v17 = vld [vmem:[#allocation8 + $0x330] sm:$0xff] }
 0x201   :  { %4712 = vmatpush1.bf16.msra.mxu1 %v6464_v42  ;;  %4776 = vmatpush1.bf16.msra.mxu0 %v6466_v45 }
 0x202   :  { %4714 = vmatprep.subr.bf16.mxu1 %v6470_v49  ;;  %4778 = vmatprep.subr.bf16.mxu0 %v6472_v50 }
 0x205   :  { %4716 = vmatpush1.bf16.msra.mxu1 %v6476_v1  ;;  %4780 = vmatpush1.bf16.msra.mxu0 %v6478_v2 }
 0x206   :  { %4718 = vmatprep.subr.bf16.mxu1 %v6482_v10  ;;  %4782 = vmatprep.subr.bf16.mxu0 %v6484_v11 }
 0x209   :  { %4720 = vmatpush1.bf16.msra.mxu1 %v6488_v22  ;;  %4784 = vmatpush1.bf16.msra.mxu0 %v6490_v23 }
 0x20a   :  { %4722 = vmatprep.subr.bf16.mxu1 %v6494_v28  ;;  %4786 = vmatprep.subr.bf16.mxu0 %v6496_v32 }
 0x20d   :  { %4724 = vmatpush1.bf16.msra.mxu1 %v6500_v48  ;;  %4788 = vmatpush1.bf16.msra.mxu0 %v6502_v53 }
 0x20e   :  { %4726 = vmatprep.subr.bf16.mxu1 %v6506_v57  ;;  %4790 = vmatprep.subr.bf16.mxu0 %v6508_v62 }
 0x211   :  { %4728 = vmatpush1.bf16.msra.mxu1 %v6512_v6  ;;  %4792 = vmatpush1.bf16.msra.mxu0 %v6514_v13 }
 0x212   :  { %4858 = vmatprep.subr.bf16.mxu0 %v6386_v59  ;;  %v1432_v59 = vld [vmem:[#allocation8 + $0x8] sm:$0xff] }
 0x214   :  { %1251 = vmatmul.mubr.f32.vlgmr.msra.gmra.mrb[8].mxu1 %v6390_v3  ;;  %1322 = vmatmul.mubr.f32.vlgmr.msra.gmra.mrb[8].mxu0 %v6390_v3  ;;  %v1438_v3 = vld [vmem:[#allocation8 + $0x38] sm:$0xff] }
 0x215   :  { %4860 = vmatpush1.bf16.msra.mxu0 %v6392_v4  ;;  %v1431_v4 = vld [vmem:[#allocation8] sm:$0xff] }
 0x216   :  { %4862 = vmatprep.subr.bf16.mxu0 %v6395_v8  ;;  %v4793_v8 = vpack.c.bf16 %v1438_v3, %v1432_v59  ;;  %v1510_v59 = vld [vmem:[#allocation8 + $0x278] sm:$0xff] }
 0x218   :  { %4794 = vmatprep.subr.bf16.mxu1 %v4793_v8 }
 0x219   :  { %4864 = vmatpush1.bf16.msra.mxu0 %v6400_v15  ;;  %v1437_v15 = vld [vmem:[#allocation8 + $0x30] sm:$0xff] }
 0x21a   :  { %4866 = vmatprep.subr.bf16.mxu0 %v6403_v19  ;;  %v1444_v19 = vld [vmem:[#allocation8 + $0x68] sm:$0xff] }
 0x21d   :  { %4868 = vmatpush1.bf16.msra.mxu0 %v6408_v26  ;;  %v1450_v26 = vld [vmem:[#allocation8 + $0x98] sm:$0xff] }
 0x21e   :  { %4870 = vmatprep.subr.bf16.mxu0 %v6411_v30  ;;  %v6549_v30 = vpack.c.bf16 %v1437_v15, %v1431_v4 }
 0x220   :  { %4796 = vmatpush1.bf16.msra.mxu1 %v6549_v30 }
 0x221   :  { %4872 = vmatpush1.bf16.msra.mxu0 %v6414_v39  ;;  %v6551_v39 = vpack.c.bf16 %v1450_v26, %v1444_v19  ;;  %v1503_v26 = vld [vmem:[#allocation8 + $0x240] sm:$0xff] }
 0x222   :  { %4874 = vmatprep.subr.bf16.mxu0 %v6417_v44  ;;  %v1443_v44 = vld [vmem:[#allocation8 + $0x60] sm:$0xff] }
 0x223   :  { %4798 = vmatprep.subr.bf16.mxu1 %v6551_v39 }
 0x225   :  { %4876 = vmatpush1.bf16.msra.mxu0 %v6420_v55  ;;  %v1449_v55 = vld [vmem:[#allocation8 + $0x90] sm:$0xff] }
 0x226   :  { %4878 = vmatprep.subr.bf16.mxu0 %v6423_v61  ;;  %v1456_v61 = vld [vmem:[#allocation8 + $0xc8] sm:$0xff] }
 0x229   :  { %4880 = vmatpush1.bf16.msra.mxu0 %v6426_v7  ;;  %v1462_v7 = vld [vmem:[#allocation8 + $0xf8] sm:$0xff] }
 0x22a   :  { %4882 = vmatprep.subr.bf16.mxu0 %v6429_v12  ;;  %v6555_v12 = vpack.c.bf16 %v1449_v55, %v1443_v44  ;;  %v1509_v44 = vld [vmem:[#allocation8 + $0x270] sm:$0xff] }
 0x22c   :  { %4800 = vmatpush1.bf16.msra.mxu1 %v6555_v12 }
 0x22d   :  { %4884 = vmatpush1.bf16.msra.mxu0 %v6432_v21  ;;  %v6559_v21 = vpack.c.bf16 %v1462_v7, %v1456_v61  ;;  %v6602_v7 = vpack.c.bf16 %v1509_v44, %v1503_v26  ;;  %v1575_v26 = vld [vmem:[#allocation8 + $0x480] sm:$0xff] }
 0x22e   :  { %4886 = vmatprep.subr.bf16.mxu0 %v6435_v24  ;;  %v1455_v24 = vld [vmem:[#allocation8 + $0xc0] sm:$0xff] }
 0x22f   :  { %4802 = vmatprep.subr.bf16.mxu1 %v6559_v21 }
 0x231   :  { %4888 = vmatpush1.bf16.msra.mxu0 %v6438_v34  ;;  %v1461_v34 = vld [vmem:[#allocation8 + $0xf0] sm:$0xff] }
 0x232   :  { %4890 = vmatprep.subr.bf16.mxu0 %v6441_v40  ;;  %v1468_v40 = vld [vmem:[#allocation8 + $0x128] sm:$0xff] }
 0x235   :  { %4892 = vmatpush1.bf16.msra.mxu0 %v6444_v51  ;;  %v1474_v51 = vld [vmem:[#allocation8 + $0x158] sm:$0xff] }
 0x236   :  { %4894 = vmatprep.subr.bf16.mxu0 %v6447_v60  ;;  %v6563_v60 = vpack.c.bf16 %v1461_v34, %v1455_v24  ;;  %v1516_v24 = vld [vmem:[#allocation8 + $0x2a8] sm:$0xff]  ;;  %v1522_v34 = vld [vmem:[#allocation8 + $0x2d8] sm:$0xff] }
 0x238   :  { %4804 = vmatpush1.bf16.msra.mxu1 %v6563_v60 }
 0x239   :  { %4896 = vmatpush1.bf16.msra.mxu0 %v6450_v9  ;;  %v6567_v9 = vpack.c.bf16 %v1474_v51, %v1468_v40  ;;  %v6606_v40 = vpack.c.bf16 %v1522_v34, %v1516_v24  ;;  %v1515_v51 = vld [vmem:[#allocation8 + $0x2a0] sm:$0xff]  ;;  %v1594_v24 = vld [vmem:[#allocation8 + $0x518] sm:$0xff] }
 0x23a   :  { %4898 = vmatprep.subr.bf16.mxu0 %v6453_v14  ;;  %v1467_v14 = vld [vmem:[#allocation8 + $0x120] sm:$0xff] }
 0x23b   :  { %4806 = vmatprep.subr.bf16.mxu1 %v6567_v9 }
 0x23d   :  { %4900 = vmatpush1.bf16.msra.mxu0 %v6456_v47  ;;  %v1473_v47 = vld [vmem:[#allocation8 + $0x150] sm:$0xff] }
 0x23e   :  { %4902 = vmatprep.subr.bf16.mxu0 %v6459_v29  ;;  %v1480_v29 = vld [vmem:[#allocation8 + $0x188] sm:$0xff] }
 0x241   :  { %4904 = vmatpush1.bf16.msra.mxu0 %v6464_v42  ;;  %v1486_v42 = vld [vmem:[#allocation8 + $0x1b8] sm:$0xff] }
 0x242   :  { %4906 = vmatprep.subr.bf16.mxu0 %v6470_v49  ;;  %v6571_v49 = vpack.c.bf16 %v1473_v47, %v1467_v14  ;;  %v1521_v14 = vld [vmem:[#allocation8 + $0x2d0] sm:$0xff] }
 0x243   :  { %v6608_v47 = vpack.c.bf16 %v1521_v14, %v1515_v51  ;;  %v1587_v14 = vld [vmem:[#allocation8 + $0x4e0] sm:$0xff] }
 0x244   :  { %4808 = vmatpush1.bf16.msra.mxu1 %v6571_v49 }
 0x245   :  { %4908 = vmatpush1.bf16.msra.mxu0 %v6476_v1  ;;  %v6574_v1 = vpack.c.bf16 %v1486_v42, %v1480_v29  ;;  %v1528_v29 = vld [vmem:[#allocation8 + $0x308] sm:$0xff]  ;;  %v1534_v42 = vld [vmem:[#allocation8 + $0x338] sm:$0xff] }
 0x246   :  { %4910 = vmatprep.subr.bf16.mxu0 %v6482_v10  ;;  %v1479_v10 = vld [vmem:[#allocation8 + $0x180] sm:$0xff] }
 0x247   :  { %v6577_v16 = vpack.c.bf16 %v1485_v43, %v1479_v10  ;;  %4810 = vmatprep.subr.bf16.mxu1 %v6574_v1  ;;  %v6612_v10 = vpack.c.bf16 %v1534_v42, %v1528_v29  ;;  %v1527_v43 = vld [vmem:[#allocation8 + $0x300] sm:$0xff]  ;;  %v1593_v29 = vld [vmem:[#allocation8 + $0x510] sm:$0xff]  ;;  %v1600_v42 = vld [vmem:[#allocation8 + $0x548] sm:$0xff] }
 0x248   :  { %v6614_v20 = vpack.c.bf16 %v1533_v17, %v1527_v43  ;;  %v1606_v43 = vld [vmem:[#allocation8 + $0x578] sm:$0xff]  ;;  %v6644_v17 = vpack.c.bf16 %v1593_v29, %v1587_v14 }
 0x249   :  { %4912 = vmatpush1.bf16.msra.mxu0 %v6488_v22  ;;  %4812 = vmatpush1.bf16.msra.mxu1 %v6577_v16  ;;  %v271_v22 = vrot.slane %v6585_v18, %v6384_v52 }
 0x24a   :  { %4914 = vmatprep.subr.bf16.mxu0 %v6494_v28  ;;  %v1498_v28 = vld [vmem:[#allocation8 + $0x218] sm:$0xff] }
 0x24b   :  { %v6594_v37 = vpack.c.bf16 %v1498_v28, %v1492_v27  ;;  %v1539_v28 = vld [vmem:[#allocation8 + $0x360] sm:$0xff] }
 0x24d   :  { %4916 = vmatpush1.bf16.msra.mxu0 %v6500_v48  ;;  %4814 = vmatprep.subr.bf16.mxu1 %v6594_v37 }
 0x24e   :  { %4918 = vmatprep.subr.bf16.mxu0 %v6506_v57  ;;  %4816 = vmatpush1.bf16.msra.mxu1 %v6596_v46 }
 0x251   :  { %4920 = vmatpush1.bf16.msra.mxu0 %v6512_v6  ;;  %v1504_v6 = vld [vmem:[#allocation8 + $0x248] sm:$0xff] }
 0x252   :  { %4986 = vmatprep.subr.bf16.mxu0 %v4793_v8  ;;  %v6600_v19 = vpack.c.bf16 %v1510_v59, %v1504_v6  ;;  %v1563_v59 = vld [vmem:[#allocation8 + $0x420] sm:$0xff] }
 0x254   :  { %4818 = vmatprep.subr.bf16.mxu1 %v6600_v19 }
 0x255   :  { %4820 = vmatpush1.bf16.msra.mxu1 %v6602_v7 }
 0x256   :  { %4822 = vmatprep.subr.bf16.mxu1 %v6606_v40 }
 0x259   :  { %4824 = vmatpush1.bf16.msra.mxu1 %v6608_v47 }
 0x25a   :  { %4826 = vmatprep.subr.bf16.mxu1 %v6612_v10 }
 0x25d   :  { %4828 = vmatpush1.bf16.msra.mxu1 %v6614_v20 }
 0x267   :  { %v812_v48 = vpop.f32.mrb[0].mxu1  ;;  %v853_v56 = vpop.f32.mrb[4].mxu0 }
 0x268   :  { %v813_v57 = vadd.f32 %v812_v48, %v271_v22  ;;  %v854_v63 = vadd.f32 %v853_v56, %v279_v25  ;;  %v814_v0 = vpop.f32.mrb[1].mxu1  ;;  %v855_v5 = vpop.f32.mrb[5].mxu0  ;;  %v1540_v22 = vld [vmem:[#allocation8 + $0x368] sm:$0xff]  ;;  %v1546_v25 = vld [vmem:[#allocation8 + $0x398] sm:$0xff]  ;;  %v6624_v48 = vpack.c.bf16 %v1558_v41, %v1552_v54  ;;  %v1551_v56 = vld [vmem:[#allocation8 + $0x3c0] sm:$0xff] }
 0x269   :  { %v815_v3 = vadd.f32 %v814_v0, %v275_v33  ;;  %v856_v4 = vadd.f32 %v855_v5, %v283_v36  ;;  %v816_v8 = vpop.f32.mrb[2].mxu1  ;;  %v857_v15 = vpop.f32.mrb[6].mxu0  ;;  %v6618_v27 = vpack.c.bf16 %v1546_v25, %v1540_v22  ;;  %v1545_v33 = vld [vmem:[#allocation8 + $0x390] sm:$0xff]  ;;  %v1564_v0 = vld [vmem:[#allocation8 + $0x428] sm:$0xff]  ;;  %v1570_v5 = vld [vmem:[#allocation8 + $0x458] sm:$0xff]  ;;  %v6647_v22 = vpack.c.bf16 %v1606_v43, %v1600_v42 }
 0x26a   :  { %901 = vst [vmem:[#allocation2] sm:$0x7f] %v813_v57  ;;  %903 = vst [vmem:[#allocation2 + $0x10] sm:$0x7f] %v854_v63  ;;  %v817_v55 = vpop.f32.mrb[3].mxu1  ;;  %v858_v61 = vpop.f32.mrb[7].mxu0  ;;  %v6620_v36 = vpack.c.bf16 %v1545_v33, %v1539_v28  ;;  %v6630_v6 = vpack.c.bf16 %v1570_v5, %v1564_v0 }
 0x26b   :  { %902 = vst [vmem:[#allocation2 + $0x8] sm:$0x7f] %v815_v3  ;;  %904 = vst [vmem:[#allocation2 + $0x18] sm:$0x7f] %v856_v4  ;;  %4830 = vmatprep.subr.bf16.mxu1 %v6618_v27  ;;  %v1557_v57 = vld [vmem:[#allocation8 + $0x3f0] sm:$0xff]  ;;  %v1576_v8 = vld [vmem:[#allocation8 + $0x488] sm:$0xff] }
 0x26c   :  { %4832 = vmatpush1.bf16.msra.mxu1 %v6620_v36  ;;  %v6626_v63 = vpack.c.bf16 %v1557_v57, %v1551_v56  ;;  %v1569_v3 = vld [vmem:[#allocation8 + $0x450] sm:$0xff]  ;;  %v1582_v15 = vld [vmem:[#allocation8 + $0x4b8] sm:$0xff]  ;;  %v1588_v61 = vld [vmem:[#allocation8 + $0x4e8] sm:$0xff] }
 0x26d   :  { %4834 = vmatprep.subr.bf16.mxu1 %v6624_v48  ;;  %v6632_v4 = vpack.c.bf16 %v1569_v3, %v1563_v59  ;;  %v6636_v44 = vpack.c.bf16 %v1582_v15, %v1576_v8  ;;  %v1581_v55 = vld [vmem:[#allocation8 + $0x4b0] sm:$0xff]  ;;  %v6640_v51 = vpack.c.bf16 %v1594_v24, %v1588_v61  ;;  %v1599_v25 = vld [vmem:[#allocation8 + $0x540] sm:$0xff]  ;;  %v1612_v33 = vld [vmem:[#allocation8 + $0x5a8] sm:$0xff]  ;;  %v286_v15 = vsub.s32 4, %v6364_v35 }
 0x26e   :  { %v6638_v34 = vpack.c.bf16 %v1581_v55, %v1575_v26  ;;  %v1605_v28 = vld [vmem:[#allocation8 + $0x570] sm:$0xff]  ;;  %v1618_v54 = vld [vmem:[#allocation8 + $0x5d8] sm:$0xff]  ;;  %v1611_v57 = vld [vmem:[#allocation8 + $0x5a0] sm:$0xff]  ;;  %v290_v26 = vsub.s32 5, %v6364_v35 }
 0x26f   :  { %v6650_v41 = vpack.c.bf16 %v1605_v28, %v1599_v25  ;;  %v6653_v56 = vpack.c.bf16 %v1618_v54, %v1612_v33  ;;  %v1617_v0 = vld [vmem:[#allocation8 + $0x5d0] sm:$0xff]  ;;  %v1436_v59 = vld [vmem:[#allocation8 + $0x28] sm:$0xff]  ;;  %v1442_v3 = vld [vmem:[#allocation8 + $0x58] sm:$0xff]  ;;  %v287_v55 = vrot.slane %v6585_v18, %v286_v15 }
 0x270   :  { %4836 = vmatpush1.bf16.msra.mxu1 %v6626_v63  ;;  %v6656_v5 = vpack.c.bf16 %v1617_v0, %v1611_v57  ;;  %v6660_v8 = vpack.c.bf16 %v1442_v3, %v1436_v59  ;;  %v291_v61 = vrot.slane %v6585_v18, %v290_v26  ;;  %v6279_v57 = vmov 1966171168  }
 0x271   :  { %4838 = vmatprep.subr.bf16.mxu1 %v6630_v6  ;;  %v1332_v0 = vunpack.c.l.s4 %v6279_v57 }
 0x272   :  { %7782 = vst [vmem:[#allocation13_spill] sm:$0xff] %v6660_v8  ;;  %v909_v26 = vld [vmem:[#allocation2] ss:$8 sm:$0xf] }
 0x273   :  { %v1333_v59 = vunpack.c.0.s8 %v1332_v0 }
 0x274   :  { %4840 = vmatpush1.bf16.msra.mxu1 %v6632_v4 }
 0x275   :  { %4842 = vmatprep.subr.bf16.mxu1 %v6636_v44  ;;  %v6668_v3 = vsub.s32 %v1333_v59, %v6364_v35 }
 0x278   :  { %4844 = vmatpush1.bf16.msra.mxu1 %v6638_v34 }
 0x279   :  { %4846 = vmatprep.subr.bf16.mxu1 %v6640_v51 }
 0x27c   :  { %4848 = vmatpush1.bf16.msra.mxu1 %v6644_v17 }
 0x27d   :  { %4850 = vmatprep.subr.bf16.mxu1 %v6647_v22 }
 0x280   :  { %4852 = vmatpush1.bf16.msra.mxu1 %v6650_v41 }
 0x281   :  { %4854 = vmatprep.subr.bf16.mxu1 %v6653_v56 }
 0x284   :  { %4856 = vmatpush1.bf16.msra.mxu1 %v6656_v5 }
 0x285   :  { %4922 = vmatprep.subr.bf16.mxu1 %v6660_v8 }
 0x2a7   :  { %v894_v24 = vpop.f32.mrb[4].mxu1  ;;  %v1181_v14 = vpop.f32.mrb[2].mxu0 }
 0x2a8   :  { %v895_v29 = vadd.f32 %v894_v24, %v287_v55  ;;  %v896_v42 = vpop.f32.mrb[5].mxu1  ;;  %v1183_v43 = vpop.f32.mrb[3].mxu0 }
 0x2a9   :  { %v897_v25 = vadd.f32 %v896_v42, %v291_v61  ;;  %v898_v28 = vpop.f32.mrb[6].mxu1  ;;  %v1330_v33 = vcombine.low %v1181_v14, %v1183_v43 }
 0x2aa   :  { %905 = vst [vmem:[#allocation2 + $0x20] sm:$0x7f] %v895_v29  ;;  %v899_v54 = vpop.f32.mrb[7].mxu1  ;;  %v907_v29 = vld [vmem:[%s7739_s6] sm:$0x3] }
 0x2ab   :  { %906 = vst [vmem:[#allocation2 + $0x28] sm:$0x7f] %v897_v25  ;;  %v1337_v15 = vrot.slane %v1330_v33, %v6668_v3  ;;  %v6676_v43 = vrot.slane %v907_v29, %v6384_v52  ;;  %v6679_v35 = vrot.slane %v907_v29, %v6367_v38 }
 0x2ad   :  { %v1344_v55 = vrot.slane %v1337_v15, %v6668_v3  ;;  %7783 = vst [vmem:[#allocation14_spill] sm:$0xff] %v6676_v43 }
 0x2b2   :  { %v910_v18 = vld [vmem:[#allocation2] ss:$8 sm:$0x30] }
 0x2b3   :  { %v911_v58 = vor.u32 %v910_v18, %v909_v26 }
 0x2b5   :  { %v1346_v24 = vadd.f32 %v1344_v55, %v911_v58  ;;  %v1354_v26 = vrot.slane %v911_v58, 2 }
 0x2b7   :  { %v4571_v61 = vmul.f32 -1.442695, %v1346_v24 }
 0x2b9   :  { %6103 = vpow2.f32 %v4571_v61 }
 0x2c3   :  { %v6104_v14 = vpop.eup %6103 }
 0x2c4   :  { %v1350_v42 = vadd.f32 1.0, %v6104_v14 }
 0x2c6   :  { %6105 = vrcp.f32 %v1350_v42 }
 0x2d0   :  { %v6106_v29 = vpop.eup %6105 }
 0x2e7   :  { %v1252_v25 = vpop.f32.mrb[8].mxu1  ;;  %v1323_v28 = vpop.f32.mrb[8].mxu0 }
 0x2e8   :  { %v1392_v33 = vadd.f32 %v6676_v43, %v1323_v28  ;;  %v1254_v54 = vpop.f32.mrb[9].mxu1  ;;  %v1325_v57 = vpop.f32.mrb[9].mxu0  ;;  %v1413_v28 = vrot.slane %v911_v58, 4  ;;  %v1435_v58 = vld [vmem:[#allocation8 + $0x20] sm:$0xff] }
 0x2e9   :  { %v1358_v0 = vcombine.low %v1252_v25, %v1254_v54  ;;  %v1393_v59 = vadd.f32 %v6679_v35, %v1325_v57 }
 0x2eb   :  { %v1365_v15 = vrot.slane %v1358_v0, %v6668_v3  ;;  %v1396_v18 = vcombine.low %v1392_v33, %v1393_v59 }
 0x2ed   :  { %v1372_v55 = vrot.slane %v1365_v15, %v6668_v3  ;;  %v1403_v24 = vrot.slane %v1396_v18, %v6668_v3  ;;  %v6173_v15 = vld [vmem:[%s7735_s2] sm:$0x3]  ;;  %s6280_s2 = smov [#allocation9]  }
 0x2ee   :  { %s4463_s24 = sshll.u32 %s6280_s2, 4  ;;  %s4464_s24 = int_to_ptr.vmem [resolvable:$true] %s4463_s24 }
 0x2ef   :  { %v1374_v61 = vadd.f32 %v1372_v55, %v1354_v26  ;;  %v1410_v14 = vrot.slane %v1403_v24, %v6668_v3  ;;  %v7784_v26 = vlaneseq  ;;  %v1441_v24 = vld [vmem:[#allocation8 + $0x50] sm:$0xff]  ;;  %s6240_s3 = scalar_lea.vmem %s4464_s24, 256  ;;  %p6245_p11 = scmp.lt.s32.totalorder %s4464_s24, %s4464_s24 }
 0x2f0   :  { %p6241_p10 = scmp.ne.s32.totalorder %s4464_s24, %s6240_s3  ;;  %p6246_p12 = scmp.lt.s32.totalorder %s6240_s3, %s6240_s3 }
 0x2f1   :  { %v4572_v42 = vmul.f32 -1.442695, %v1374_v61  ;;  %v1412_v8 = vmul.f32 %v6106_v29, %v1410_v14  ;;  %vm6691_vm2 = vcmp.lt.s32.totalorder %v7784_v26, 256  ;;  %v1454_v61 = vld [vmem:[#allocation8 + $0xb8] sm:$0xff]  ;;  %v1472_v26 = vld [vmem:[#allocation8 + $0x148] sm:$0xff] }
 0x2f2   :  { %p6247_p13 = por %p6246_p12, %p6245_p11 }
 0x2f3   :  { %6107 = vpow2.f32 %v4572_v42  ;;  %v1415_v54 = vadd.f32 %v1413_v28, %v1412_v8  ;;  %v1448_v8 = vld [vmem:[#allocation8 + $0x88] sm:$0xff]  ;;  %v6706_v42 = vpack.c.bf16 %v1441_v24, %v1435_v58  ;;  %v1478_v58 = vld [vmem:[#allocation8 + $0x178] sm:$0xff] }
 0x2f4   :  { %v6708_v28 = vpack.c.bf16 %v1454_v61, %v1448_v8  ;;  %v6724_v8 = vpack.c.bf16 %v1478_v58, %v1472_v26  ;;  %v1471_v61 = vld [vmem:[#allocation8 + $0x140] sm:$0xff]  ;;  %v1501_v58 = vld [vmem:[#allocation8 + $0x230] sm:$0xff]  ;;  %p6248_p0 = pnand %p6247_p13, %p6241_p10 }
 0x2f5   :  { %v1495_v26 = vld [vmem:[#allocation8 + $0x200] sm:$0xff] }
 0x2fd   :  { %v6108_v43 = vpop.eup %6107 }
 0x2fe   :  { %v1378_v25 = vadd.f32 1.0, %v6108_v43 }
 0x300   :  { %6109 = vrcp.f32 %v1378_v25  ;;  %v1447_v25 = vld [vmem:[#allocation8 + $0x80] sm:$0xff] }
 0x301   :  { %6111 = vtanh.f32 %v1415_v54  ;;  %v1453_v54 = vld [vmem:[#allocation8 + $0xb0] sm:$0xff] }
 0x30a   :  { %v6110_v57 = vpop.eup %6109 }
 0x30b   :  { %v1417_v33 = vsub.f32 1.0, %v6110_v57  ;;  %v6112_v0 = vpop.eup %6111  ;;  %v1419_v18 = vmul.f32 %v6173_v15, %v6110_v57  ;;  %v1460_v57 = vld [vmem:[#allocation8 + $0xe8] sm:$0xff]  ;;  %v1459_v15 = vld [vmem:[#allocation8 + $0xe0] sm:$0xff] }
 0x30d   :  { %v1418_v59 = vmul.f32 %v6112_v0, %v1417_v33  ;;  %v1466_v33 = vld [vmem:[#allocation8 + $0x118] sm:$0xff]  ;;  %v6713_v0 = vpack.c.bf16 %v1453_v54, %v1447_v25  ;;  %v1484_v25 = vld [vmem:[#allocation8 + $0x1a8] sm:$0xff] }
 0x30e   :  { %v1490_v54 = vld [vmem:[#allocation8 + $0x1d8] sm:$0xff] }
 0x30f   :  { %v6695_v43 = vadd.f32 %v1419_v18, %v1418_v59  ;;  %v6716_v59 = vpack.c.bf16 %v1466_v33, %v1460_v57  ;;  %v1465_v18 = vld [vmem:[#allocation8 + $0x110] sm:$0xff]  ;;  %v1483_v57 = vld [vmem:[#allocation8 + $0x1a0] sm:$0xff] }
 0x310   :  { %v6721_v24 = vpack.c.bf16 %v1465_v18, %v1459_v15  ;;  %v1489_v33 = vld [vmem:[#allocation8 + $0x1d0] sm:$0xff]  ;;  %v1496_v15 = vld [vmem:[#allocation8 + $0x208] sm:$0xff]  ;;  %v1502_v18 = vld [vmem:[#allocation8 + $0x238] sm:$0xff] }
 0x311   :  { %v1631_v14 = vrot.slane %v6695_v43, %v6367_v38  ;;  %1425 = vst.msk [vmem:[#allocation9] ss:$8 sm:$0x3] %vm6691_vm2, %v6695_v43  ;;  %v6704_v29 = vrot.slane %v6695_v43, %v6384_v52 }
 0x313   :  { %1698 = vmatprep.mubr.f32.mxu1 %v1631_v14  ;;  %1769 = vmatprep.mubr.f32.mxu0 %v1631_v14 }
 0x314   :  { %1699 = vmatmul.mubr.f32.vlgmr.msra.gmra.mrb[10].mxu1 %v6704_v29  ;;  %1770 = vmatmul.mubr.f32.vlgmr.msra.gmra.mrb[10].mxu0 %v6704_v29 }
 0x315   :  { %4924 = vmatpush1.bf16.msra.mxu1 %v6706_v42  ;;  %1840 = vmatprep.mubr.f32.mxu1 %v1631_v14  ;;  %v1477_v14 = vld [vmem:[#allocation8 + $0x170] sm:$0xff] }
 0x316   :  { %4926 = vmatprep.subr.bf16.mxu1 %v6708_v28  ;;  %4988 = vmatpush1.bf16.msra.mxu0 %v6549_v30  ;;  %v6729_v30 = vpack.c.bf16 %v1477_v14, %v1471_v61  ;;  %v1508_v61 = vld [vmem:[#allocation8 + $0x268] sm:$0xff]  ;;  %v1514_v14 = vld [vmem:[#allocation8 + $0x298] sm:$0xff] }
 0x317   :  { %4990 = vmatprep.subr.bf16.mxu0 %v6551_v39  ;;  %v6732_v39 = vpack.c.bf16 %v1490_v54, %v1484_v25  ;;  %v1507_v25 = vld [vmem:[#allocation8 + $0x260] sm:$0xff]  ;;  %v1513_v54 = vld [vmem:[#allocation8 + $0x290] sm:$0xff] }
 0x319   :  { %4928 = vmatpush1.bf16.msra.mxu1 %v6713_v0 }
 0x31a   :  { %4930 = vmatprep.subr.bf16.mxu1 %v6716_v59  ;;  %4992 = vmatpush1.bf16.msra.mxu0 %v6555_v12  ;;  %v6737_v12 = vpack.c.bf16 %v1489_v33, %v1483_v57  ;;  %v1520_v57 = vld [vmem:[#allocation8 + $0x2c8] sm:$0xff]  ;;  %v1526_v33 = vld [vmem:[#allocation8 + $0x2f8] sm:$0xff] }
 0x31b   :  { %4994 = vmatprep.subr.bf16.mxu0 %v6559_v21  ;;  %v6740_v21 = vpack.c.bf16 %v1502_v18, %v1496_v15  ;;  %v1519_v15 = vld [vmem:[#allocation8 + $0x2c0] sm:$0xff]  ;;  %v1525_v18 = vld [vmem:[#allocation8 + $0x2f0] sm:$0xff] }
 0x31d   :  { %4932 = vmatpush1.bf16.msra.mxu1 %v6721_v24 }
 0x31e   :  { %4934 = vmatprep.subr.bf16.mxu1 %v6724_v8  ;;  %4996 = vmatpush1.bf16.msra.mxu0 %v6563_v60  ;;  %v6745_v60 = vpack.c.bf16 %v1501_v58, %v1495_v26  ;;  %v1532_v26 = vld [vmem:[#allocation8 + $0x328] sm:$0xff]  ;;  %v1538_v58 = vld [vmem:[#allocation8 + $0x358] sm:$0xff] }
 0x31f   :  { %4998 = vmatprep.subr.bf16.mxu0 %v6567_v9  ;;  %v6748_v9 = vpack.c.bf16 %v1514_v14, %v1508_v61  ;;  %v1531_v61 = vld [vmem:[#allocation8 + $0x320] sm:$0xff]  ;;  %v1537_v14 = vld [vmem:[#allocation8 + $0x350] sm:$0xff] }
 0x321   :  { %4936 = vmatpush1.bf16.msra.mxu1 %v6729_v30 }
 0x322   :  { %4938 = vmatprep.subr.bf16.mxu1 %v6732_v39  ;;  %5000 = vmatpush1.bf16.msra.mxu0 %v6571_v49  ;;  %v6753_v49 = vpack.c.bf16 %v1513_v54, %v1507_v25  ;;  %v1544_v25 = vld [vmem:[#allocation8 + $0x388] sm:$0xff]  ;;  %v1550_v54 = vld [vmem:[#allocation8 + $0x3b8] sm:$0xff] }
 0x323   :  { %5002 = vmatprep.subr.bf16.mxu0 %v6574_v1  ;;  %v6756_v1 = vpack.c.bf16 %v1526_v33, %v1520_v57  ;;  %v1543_v57 = vld [vmem:[#allocation8 + $0x380] sm:$0xff]  ;;  %v1549_v33 = vld [vmem:[#allocation8 + $0x3b0] sm:$0xff] }
 0x325   :  { %4940 = vmatpush1.bf16.msra.mxu1 %v6737_v12 }
 0x326   :  { %4942 = vmatprep.subr.bf16.mxu1 %v6740_v21  ;;  %5004 = vmatpush1.bf16.msra.mxu0 %v6577_v16  ;;  %v6761_v16 = vpack.c.bf16 %v1525_v18, %v1519_v15  ;;  %v1556_v15 = vld [vmem:[#allocation8 + $0x3e8] sm:$0xff]  ;;  %v1562_v18 = vld [vmem:[#allocation8 + $0x418] sm:$0xff] }
 0x327   :  { %5006 = vmatprep.subr.bf16.mxu0 %v6594_v37  ;;  %v6764_v37 = vpack.c.bf16 %v1538_v58, %v1532_v26  ;;  %v1555_v26 = vld [vmem:[#allocation8 + $0x3e0] sm:$0xff]  ;;  %v1561_v58 = vld [vmem:[#allocation8 + $0x410] sm:$0xff] }
 0x329   :  { %4944 = vmatpush1.bf16.msra.mxu1 %v6745_v60 }
 0x32a   :  { %4946 = vmatprep.subr.bf16.mxu1 %v6748_v9  ;;  %5008 = vmatpush1.bf16.msra.mxu0 %v6596_v46  ;;  %v6769_v46 = vpack.c.bf16 %v1537_v14, %v1531_v61  ;;  %v1986_v14 = vld [vmem:[#allocation8 + $0x190] sm:$0xff] }
 0x32b   :  { %5010 = vmatprep.subr.bf16.mxu0 %v6600_v19  ;;  %v6772_v19 = vpack.c.bf16 %v1550_v54, %v1544_v25  ;;  %v1992_v25 = vld [vmem:[#allocation8 + $0x1c0] sm:$0xff]  ;;  %v1999_v54 = vld [vmem:[#allocation8 + $0x1f8] sm:$0xff] }
 0x32d   :  { %4948 = vmatpush1.bf16.msra.mxu1 %v6753_v49 }
 0x32e   :  { %4950 = vmatprep.subr.bf16.mxu1 %v6756_v1  ;;  %5012 = vmatpush1.bf16.msra.mxu0 %v6602_v7  ;;  %v6777_v7 = vpack.c.bf16 %v1549_v33, %v1543_v57  ;;  %v2005_v57 = vld [vmem:[#allocation8 + $0x228] sm:$0xff]  ;;  %v6840_v33 = vpack.c.bf16 %v1992_v25, %v1986_v14 }
 0x32f   :  { %5014 = vmatprep.subr.bf16.mxu0 %v6606_v40  ;;  %v6780_v40 = vpack.c.bf16 %v1562_v18, %v1556_v15  ;;  %v6843_v15 = vpack.c.bf16 %v2005_v57, %v1999_v54  ;;  %v1998_v18 = vld [vmem:[#allocation8 + $0x1f0] sm:$0xff]  ;;  %v2053_v14 = vld [vmem:[#allocation8 + $0x3a8] sm:$0xff]  ;;  %v2052_v57 = vld [vmem:[#allocation8 + $0x3a0] sm:$0xff] }
 0x330   :  { %v2046_v54 = vld [vmem:[#allocation8 + $0x370] sm:$0xff] }
 0x331   :  { %4952 = vmatpush1.bf16.msra.mxu1 %v6761_v16 }
 0x332   :  { %4954 = vmatprep.subr.bf16.mxu1 %v6764_v37  ;;  %5016 = vmatpush1.bf16.msra.mxu0 %v6608_v47  ;;  %v6785_v47 = vpack.c.bf16 %v1561_v58, %v1555_v26  ;;  %v2004_v26 = vld [vmem:[#allocation8 + $0x220] sm:$0xff]  ;;  %v2011_v58 = vld [vmem:[#allocation8 + $0x258] sm:$0xff] }
 0x333   :  { %5018 = vmatprep.subr.bf16.mxu0 %v6612_v10 }
 0x335   :  { %4956 = vmatpush1.bf16.msra.mxu1 %v6769_v46 }
 0x336   :  { %4958 = vmatprep.subr.bf16.mxu1 %v6772_v19  ;;  %5020 = vmatpush1.bf16.msra.mxu0 %v6614_v20  ;;  %v1950_v20 = vld [vmem:[#allocation8 + $0x70] sm:$0xff] }
 0x337   :  { %5022 = vmatprep.subr.bf16.mxu0 %v6618_v27  ;;  %v1963_v27 = vld [vmem:[#allocation8 + $0xd8] sm:$0xff] }
 0x339   :  { %4960 = vmatpush1.bf16.msra.mxu1 %v6777_v7 }
 0x33a   :  { %4962 = vmatprep.subr.bf16.mxu1 %v6780_v40  ;;  %5024 = vmatpush1.bf16.msra.mxu0 %v6620_v36  ;;  %v1969_v36 = vld [vmem:[#allocation8 + $0x108] sm:$0xff] }
 0x33b   :  { %5026 = vmatprep.subr.bf16.mxu0 %v6624_v48 }
 0x33d   :  { %4964 = vmatpush1.bf16.msra.mxu1 %v6785_v47 }
 0x33e   :  { %4966 = vmatprep.subr.bf16.mxu1 %v6461_v31  ;;  %5028 = vmatpush1.bf16.msra.mxu0 %v6626_v63  ;;  %v7787_v31 = vld [vmem:[#allocation13_spill] sm:$0xff]  ;;  %v6825_v63 = vpack.c.bf16 %v1969_v36, %v1963_v27  ;;  %v2028_v36 = vld [vmem:[#allocation8 + $0x2e0] sm:$0xff] }
 0x33f   :  { %5030 = vmatprep.subr.bf16.mxu0 %v6630_v6  ;;  %v1962_v6 = vld [vmem:[#allocation8 + $0xd0] sm:$0xff] }
 0x340   :  { %v2022_v27 = vld [vmem:[#allocation8 + $0x2b0] sm:$0xff] }
 0x341   :  { %4968 = vmatpush1.bf16.msra.mxu1 %v6466_v45  ;;  %v1939_v45 = vld [vmem:[#allocation8 + $0x18] sm:$0xff] }
 0x342   :  { %4970 = vmatprep.subr.bf16.mxu1 %v6472_v50  ;;  %5032 = vmatpush1.bf16.msra.mxu0 %v6632_v4  ;;  %v1945_v50 = vld [vmem:[#allocation8 + $0x48] sm:$0xff]  ;;  %v1968_v4 = vld [vmem:[#allocation8 + $0x100] sm:$0xff] }
 0x343   :  { %5034 = vmatprep.subr.bf16.mxu0 %v6636_v44  ;;  %v1975_v44 = vld [vmem:[#allocation8 + $0x138] sm:$0xff] }
 0x345   :  { %4972 = vmatpush1.bf16.msra.mxu1 %v6478_v2  ;;  %v1938_v2 = vld [vmem:[#allocation8 + $0x10] sm:$0xff] }
 0x346   :  { %4974 = vmatprep.subr.bf16.mxu1 %v6484_v11  ;;  %5036 = vmatpush1.bf16.msra.mxu0 %v6638_v34  ;;  %v6814_v11 = vpack.c.bf16 %v1945_v50, %v1939_v45  ;;  %v1981_v34 = vld [vmem:[#allocation8 + $0x168] sm:$0xff]  ;;  %v6846_v45 = vpack.c.bf16 %v2004_v26, %v1998_v18  ;;  %v6870_v18 = vpack.c.bf16 %v2052_v57, %v2046_v54  ;;  %v2059_v26 = vld [vmem:[#allocation8 + $0x3d8] sm:$0xff]  ;;  %v2082_v54 = vld [vmem:[#allocation8 + $0x490] sm:$0xff] }
 0x347   :  { %5038 = vmatprep.subr.bf16.mxu0 %v6640_v51  ;;  %v6828_v51 = vpack.c.bf16 %v1968_v4, %v1962_v6  ;;  %v6858_v6 = vpack.c.bf16 %v2028_v36, %v2022_v27  ;;  %v2035_v4 = vld [vmem:[#allocation8 + $0x318] sm:$0xff]  ;;  %v2077_v27 = vld [vmem:[#allocation8 + $0x468] sm:$0xff]  ;;  %v2088_v57 = vld [vmem:[#allocation8 + $0x4c0] sm:$0xff] }
 0x348   :  { %7789 = vst [vmem:[#allocation15_spill] sm:$0xff] %v6870_v18 }
 0x349   :  { %4976 = vmatpush1.bf16.msra.mxu1 %v6490_v23  ;;  %v1944_v23 = vld [vmem:[#allocation8 + $0x40] sm:$0xff] }
 0x34a   :  { %4978 = vmatprep.subr.bf16.mxu1 %v6496_v32  ;;  %5040 = vmatpush1.bf16.msra.mxu0 %v6644_v17  ;;  %v1951_v32 = vld [vmem:[#allocation8 + $0x78] sm:$0xff]  ;;  %v6831_v17 = vpack.c.bf16 %v1981_v34, %v1975_v44  ;;  %v2041_v44 = vld [vmem:[#allocation8 + $0x348] sm:$0xff] }
 0x34b   :  { %5042 = vmatprep.subr.bf16.mxu0 %v6647_v22  ;;  %v1974_v22 = vld [vmem:[#allocation8 + $0x130] sm:$0xff]  ;;  %v6862_v34 = vpack.c.bf16 %v2041_v44, %v2035_v4  ;;  %v2076_v44 = vld [vmem:[#allocation8 + $0x460] sm:$0xff] }
 0x34c   :  { %v2070_v4 = vld [vmem:[#allocation8 + $0x430] sm:$0xff] }
 0x34d   :  { %4980 = vmatpush1.bf16.msra.mxu1 %v6502_v53  ;;  %v1957_v53 = vld [vmem:[#allocation8 + $0xa8] sm:$0xff] }
 0x34e   :  { %4982 = vmatprep.subr.bf16.mxu1 %v6508_v62  ;;  %5044 = vmatpush1.bf16.msra.mxu0 %v6650_v41  ;;  %v6816_v62 = vpack.c.bf16 %v1944_v23, %v1938_v2  ;;  %v6818_v10 = vpack.c.bf16 %v1957_v53, %v1951_v32  ;;  %v1980_v41 = vld [vmem:[#allocation8 + $0x160] sm:$0xff]  ;;  %v2010_v2 = vld [vmem:[#allocation8 + $0x250] sm:$0xff]  ;;  %v2023_v32 = vld [vmem:[#allocation8 + $0x2b8] sm:$0xff] }
 0x34f   :  { %5046 = vmatprep.subr.bf16.mxu0 %v6653_v56  ;;  %v1987_v56 = vld [vmem:[#allocation8 + $0x198] sm:$0xff]  ;;  %v2016_v23 = vld [vmem:[#allocation8 + $0x280] sm:$0xff]  ;;  %v2029_v53 = vld [vmem:[#allocation8 + $0x2e8] sm:$0xff] }
 0x351   :  { %4984 = vmatpush1.bf16.msra.mxu1 %v6514_v13  ;;  %v1956_v13 = vld [vmem:[#allocation8 + $0xa0] sm:$0xff] }
 0x352   :  { %5048 = vmatpush1.bf16.msra.mxu0 %v6656_v5  ;;  %5050 = vmatprep.subr.bf16.mxu1 %v6814_v11  ;;  %v6822_v48 = vpack.c.bf16 %v1956_v13, %v1950_v20  ;;  %v1993_v5 = vld [vmem:[#allocation8 + $0x1c8] sm:$0xff]  ;;  %v6852_v20 = vpack.c.bf16 %v2016_v23, %v2010_v2  ;;  %v6855_v13 = vpack.c.bf16 %v2029_v53, %v2023_v32  ;;  %v2058_v2 = vld [vmem:[#allocation8 + $0x3d0] sm:$0xff]  ;;  %v2064_v23 = vld [vmem:[#allocation8 + $0x400] sm:$0xff] }
 0x353   :  { %5114 = vmatprep.subr.bf16.mxu0 %v7787_v31  ;;  %v6837_v61 = vpack.c.bf16 %v1993_v5, %v1987_v56  ;;  %v2017_v31 = vld [vmem:[#allocation8 + $0x288] sm:$0xff]  ;;  %v2047_v5 = vld [vmem:[#allocation8 + $0x378] sm:$0xff]  ;;  %v6876_v32 = vpack.c.bf16 %v2064_v23, %v2058_v2  ;;  %v2094_v23 = vld [vmem:[#allocation8 + $0x4f0] sm:$0xff] }
 0x354   :  { %1841 = vmatmul.mubr.f32.vlgmr.msra.gmra.mrb[12].mxu1 %v6704_v29  ;;  %v6834_v29 = vpack.c.bf16 %v1980_v41, %v1974_v22  ;;  %v6849_v50 = vpack.c.bf16 %v2017_v31, %v2011_v58  ;;  %v2034_v22 = vld [vmem:[#allocation8 + $0x310] sm:$0xff]  ;;  %v2040_v41 = vld [vmem:[#allocation8 + $0x340] sm:$0xff]  ;;  %v6868_v25 = vpack.c.bf16 %v2053_v14, %v2047_v5  ;;  %v2065_v58 = vld [vmem:[#allocation8 + $0x408] sm:$0xff] }
 0x355   :  { %5052 = vmatpush1.bf16.msra.mxu1 %v6816_v62  ;;  %v6864_v56 = vpack.c.bf16 %v2040_v41, %v2034_v22  ;;  %v6874_v31 = vpack.c.bf16 %v2065_v58, %v2059_v26  ;;  %7791 = vst [vmem:[#allocation17_spill] sm:$0xff] %v6876_v32  ;;  %v2071_v53 = vld [vmem:[#allocation8 + $0x438] sm:$0xff]  ;;  %v6882_v22 = vpack.c.bf16 %v2076_v44, %v2070_v4  ;;  %v2089_v5 = vld [vmem:[#allocation8 + $0x4c8] sm:$0xff] }
 0x356   :  { %5054 = vmatprep.subr.bf16.mxu1 %v6818_v10  ;;  %7788 = vst [vmem:[#allocation13_spill] sm:$0xff] %v6868_v25  ;;  %v6880_v36 = vpack.c.bf16 %v2077_v27, %v2071_v53  ;;  %v2083_v41 = vld [vmem:[#allocation8 + $0x498] sm:$0xff]  ;;  %v6888_v58 = vpack.c.bf16 %v2088_v57, %v2082_v54  ;;  %v2101_v2 = vld [vmem:[#allocation8 + $0x528] sm:$0xff]  ;;  %v2100_v53 = vld [vmem:[#allocation8 + $0x520] sm:$0xff] }
 0x357   :  { %7790 = vst [vmem:[#allocation16_spill] sm:$0xff] %v6874_v31  ;;  %7793 = vst [vmem:[#allocation19_spill] sm:$0xff] %v6882_v22  ;;  %v6886_v14 = vpack.c.bf16 %v2089_v5, %v2083_v41  ;;  %v2095_v26 = vld [vmem:[#allocation8 + $0x4f8] sm:$0xff]  ;;  %v2113_v44 = vld [vmem:[#allocation8 + $0x588] sm:$0xff] }
 0x358   :  { %7792 = vst [vmem:[#allocation18_spill] sm:$0xff] %v6880_v36  ;;  %7795 = vst [vmem:[#allocation21_spill] sm:$0xff] %v6888_v58  ;;  %v6891_v27 = vpack.c.bf16 %v2101_v2, %v2095_v26  ;;  %v2107_v4 = vld [vmem:[#allocation8 + $0x558] sm:$0xff]  ;;  %v2106_v5 = vld [vmem:[#allocation8 + $0x550] sm:$0xff] }
 0x359   :  { %5056 = vmatpush1.bf16.msra.mxu1 %v6822_v48  ;;  %7794 = vst [vmem:[#allocation20_spill] sm:$0xff] %v6886_v14  ;;  %v6897_v41 = vpack.c.bf16 %v2113_v44, %v2107_v4  ;;  %v2112_v54 = vld [vmem:[#allocation8 + $0x580] sm:$0xff]  ;;  %v2119_v57 = vld [vmem:[#allocation8 + $0x5b8] sm:$0xff]  ;;  %v2118_v2 = vld [vmem:[#allocation8 + $0x5b0] sm:$0xff] }
 0x35a   :  { %5058 = vmatprep.subr.bf16.mxu1 %v6825_v63  ;;  %7796 = vst [vmem:[#allocation22_spill] sm:$0xff] %v6891_v27 }
 0x35b   :  { %7798 = vst [vmem:[#allocation24_spill] sm:$0xff] %v6897_v41 }
 0x35d   :  { %5060 = vmatpush1.bf16.msra.mxu1 %v6828_v51 }
 0x35e   :  { %5062 = vmatprep.subr.bf16.mxu1 %v6831_v17 }
 0x361   :  { %5064 = vmatpush1.bf16.msra.mxu1 %v6834_v29 }
 0x362   :  { %5066 = vmatprep.subr.bf16.mxu1 %v6837_v61 }
 0x365   :  { %5068 = vmatpush1.bf16.msra.mxu1 %v6840_v33 }
 0x366   :  { %5070 = vmatprep.subr.bf16.mxu1 %v6843_v15 }
 0x369   :  { %5072 = vmatpush1.bf16.msra.mxu1 %v6846_v45 }
 0x36a   :  { %5074 = vmatprep.subr.bf16.mxu1 %v6849_v50 }
 0x36d   :  { %5076 = vmatpush1.bf16.msra.mxu1 %v6852_v20 }
 0x36e   :  { %5078 = vmatprep.subr.bf16.mxu1 %v6855_v13 }
 0x371   :  { %5080 = vmatpush1.bf16.msra.mxu1 %v6858_v6 }
 0x372   :  { %5082 = vmatprep.subr.bf16.mxu1 %v6862_v34 }
 0x375   :  { %5084 = vmatpush1.bf16.msra.mxu1 %v6864_v56 }
 0x376   :  { %5086 = vmatprep.subr.bf16.mxu1 %v6868_v25 }
 0x379   :  { %5088 = vmatpush1.bf16.msra.mxu1 %v6870_v18 }
 0x37a   :  { %5090 = vmatprep.subr.bf16.mxu1 %v6874_v31 }
 0x37d   :  { %5092 = vmatpush1.bf16.msra.mxu1 %v6876_v32  ;;  %v6900_v32 = vpack.c.bf16 %v2112_v54, %v2106_v5 }
 0x37e   :  { %5094 = vmatprep.subr.bf16.mxu1 %v6880_v36  ;;  %v2125_v36 = vld [vmem:[#allocation8 + $0x5e8] sm:$0xff] }
 0x37f   :  { %7799 = vst [vmem:[#allocation25_spill] sm:$0xff] %v6900_v32  ;;  %v6903_v26 = vpack.c.bf16 %v2125_v36, %v2119_v57  ;;  %v1429_v36 = vld [vmem:[#allocation2 + $0x1] ss:$8 sm:$0x30] }
 0x381   :  { %5096 = vmatpush1.bf16.msra.mxu1 %v6882_v22  ;;  %v6894_v22 = vpack.c.bf16 %v2100_v53, %v2094_v23  ;;  %7800 = vst [vmem:[#allocation26_spill] sm:$0xff] %v6903_v26 }
 0x382   :  { %5098 = vmatprep.subr.bf16.mxu1 %v6886_v14 }
 0x383   :  { %7797 = vst [vmem:[#allocation23_spill] sm:$0xff] %v6894_v22 }
 0x385   :  { %5100 = vmatpush1.bf16.msra.mxu1 %v6888_v58  ;;  %v2124_v58 = vld [vmem:[#allocation8 + $0x5e0] sm:$0xff] }
 0x386   :  { %5102 = vmatprep.subr.bf16.mxu1 %v6891_v27  ;;  %v6906_v23 = vpack.c.bf16 %v2124_v58, %v2118_v2  ;;  %v1428_v27 = vld [vmem:[#allocation2 + $0x1] ss:$8 sm:$0xf] }
 0x387   :  { %v1430_v14 = vor.u32 %v1429_v36, %v1428_v27 }
 0x388   :  { %7801 = vst [vmem:[#allocation27_spill] sm:$0xff] %v6906_v23 }
 0x389   :  { %5104 = vmatpush1.bf16.msra.mxu1 %v6894_v22 }
 0x38a   :  { %5106 = vmatprep.subr.bf16.mxu1 %v6897_v41 }
 0x38d   :  { %5108 = vmatpush1.bf16.msra.mxu1 %v6900_v32 }
 0x38e   :  { %5110 = vmatprep.subr.bf16.mxu1 %v6903_v26 }
 0x391   :  { %5112 = vmatpush1.bf16.msra.mxu1 %v6906_v23  ;;  %v1873_v23 = vrot.slane %v1430_v14, 2 }
 0x3e7   :  { %v1700_v53 = vpop.f32.mrb[10].mxu1  ;;  %v1771_v4 = vpop.f32.mrb[10].mxu0 }
 0x3e8   :  { %v1702_v44 = vpop.f32.mrb[11].mxu1  ;;  %v1773_v22 = vpop.f32.mrb[11].mxu0 }
 0x3e9   :  { %v1849_v5 = vcombine.low %v1700_v53, %v1702_v44  ;;  %v1877_v54 = vcombine.low %v1771_v4, %v1773_v22  ;;  %v7802_v4 = vld [vmem:[#allocation14_spill] sm:$0xff] }
 0x3eb   :  { %v1856_v41 = vrot.slane %v1849_v5, %v6668_v3  ;;  %v1884_v58 = vrot.slane %v1877_v54, %v6668_v3 }
 0x3ed   :  { %v1863_v57 = vrot.slane %v1856_v41, %v6668_v3  ;;  %v1891_v26 = vrot.slane %v1884_v58, %v6668_v3 }
 0x3ef   :  { %v1865_v32 = vadd.f32 %v1863_v57, %v1430_v14  ;;  %v1893_v31 = vadd.f32 %v1891_v26, %v1873_v23  ;;  %v1921_v26 = vrot.slane %v1430_v14, 4 }
 0x3f1   :  { %v4573_v2 = vmul.f32 -1.442695, %v1865_v32  ;;  %v4574_v18 = vmul.f32 -1.442695, %v1893_v31 }
 0x3f3   :  { %6113 = vpow2.f32 %v4573_v2 }
 0x3f4   :  { %6115 = vpow2.f32 %v4574_v18 }
 0x3fd   :  { %v6114_v25 = vpop.eup %6113 }
 0x3fe   :  { %v1869_v22 = vadd.f32 1.0, %v6114_v25  ;;  %v6116_v5 = vpop.eup %6115 }
 0x3ff   :  { %v1897_v54 = vadd.f32 1.0, %v6116_v5  ;;  %v2121_v5 = vld [vmem:[#allocation8 + $0x5c8] sm:$0xff] }
 0x400   :  { %6117 = vrcp.f32 %v1869_v22 }
 0x401   :  { %6119 = vrcp.f32 %v1897_v54 }
 0x40a   :  { %v6118_v58 = vpop.eup %6117 }
 0x40b   :  { %v6120_v25 = vpop.eup %6119 }
 0x40c   :  { %v1925_v23 = vsub.f32 1.0, %v6120_v25 }
 0x427   :  { %v1842_v53 = vpop.f32.mrb[12].mxu1 }
 0x428   :  { %v1900_v44 = vadd.f32 %v1842_v53, %v7802_v4  ;;  %v1844_v41 = vpop.f32.mrb[13].mxu1  ;;  %v1927_v53 = vmul.f32 %v6120_v25, %v6695_v43  ;;  %v2073_v43 = vld [vmem:[#allocation8 + $0x448] sm:$0xff] }
 0x429   :  { %v1901_v27 = vadd.f32 %v1844_v41, %v6679_v35 }
 0x42b   :  { %v1904_v36 = vcombine.low %v1900_v44, %v1901_v27  ;;  %v2114_v27 = vld [vmem:[#allocation8 + $0x590] sm:$0xff] }
 0x42d   :  { %v1911_v32 = vrot.slane %v1904_v36, %v6668_v3  ;;  %v2127_v36 = vld [vmem:[#allocation8 + $0x5f8] sm:$0xff] }
 0x42f   :  { %v1918_v57 = vrot.slane %v1911_v32, %v6668_v3  ;;  %v6976_v32 = vpack.c.bf16 %v2127_v36, %v2121_v5  ;;  %v2508_v5 = vld [vmem:[#allocation8 + $0x218] sm:$0xff] }
 0x431   :  { %v1920_v31 = vmul.f32 %v6118_v58, %v1918_v57  ;;  %v2120_v57 = vld [vmem:[#allocation8 + $0x5c0] sm:$0xff]  ;;  %v2126_v58 = vld [vmem:[#allocation8 + $0x5f0] sm:$0xff] }
 0x433   :  { %v1923_v18 = vadd.f32 %v1921_v26, %v1920_v31  ;;  %v6979_v31 = vpack.c.bf16 %v2126_v58, %v2120_v57  ;;  %v2466_v26 = vld [vmem:[#allocation8 + $0xc8] sm:$0xff]  ;;  %v7817_v57 = vld [vmem:[#allocation27_spill] sm:$0xff] }
 0x435   :  { %6121 = vtanh.f32 %v1923_v18  ;;  %7803 = vst [vmem:[#allocation14_spill] sm:$0xff] %v6979_v31  ;;  %v2472_v18 = vld [vmem:[#allocation8 + $0xf8] sm:$0xff] }
 0x43f   :  { %v6122_v2 = vpop.eup %6121 }
 0x440   :  { %v1926_v22 = vmul.f32 %v6122_v2, %v1925_v23  ;;  %v7811_v23 = vld [vmem:[#allocation21_spill] sm:$0xff]  ;;  %v7018_v2 = vpack.c.bf16 %v2472_v18, %v2466_v26 }
 0x442   :  { %v6919_v41 = vadd.f32 %v1927_v53, %v1926_v22  ;;  %v2465_v22 = vld [vmem:[#allocation8 + $0xc0] sm:$0xff]  ;;  %v2471_v53 = vld [vmem:[#allocation8 + $0xf0] sm:$0xff] }
 0x444   :  { %v2136_v44 = vrot.slane %v6919_v41, %v6367_v38  ;;  %1930 = vst.msk [vmem:[#allocation9 + $0x1] ss:$8 sm:$0x3] %vm6691_vm2, %v6919_v41  ;;  %v6928_v14 = vrot.slane %v6919_v41, %v6384_v52 }
 0x446   :  { %2203 = vmatprep.mubr.f32.mxu0 %v2136_v44  ;;  %2274 = vmatprep.mubr.f32.mxu1 %v2136_v44 }
 0x447   :  { %2204 = vmatmul.mubr.f32.vlgmr.msra.gmra.mrb[12].mxu0 %v6928_v14  ;;  %2275 = vmatmul.mubr.f32.vlgmr.msra.gmra.mrb[14].mxu1 %v6928_v14 }
 0x448   :  { %5116 = vmatpush1.bf16.msra.mxu0 %v6706_v42  ;;  %2345 = vmatprep.mubr.f32.mxu0 %v2136_v44  ;;  %v2079_v42 = vld [vmem:[#allocation8 + $0x478] sm:$0xff] }
 0x449   :  { %5118 = vmatprep.subr.bf16.mxu0 %v6708_v28  ;;  %v6952_v28 = vpack.c.bf16 %v2079_v42, %v2073_v43  ;;  %v7812_v44 = vld [vmem:[#allocation22_spill] sm:$0xff]  ;;  %v7022_v42 = vpack.c.bf16 %v2471_v53, %v2465_v22  ;;  %v2543_v22 = vld [vmem:[#allocation8 + $0x330] sm:$0xff] }
 0x44a   :  { %v2484_v43 = vld [vmem:[#allocation8 + $0x158] sm:$0xff] }
 0x44c   :  { %5120 = vmatpush1.bf16.msra.mxu0 %v6713_v0  ;;  %v2072_v0 = vld [vmem:[#allocation8 + $0x440] sm:$0xff] }
 0x44d   :  { %5122 = vmatprep.subr.bf16.mxu0 %v6716_v59  ;;  %v2078_v59 = vld [vmem:[#allocation8 + $0x470] sm:$0xff] }
 0x450   :  { %5124 = vmatpush1.bf16.msra.mxu0 %v6721_v24  ;;  %v2085_v24 = vld [vmem:[#allocation8 + $0x4a8] sm:$0xff] }
 0x451   :  { %5126 = vmatprep.subr.bf16.mxu0 %v6724_v8  ;;  %v2091_v8 = vld [vmem:[#allocation8 + $0x4d8] sm:$0xff] }
 0x454   :  { %5128 = vmatpush1.bf16.msra.mxu0 %v6729_v30  ;;  %v6955_v30 = vpack.c.bf16 %v2078_v59, %v2072_v0  ;;  %v7813_v0 = vld [vmem:[#allocation23_spill] sm:$0xff] }
 0x455   :  { %5130 = vmatprep.subr.bf16.mxu0 %v6732_v39  ;;  %v6958_v39 = vpack.c.bf16 %v2091_v8, %v2085_v24  ;;  %v2477_v24 = vld [vmem:[#allocation8 + $0x120] sm:$0xff]  ;;  %v2483_v8 = vld [vmem:[#allocation8 + $0x150] sm:$0xff] }
 0x458   :  { %5132 = vmatpush1.bf16.msra.mxu0 %v6737_v12  ;;  %v2084_v12 = vld [vmem:[#allocation8 + $0x4a0] sm:$0xff] }
 0x459   :  { %5134 = vmatprep.subr.bf16.mxu0 %v6740_v21  ;;  %v2090_v21 = vld [vmem:[#allocation8 + $0x4d0] sm:$0xff] }
 0x45c   :  { %5136 = vmatpush1.bf16.msra.mxu0 %v6745_v60  ;;  %v2097_v60 = vld [vmem:[#allocation8 + $0x508] sm:$0xff] }
 0x45d   :  { %5138 = vmatprep.subr.bf16.mxu0 %v6748_v9  ;;  %v2103_v9 = vld [vmem:[#allocation8 + $0x538] sm:$0xff] }
 0x460   :  { %5140 = vmatpush1.bf16.msra.mxu0 %v6753_v49  ;;  %v6961_v49 = vpack.c.bf16 %v2090_v21, %v2084_v12  ;;  %v7814_v12 = vld [vmem:[#allocation24_spill] sm:$0xff] }
 0x461   :  { %5142 = vmatprep.subr.bf16.mxu0 %v6756_v1  ;;  %v6964_v1 = vpack.c.bf16 %v2103_v9, %v2097_v60  ;;  %v2490_v21 = vld [vmem:[#allocation8 + $0x188] sm:$0xff]  ;;  %v2496_v60 = vld [vmem:[#allocation8 + $0x1b8] sm:$0xff]  ;;  %v7030_v9 = vpack.c.bf16 %v2483_v8, %v2477_v24  ;;  %v2555_v24 = vld [vmem:[#allocation8 + $0x390] sm:$0xff] }
 0x464   :  { %5144 = vmatpush1.bf16.msra.mxu0 %v6761_v16  ;;  %v2096_v16 = vld [vmem:[#allocation8 + $0x500] sm:$0xff] }
 0x465   :  { %5146 = vmatprep.subr.bf16.mxu0 %v6764_v37  ;;  %v2102_v37 = vld [vmem:[#allocation8 + $0x530] sm:$0xff] }
 0x468   :  { %5148 = vmatpush1.bf16.msra.mxu0 %v6769_v46  ;;  %v2109_v46 = vld [vmem:[#allocation8 + $0x568] sm:$0xff] }
 0x469   :  { %5150 = vmatprep.subr.bf16.mxu0 %v6772_v19  ;;  %v2115_v19 = vld [vmem:[#allocation8 + $0x598] sm:$0xff] }
 0x46c   :  { %5152 = vmatpush1.bf16.msra.mxu0 %v6777_v7  ;;  %v6967_v7 = vpack.c.bf16 %v2102_v37, %v2096_v16  ;;  %v7815_v16 = vld [vmem:[#allocation25_spill] sm:$0xff]  ;;  %v7034_v37 = vpack.c.bf16 %v2496_v60, %v2490_v21  ;;  %v2568_v21 = vld [vmem:[#allocation8 + $0x3f8] sm:$0xff] }
 0x46d   :  { %5154 = vmatprep.subr.bf16.mxu0 %v6780_v40  ;;  %v6970_v40 = vpack.c.bf16 %v2115_v19, %v2109_v46  ;;  %v2489_v46 = vld [vmem:[#allocation8 + $0x180] sm:$0xff]  ;;  %v2495_v19 = vld [vmem:[#allocation8 + $0x1b0] sm:$0xff] }
 0x46e   :  { %v7038_v36 = vpack.c.bf16 %v2495_v19, %v2489_v46  ;;  %v2567_v46 = vld [vmem:[#allocation8 + $0x3f0] sm:$0xff] }
 0x470   :  { %5156 = vmatpush1.bf16.msra.mxu0 %v6785_v47  ;;  %v2108_v47 = vld [vmem:[#allocation8 + $0x560] sm:$0xff] }
 0x471   :  { %5158 = vmatprep.subr.bf16.mxu0 %v6952_v28  ;;  %v6973_v54 = vpack.c.bf16 %v2114_v27, %v2108_v47  ;;  %v7816_v47 = vld [vmem:[#allocation26_spill] sm:$0xff]  ;;  %v2502_v27 = vld [vmem:[#allocation8 + $0x1e8] sm:$0xff] }
 0x472   :  { %v7042_v58 = vpack.c.bf16 %v2508_v5, %v2502_v27  ;;  %v2580_v27 = vld [vmem:[#allocation8 + $0x458] sm:$0xff] }
 0x474   :  { %5160 = vmatpush1.bf16.msra.mxu0 %v6955_v30 }
 0x475   :  { %5162 = vmatprep.subr.bf16.mxu0 %v6958_v39 }
 0x478   :  { %5164 = vmatpush1.bf16.msra.mxu0 %v6961_v49 }
 0x479   :  { %5166 = vmatprep.subr.bf16.mxu0 %v6964_v1 }
 0x47c   :  { %5168 = vmatpush1.bf16.msra.mxu0 %v6967_v7 }
 0x47d   :  { %5170 = vmatprep.subr.bf16.mxu0 %v6970_v40 }
 0x480   :  { %5172 = vmatpush1.bf16.msra.mxu0 %v6973_v54 }
 0x481   :  { %5174 = vmatprep.subr.bf16.mxu0 %v6976_v32 }
 0x484   :  { %5176 = vmatpush1.bf16.msra.mxu0 %v6979_v31 }
 0x485   :  { %5242 = vmatprep.subr.bf16.mxu0 %v6814_v11  ;;  %v7804_v11 = vld [vmem:[#allocation13_spill] sm:$0xff] }
 0x487   :  { %2346 = vmatmul.mubr.f32.vlgmr.msra.gmra.mrb[14].mxu0 %v6928_v14  ;;  %v2478_v14 = vld [vmem:[#allocation8 + $0x128] sm:$0xff] }
 0x488   :  { %5244 = vmatpush1.bf16.msra.mxu0 %v6816_v62  ;;  %v7805_v62 = vld [vmem:[#allocation15_spill] sm:$0xff]  ;;  %v7026_v59 = vpack.c.bf16 %v2484_v43, %v2478_v14  ;;  %v2556_v14 = vld [vmem:[#allocation8 + $0x398] sm:$0xff] }
 0x489   :  { %5246 = vmatprep.subr.bf16.mxu0 %v6818_v10  ;;  %v7806_v10 = vld [vmem:[#allocation16_spill] sm:$0xff] }
 0x48c   :  { %5248 = vmatpush1.bf16.msra.mxu0 %v6822_v48  ;;  %v7807_v48 = vld [vmem:[#allocation17_spill] sm:$0xff] }
 0x48d   :  { %5250 = vmatprep.subr.bf16.mxu0 %v6825_v63  ;;  %v7808_v63 = vld [vmem:[#allocation18_spill] sm:$0xff] }
 0x490   :  { %5252 = vmatpush1.bf16.msra.mxu0 %v6828_v51  ;;  %v2442_v51 = vld [vmem:[#allocation8 + $0x8] sm:$0xff] }
 0x491   :  { %5254 = vmatprep.subr.bf16.mxu0 %v6831_v17  ;;  %v2448_v17 = vld [vmem:[#allocation8 + $0x38] sm:$0xff] }
 0x494   :  { %5256 = vmatpush1.bf16.msra.mxu0 %v6834_v29  ;;  %v2441_v29 = vld [vmem:[#allocation8] sm:$0xff] }
 0x495   :  { %5258 = vmatprep.subr.bf16.mxu0 %v6837_v61  ;;  %v7809_v61 = vld [vmem:[#allocation19_spill] sm:$0xff] }
 0x498   :  { %5260 = vmatpush1.bf16.msra.mxu0 %v6840_v33  ;;  %v5177_v33 = vpack.c.bf16 %v2448_v17, %v2442_v51  ;;  %v2513_v17 = vld [vmem:[#allocation8 + $0x240] sm:$0xff] }
 0x499   :  { %5262 = vmatprep.subr.bf16.mxu0 %v6843_v15  ;;  %v2447_v15 = vld [vmem:[#allocation8 + $0x30] sm:$0xff] }
 0x49a   :  { %5178 = vmatprep.subr.bf16.mxu1 %v5177_v33 }
 0x49c   :  { %5264 = vmatpush1.bf16.msra.mxu0 %v6846_v45  ;;  %v2454_v45 = vld [vmem:[#allocation8 + $0x68] sm:$0xff] }
 0x49d   :  { %5266 = vmatprep.subr.bf16.mxu0 %v6849_v50  ;;  %v2460_v50 = vld [vmem:[#allocation8 + $0x98] sm:$0xff] }
 0x4a0   :  { %5268 = vmatpush1.bf16.msra.mxu0 %v6852_v20  ;;  %v7810_v20 = vld [vmem:[#allocation20_spill] sm:$0xff] }
 0x4a1   :  { %5270 = vmatprep.subr.bf16.mxu0 %v6855_v13  ;;  %v7009_v13 = vpack.c.bf16 %v2447_v15, %v2441_v29  ;;  %v2519_v29 = vld [vmem:[#allocation8 + $0x270] sm:$0xff]  ;;  %v2532_v15 = vld [vmem:[#allocation8 + $0x2d8] sm:$0xff] }
 0x4a3   :  { %5180 = vmatpush1.bf16.msra.mxu1 %v7009_v13 }
 0x4a4   :  { %5272 = vmatpush1.bf16.msra.mxu0 %v6858_v6  ;;  %v7011_v6 = vpack.c.bf16 %v2460_v50, %v2454_v45  ;;  %v7051_v45 = vpack.c.bf16 %v2519_v29, %v2513_v17  ;;  %v2525_v50 = vld [vmem:[#allocation8 + $0x2a0] sm:$0xff] }
 0x4a5   :  { %5274 = vmatprep.subr.bf16.mxu0 %v6862_v34  ;;  %v2453_v34 = vld [vmem:[#allocation8 + $0x60] sm:$0xff] }
 0x4a6   :  { %5182 = vmatprep.subr.bf16.mxu1 %v7011_v6  ;;  %v2585_v29 = vld [vmem:[#allocation8 + $0x480] sm:$0xff] }
 0x4a8   :  { %5276 = vmatpush1.bf16.msra.mxu0 %v6864_v56  ;;  %v2459_v56 = vld [vmem:[#allocation8 + $0x90] sm:$0xff] }
 0x4a9   :  { %5278 = vmatprep.subr.bf16.mxu0 %v7804_v11  ;;  %v7014_v25 = vpack.c.bf16 %v2459_v56, %v2453_v34  ;;  %v2501_v11 = vld [vmem:[#allocation8 + $0x1e0] sm:$0xff]  ;;  %v2538_v34 = vld [vmem:[#allocation8 + $0x308] sm:$0xff]  ;;  %v2544_v56 = vld [vmem:[#allocation8 + $0x338] sm:$0xff] }
 0x4aa   :  { %v7060_v18 = vpack.c.bf16 %v2544_v56, %v2538_v34  ;;  %v2597_v34 = vld [vmem:[#allocation8 + $0x4e0] sm:$0xff] }
 0x4ab   :  { %5184 = vmatpush1.bf16.msra.mxu1 %v7014_v25 }
 0x4ac   :  { %5280 = vmatpush1.bf16.msra.mxu0 %v7805_v62  ;;  %5186 = vmatprep.subr.bf16.mxu1 %v7018_v2  ;;  %v2507_v62 = vld [vmem:[#allocation8 + $0x210] sm:$0xff] }
 0x4ad   :  { %5282 = vmatprep.subr.bf16.mxu0 %v7806_v10  ;;  %v2514_v10 = vld [vmem:[#allocation8 + $0x248] sm:$0xff] }
 0x4af   :  { %5188 = vmatpush1.bf16.msra.mxu1 %v7022_v42 }
 0x4b0   :  { %5284 = vmatpush1.bf16.msra.mxu0 %v7807_v48  ;;  %5190 = vmatprep.subr.bf16.mxu1 %v7026_v59  ;;  %v2520_v48 = vld [vmem:[#allocation8 + $0x278] sm:$0xff] }
 0x4b1   :  { %5286 = vmatprep.subr.bf16.mxu0 %v7808_v63  ;;  %v7045_v63 = vpack.c.bf16 %v2507_v62, %v2501_v11  ;;  %v7048_v51 = vpack.c.bf16 %v2520_v48, %v2514_v10  ;;  %v2579_v11 = vld [vmem:[#allocation8 + $0x450] sm:$0xff]  ;;  %v2586_v10 = vld [vmem:[#allocation8 + $0x488] sm:$0xff]  ;;  %v2592_v48 = vld [vmem:[#allocation8 + $0x4b8] sm:$0xff] }
 0x4b2   :  { %v7085_v17 = vpack.c.bf16 %v2592_v48, %v2586_v10  ;;  %v2446_v10 = vld [vmem:[#allocation8 + $0x28] sm:$0xff]  ;;  %v2452_v48 = vld [vmem:[#allocation8 + $0x58] sm:$0xff] }
 0x4b3   :  { %5192 = vmatpush1.bf16.msra.mxu1 %v7030_v9 }
 0x4b4   :  { %5288 = vmatpush1.bf16.msra.mxu0 %v7809_v61  ;;  %5194 = vmatprep.subr.bf16.mxu1 %v7034_v37  ;;  %v2526_v61 = vld [vmem:[#allocation8 + $0x2a8] sm:$0xff] }
 0x4b5   :  { %5290 = vmatprep.subr.bf16.mxu0 %v7810_v20  ;;  %v2531_v20 = vld [vmem:[#allocation8 + $0x2d0] sm:$0xff] }
 0x4b6   :  { %v7057_v26 = vpack.c.bf16 %v2531_v20, %v2525_v50  ;;  %v2598_v50 = vld [vmem:[#allocation8 + $0x4e8] sm:$0xff]  ;;  %v2604_v20 = vld [vmem:[#allocation8 + $0x518] sm:$0xff] }
 0x4b7   :  { %5196 = vmatpush1.bf16.msra.mxu1 %v7038_v36  ;;  %v7090_v56 = vpack.c.bf16 %v2604_v20, %v2598_v50 }
 0x4b8   :  { %5292 = vmatpush1.bf16.msra.mxu0 %v7811_v23  ;;  %5198 = vmatprep.subr.bf16.mxu1 %v7042_v58  ;;  %v2537_v23 = vld [vmem:[#allocation8 + $0x300] sm:$0xff] }
 0x4b9   :  { %5294 = vmatprep.subr.bf16.mxu0 %v7812_v44  ;;  %v7064_v53 = vpack.c.bf16 %v2543_v22, %v2537_v23  ;;  %v2550_v44 = vld [vmem:[#allocation8 + $0x368] sm:$0xff]  ;;  %v2603_v23 = vld [vmem:[#allocation8 + $0x510] sm:$0xff] }
 0x4ba   :  { %v7067_v43 = vpack.c.bf16 %v2556_v14, %v2550_v44  ;;  %v2610_v22 = vld [vmem:[#allocation8 + $0x548] sm:$0xff]  ;;  %v2616_v44 = vld [vmem:[#allocation8 + $0x578] sm:$0xff]  ;;  %v7093_v14 = vpack.c.bf16 %v2603_v23, %v2597_v34 }
 0x4bb   :  { %5200 = vmatpush1.bf16.msra.mxu1 %v7045_v63 }
 0x4bc   :  { %5296 = vmatpush1.bf16.msra.mxu0 %v7813_v0  ;;  %5202 = vmatprep.subr.bf16.mxu1 %v7048_v51  ;;  %v2549_v0 = vld [vmem:[#allocation8 + $0x360] sm:$0xff] }
 0x4bd   :  { %5298 = vmatprep.subr.bf16.mxu0 %v7814_v12  ;;  %v7069_v8 = vpack.c.bf16 %v2555_v24, %v2549_v0  ;;  %v2562_v12 = vld [vmem:[#allocation8 + $0x3c8] sm:$0xff]  ;;  %v7096_v0 = vpack.c.bf16 %v2616_v44, %v2610_v22  ;;  %v2609_v24 = vld [vmem:[#allocation8 + $0x540] sm:$0xff] }
 0x4be   :  { %v7073_v60 = vpack.c.bf16 %v2568_v21, %v2562_v12  ;;  %v2615_v12 = vld [vmem:[#allocation8 + $0x570] sm:$0xff]  ;;  %v2622_v21 = vld [vmem:[#allocation8 + $0x5a8] sm:$0xff] }
 0x4bf   :  { %5204 = vmatpush1.bf16.msra.mxu1 %v7051_v45 }
 0x4c0   :  { %5300 = vmatpush1.bf16.msra.mxu0 %v7815_v16  ;;  %v2561_v16 = vld [vmem:[#allocation8 + $0x3c0] sm:$0xff] }
 0x4c1   :  { %5302 = vmatprep.subr.bf16.mxu0 %v7816_v47  ;;  %v7075_v19 = vpack.c.bf16 %v2567_v46, %v2561_v16  ;;  %v2574_v47 = vld [vmem:[#allocation8 + $0x428] sm:$0xff]  ;;  %v2628_v16 = vld [vmem:[#allocation8 + $0x5d8] sm:$0xff]  ;;  %v7099_v46 = vpack.c.bf16 %v2615_v12, %v2609_v24 }
 0x4c2   :  { %v7079_v5 = vpack.c.bf16 %v2580_v27, %v2574_v47  ;;  %v7102_v47 = vpack.c.bf16 %v2628_v16, %v2622_v21  ;;  %v2621_v27 = vld [vmem:[#allocation8 + $0x5a0] sm:$0xff]  ;;  %v1934_v24 = vld [vmem:[#allocation2 + $0x2] ss:$8 sm:$0x30] }
 0x4c3   :  { %v1933_v21 = vld [vmem:[#allocation2 + $0x2] ss:$8 sm:$0xf] }
 0x4c4   :  { %5304 = vmatpush1.bf16.msra.mxu0 %v7817_v57  ;;  %v2573_v57 = vld [vmem:[#allocation8 + $0x420] sm:$0xff]  ;;  %7818 = vst [vmem:[#allocation13_spill] sm:$0xff] %v7102_v47  ;;  %v1935_v16 = vor.u32 %v1934_v24, %v1933_v21 }
 0x4c5   :  { %5370 = vmatprep.subr.bf16.mxu0 %v5177_v33  ;;  %v7054_v33 = vpack.c.bf16 %v2532_v15, %v2526_v61  ;;  %v7081_v62 = vpack.c.bf16 %v2579_v11, %v2573_v57  ;;  %v2591_v61 = vld [vmem:[#allocation8 + $0x4b0] sm:$0xff] }
 0x4c6   :  { %v7087_v15 = vpack.c.bf16 %v2591_v61, %v2585_v29  ;;  %v2627_v57 = vld [vmem:[#allocation8 + $0x5d0] sm:$0xff]  ;;  %v7109_v29 = vpack.c.bf16 %v2452_v48, %v2446_v10 }
 0x4c7   :  { %5206 = vmatprep.subr.bf16.mxu1 %v7054_v33  ;;  %v7105_v11 = vpack.c.bf16 %v2627_v57, %v2621_v27 }
 0x4c8   :  { %5208 = vmatpush1.bf16.msra.mxu1 %v7057_v26  ;;  %7820 = vst [vmem:[#allocation16_spill] sm:$0xff] %v7109_v29 }
 0x4c9   :  { %5210 = vmatprep.subr.bf16.mxu1 %v7060_v18  ;;  %7819 = vst [vmem:[#allocation15_spill] sm:$0xff] %v7105_v11 }
 0x4cc   :  { %5212 = vmatpush1.bf16.msra.mxu1 %v7064_v53 }
 0x4cd   :  { %5214 = vmatprep.subr.bf16.mxu1 %v7067_v43 }
 0x4d0   :  { %5216 = vmatpush1.bf16.msra.mxu1 %v7069_v8 }
 0x4d1   :  { %5218 = vmatprep.subr.bf16.mxu1 %v7073_v60 }
 0x4d4   :  { %5220 = vmatpush1.bf16.msra.mxu1 %v7075_v19 }
 0x4d5   :  { %5222 = vmatprep.subr.bf16.mxu1 %v7079_v5 }
 0x4d8   :  { %5224 = vmatpush1.bf16.msra.mxu1 %v7081_v62 }
 0x4d9   :  { %5226 = vmatprep.subr.bf16.mxu1 %v7085_v17 }
 0x4dc   :  { %5228 = vmatpush1.bf16.msra.mxu1 %v7087_v15 }
 0x4dd   :  { %5230 = vmatprep.subr.bf16.mxu1 %v7090_v56 }
 0x4e0   :  { %5232 = vmatpush1.bf16.msra.mxu1 %v7093_v14 }
 0x4e1   :  { %5234 = vmatprep.subr.bf16.mxu1 %v7096_v0 }
 0x4e4   :  { %5236 = vmatpush1.bf16.msra.mxu1 %v7099_v46 }
 0x4e5   :  { %5238 = vmatprep.subr.bf16.mxu1 %v7102_v47 }
 0x4e8   :  { %5240 = vmatpush1.bf16.msra.mxu1 %v7105_v11 }
 0x4e9   :  { %5306 = vmatprep.subr.bf16.mxu1 %v7109_v29  ;;  %v2378_v29 = vrot.slane %v1935_v16, 2 }
 0x51a   :  { %v2205_v61 = vpop.f32.mrb[12].mxu0  ;;  %v2276_v50 = vpop.f32.mrb[14].mxu1 }
 0x51b   :  { %v2207_v20 = vpop.f32.mrb[13].mxu0  ;;  %v2278_v34 = vpop.f32.mrb[15].mxu1 }
 0x51c   :  { %v2354_v23 = vcombine.low %v2205_v61, %v2207_v20  ;;  %v2382_v22 = vcombine.low %v2276_v50, %v2278_v34 }
 0x51e   :  { %v2361_v44 = vrot.slane %v2354_v23, %v6668_v3  ;;  %v2389_v57 = vrot.slane %v2382_v22, %v6668_v3 }
 0x520   :  { %v2368_v12 = vrot.slane %v2361_v44, %v6668_v3  ;;  %v2396_v48 = vrot.slane %v2389_v57, %v6668_v3 }
 0x522   :  { %v2370_v27 = vadd.f32 %v2368_v12, %v1935_v16  ;;  %v2398_v11 = vadd.f32 %v2396_v48, %v2378_v29  ;;  %v2426_v29 = vrot.slane %v1935_v16, 4 }
 0x524   :  { %v4575_v10 = vmul.f32 -1.442695, %v2370_v27  ;;  %v4576_v31 = vmul.f32 -1.442695, %v2398_v11 }
 0x526   :  { %6123 = vpow2.f32 %v4575_v10 }
 0x527   :  { %6125 = vpow2.f32 %v4576_v31 }
 0x530   :  { %v6124_v47 = vpop.eup %6123 }
 0x531   :  { %v2374_v61 = vadd.f32 1.0, %v6124_v47  ;;  %v6126_v44 = vpop.eup %6125 }
 0x532   :  { %v2402_v22 = vadd.f32 1.0, %v6126_v44  ;;  %v2464_v44 = vld [vmem:[#allocation8 + $0xb8] sm:$0xff] }
 0x533   :  { %6127 = vrcp.f32 %v2374_v61 }
 0x534   :  { %6129 = vrcp.f32 %v2402_v22 }
 0x53d   :  { %v6128_v27 = vpop.eup %6127 }
 0x53e   :  { %v6130_v47 = vpop.eup %6129 }
 0x53f   :  { %v2430_v57 = vsub.f32 1.0, %v6130_v47  ;;  %v2432_v61 = vmul.f32 %v6130_v47, %v6919_v41  ;;  %v2469_v47 = vld [vmem:[#allocation8 + $0xe0] sm:$0xff] }
 0x55a   :  { %v2347_v50 = vpop.f32.mrb[14].mxu0 }
 0x55b   :  { %v2405_v20 = vadd.f32 %v2347_v50, %v7802_v4  ;;  %v2349_v34 = vpop.f32.mrb[15].mxu0  ;;  %v2445_v50 = vld [vmem:[#allocation8 + $0x20] sm:$0xff] }
 0x55c   :  { %v2406_v23 = vadd.f32 %v2349_v34, %v6679_v35  ;;  %v2451_v34 = vld [vmem:[#allocation8 + $0x50] sm:$0xff] }
 0x55d   :  { %v7132_v22 = vpack.c.bf16 %v2451_v34, %v2445_v50  ;;  %v2481_v34 = vld [vmem:[#allocation8 + $0x140] sm:$0xff] }
 0x55e   :  { %v2409_v24 = vcombine.low %v2405_v20, %v2406_v23  ;;  %v2458_v23 = vld [vmem:[#allocation8 + $0x88] sm:$0xff] }
 0x55f   :  { %v7134_v41 = vpack.c.bf16 %v2464_v44, %v2458_v23  ;;  %v2487_v23 = vld [vmem:[#allocation8 + $0x170] sm:$0xff]  ;;  %v2494_v44 = vld [vmem:[#allocation8 + $0x1a8] sm:$0xff] }
 0x560   :  { %v2416_v12 = vrot.slane %v2409_v24, %v6668_v3 }
 0x562   :  { %v2423_v21 = vrot.slane %v2416_v12, %v6668_v3  ;;  %v2457_v12 = vld [vmem:[#allocation8 + $0x80] sm:$0xff] }
 0x564   :  { %v2425_v11 = vmul.f32 %v6128_v27, %v2423_v21  ;;  %v2463_v21 = vld [vmem:[#allocation8 + $0xb0] sm:$0xff]  ;;  %v2470_v27 = vld [vmem:[#allocation8 + $0xe8] sm:$0xff] }
 0x566   :  { %v2428_v31 = vadd.f32 %v2426_v29, %v2425_v11  ;;  %v2476_v11 = vld [vmem:[#allocation8 + $0x118] sm:$0xff]  ;;  %v7139_v29 = vpack.c.bf16 %v2463_v21, %v2457_v12  ;;  %v2493_v12 = vld [vmem:[#allocation8 + $0x1a0] sm:$0xff]  ;;  %v2499_v21 = vld [vmem:[#allocation8 + $0x1d0] sm:$0xff] }
 0x568   :  { %6131 = vtanh.f32 %v2428_v31  ;;  %v7142_v31 = vpack.c.bf16 %v2476_v11, %v2470_v27  ;;  %v2506_v27 = vld [vmem:[#allocation8 + $0x208] sm:$0xff]  ;;  %v2512_v11 = vld [vmem:[#allocation8 + $0x238] sm:$0xff] }
 0x572   :  { %v6132_v10 = vpop.eup %6131 }
 0x573   :  { %v2431_v48 = vmul.f32 %v6132_v10, %v2430_v57  ;;  %v2475_v57 = vld [vmem:[#allocation8 + $0x110] sm:$0xff]  ;;  %v2482_v10 = vld [vmem:[#allocation8 + $0x148] sm:$0xff] }
 0x575   :  { %v7121_v20 = vadd.f32 %v2432_v61, %v2431_v48  ;;  %v2488_v48 = vld [vmem:[#allocation8 + $0x178] sm:$0xff]  ;;  %v7147_v61 = vpack.c.bf16 %v2475_v57, %v2469_v47  ;;  %v2505_v47 = vld [vmem:[#allocation8 + $0x200] sm:$0xff]  ;;  %v2511_v57 = vld [vmem:[#allocation8 + $0x230] sm:$0xff] }
 0x576   :  { %v7150_v50 = vpack.c.bf16 %v2488_v48, %v2482_v10  ;;  %v2518_v10 = vld [vmem:[#allocation8 + $0x268] sm:$0xff]  ;;  %v2524_v48 = vld [vmem:[#allocation8 + $0x298] sm:$0xff] }
 0x577   :  { %v2641_v24 = vrot.slane %v7121_v20, %v6367_v38  ;;  %2435 = vst.msk [vmem:[#allocation9 + $0x2] ss:$8 sm:$0x3] %vm6691_vm2, %v7121_v20  ;;  %v7130_v16 = vrot.slane %v7121_v20, %v6384_v52 }
 0x579   :  { %2708 = vmatprep.mubr.f32.mxu1 %v2641_v24  ;;  %2779 = vmatprep.mubr.f32.mxu0 %v2641_v24 }
 0x57a   :  { %2709 = vmatmul.mubr.f32.vlgmr.msra.gmra.mrb[16].mxu1 %v7130_v16  ;;  %2780 = vmatmul.mubr.f32.vlgmr.msra.gmra.mrb[16].mxu0 %v7130_v16 }
 0x57b   :  { %5308 = vmatpush1.bf16.msra.mxu1 %v7132_v22  ;;  %2850 = vmatprep.mubr.f32.mxu1 %v2641_v24  ;;  %v2500_v24 = vld [vmem:[#allocation8 + $0x1d8] sm:$0xff] }
 0x57c   :  { %5310 = vmatprep.subr.bf16.mxu1 %v7134_v41  ;;  %5372 = vmatpush1.bf16.msra.mxu0 %v7009_v13  ;;  %v7155_v13 = vpack.c.bf16 %v2487_v23, %v2481_v34  ;;  %v2517_v34 = vld [vmem:[#allocation8 + $0x260] sm:$0xff]  ;;  %v2523_v23 = vld [vmem:[#allocation8 + $0x290] sm:$0xff] }
 0x57d   :  { %5374 = vmatprep.subr.bf16.mxu0 %v7011_v6  ;;  %v7158_v6 = vpack.c.bf16 %v2500_v24, %v2494_v44  ;;  %v2530_v44 = vld [vmem:[#allocation8 + $0x2c8] sm:$0xff]  ;;  %v2536_v24 = vld [vmem:[#allocation8 + $0x2f8] sm:$0xff] }
 0x57f   :  { %5312 = vmatpush1.bf16.msra.mxu1 %v7139_v29 }
 0x580   :  { %5314 = vmatprep.subr.bf16.mxu1 %v7142_v31  ;;  %5376 = vmatpush1.bf16.msra.mxu0 %v7014_v25  ;;  %v7163_v25 = vpack.c.bf16 %v2499_v21, %v2493_v12  ;;  %v2529_v12 = vld [vmem:[#allocation8 + $0x2c0] sm:$0xff]  ;;  %v2535_v21 = vld [vmem:[#allocation8 + $0x2f0] sm:$0xff] }
 0x581   :  { %5378 = vmatprep.subr.bf16.mxu0 %v7018_v2  ;;  %v7166_v2 = vpack.c.bf16 %v2512_v11, %v2506_v27  ;;  %v2542_v27 = vld [vmem:[#allocation8 + $0x328] sm:$0xff]  ;;  %v2548_v11 = vld [vmem:[#allocation8 + $0x358] sm:$0xff] }
 0x583   :  { %5316 = vmatpush1.bf16.msra.mxu1 %v7147_v61 }
 0x584   :  { %5318 = vmatprep.subr.bf16.mxu1 %v7150_v50  ;;  %5380 = vmatpush1.bf16.msra.mxu0 %v7022_v42  ;;  %v7171_v42 = vpack.c.bf16 %v2511_v57, %v2505_v47  ;;  %v2541_v47 = vld [vmem:[#allocation8 + $0x320] sm:$0xff]  ;;  %v2547_v57 = vld [vmem:[#allocation8 + $0x350] sm:$0xff] }
 0x585   :  { %5382 = vmatprep.subr.bf16.mxu0 %v7026_v59  ;;  %v7174_v59 = vpack.c.bf16 %v2524_v48, %v2518_v10  ;;  %v2554_v10 = vld [vmem:[#allocation8 + $0x388] sm:$0xff]  ;;  %v2560_v48 = vld [vmem:[#allocation8 + $0x3b8] sm:$0xff] }
 0x587   :  { %5320 = vmatpush1.bf16.msra.mxu1 %v7155_v13 }
 0x588   :  { %5322 = vmatprep.subr.bf16.mxu1 %v7158_v6  ;;  %5384 = vmatpush1.bf16.msra.mxu0 %v7030_v9  ;;  %v7179_v9 = vpack.c.bf16 %v2523_v23, %v2517_v34  ;;  %v2553_v34 = vld [vmem:[#allocation8 + $0x380] sm:$0xff]  ;;  %v2559_v23 = vld [vmem:[#allocation8 + $0x3b0] sm:$0xff] }
 0x589   :  { %5386 = vmatprep.subr.bf16.mxu0 %v7034_v37  ;;  %v7182_v37 = vpack.c.bf16 %v2536_v24, %v2530_v44  ;;  %v2566_v44 = vld [vmem:[#allocation8 + $0x3e8] sm:$0xff]  ;;  %v2572_v24 = vld [vmem:[#allocation8 + $0x418] sm:$0xff] }
 0x58b   :  { %5324 = vmatpush1.bf16.msra.mxu1 %v7163_v25 }
 0x58c   :  { %5326 = vmatprep.subr.bf16.mxu1 %v7166_v2  ;;  %5388 = vmatpush1.bf16.msra.mxu0 %v7038_v36  ;;  %v7187_v36 = vpack.c.bf16 %v2535_v21, %v2529_v12  ;;  %v2565_v12 = vld [vmem:[#allocation8 + $0x3e0] sm:$0xff]  ;;  %v2571_v21 = vld [vmem:[#allocation8 + $0x410] sm:$0xff] }
 0x58d   :  { %5390 = vmatprep.subr.bf16.mxu0 %v7042_v58  ;;  %v7190_v58 = vpack.c.bf16 %v2548_v11, %v2542_v27  ;;  %v2984_v11 = vld [vmem:[#allocation8 + $0x130] sm:$0xff] }
 0x58f   :  { %5328 = vmatpush1.bf16.msra.mxu1 %v7171_v42 }
 0x590   :  { %5330 = vmatprep.subr.bf16.mxu1 %v7174_v59  ;;  %5392 = vmatpush1.bf16.msra.mxu0 %v7045_v63  ;;  %v7195_v63 = vpack.c.bf16 %v2547_v57, %v2541_v47  ;;  %v2990_v47 = vld [vmem:[#allocation8 + $0x160] sm:$0xff]  ;;  %v2997_v57 = vld [vmem:[#allocation8 + $0x198] sm:$0xff] }
 0x591   :  { %5394 = vmatprep.subr.bf16.mxu0 %v7048_v51  ;;  %v7198_v51 = vpack.c.bf16 %v2560_v48, %v2554_v10  ;;  %v3003_v10 = vld [vmem:[#allocation8 + $0x1c8] sm:$0xff]  ;;  %v7260_v48 = vpack.c.bf16 %v2990_v47, %v2984_v11  ;;  %v3044_v47 = vld [vmem:[#allocation8 + $0x310] sm:$0xff] }
 0x593   :  { %5332 = vmatpush1.bf16.msra.mxu1 %v7179_v9 }
 0x594   :  { %5334 = vmatprep.subr.bf16.mxu1 %v7182_v37  ;;  %5396 = vmatpush1.bf16.msra.mxu0 %v7051_v45  ;;  %v7203_v45 = vpack.c.bf16 %v2559_v23, %v2553_v34  ;;  %v7263_v34 = vpack.c.bf16 %v3003_v10, %v2997_v57  ;;  %v2996_v23 = vld [vmem:[#allocation8 + $0x190] sm:$0xff]  ;;  %v3050_v57 = vld [vmem:[#allocation8 + $0x340] sm:$0xff] }
 0x595   :  { %5398 = vmatprep.subr.bf16.mxu0 %v7054_v33  ;;  %v7206_v33 = vpack.c.bf16 %v2572_v24, %v2566_v44  ;;  %v3002_v44 = vld [vmem:[#allocation8 + $0x1c0] sm:$0xff]  ;;  %v3009_v24 = vld [vmem:[#allocation8 + $0x1f8] sm:$0xff]  ;;  %v7290_v10 = vpack.c.bf16 %v3050_v57, %v3044_v47 }
 0x596   :  { %v3086_v47 = vld [vmem:[#allocation8 + $0x460] sm:$0xff] }
 0x597   :  { %5336 = vmatpush1.bf16.msra.mxu1 %v7187_v36  ;;  %7825 = vst [vmem:[#allocation17_spill] sm:$0xff] %v7290_v10 }
 0x598   :  { %5338 = vmatprep.subr.bf16.mxu1 %v7190_v58  ;;  %5400 = vmatpush1.bf16.msra.mxu0 %v7057_v26  ;;  %v7211_v26 = vpack.c.bf16 %v2571_v21, %v2565_v12  ;;  %v3015_v12 = vld [vmem:[#allocation8 + $0x228] sm:$0xff]  ;;  %v7266_v21 = vpack.c.bf16 %v3002_v44, %v2996_v23  ;;  %v3057_v23 = vld [vmem:[#allocation8 + $0x378] sm:$0xff] }
 0x599   :  { %5402 = vmatprep.subr.bf16.mxu0 %v7060_v18  ;;  %v3063_v44 = vld [vmem:[#allocation8 + $0x3a8] sm:$0xff] }
 0x59b   :  { %5340 = vmatpush1.bf16.msra.mxu1 %v7195_v63 }
 0x59c   :  { %5342 = vmatprep.subr.bf16.mxu1 %v7198_v51  ;;  %5404 = vmatpush1.bf16.msra.mxu0 %v7064_v53  ;;  %v2961_v53 = vld [vmem:[#allocation8 + $0x78] sm:$0xff] }
 0x59d   :  { %5406 = vmatprep.subr.bf16.mxu0 %v7067_v43 }
 0x59f   :  { %5344 = vmatpush1.bf16.msra.mxu1 %v7203_v45 }
 0x5a0   :  { %5346 = vmatprep.subr.bf16.mxu1 %v7206_v33  ;;  %5408 = vmatpush1.bf16.msra.mxu0 %v7069_v8 }
 0x5a1   :  { %5410 = vmatprep.subr.bf16.mxu0 %v7073_v60  ;;  %v2960_v60 = vld [vmem:[#allocation8 + $0x70] sm:$0xff] }
 0x5a3   :  { %5348 = vmatpush1.bf16.msra.mxu1 %v7211_v26 }
 0x5a4   :  { %5350 = vmatprep.subr.bf16.mxu1 %v6952_v28  ;;  %5412 = vmatpush1.bf16.msra.mxu0 %v7075_v19  ;;  %v7821_v28 = vld [vmem:[#allocation13_spill] sm:$0xff]  ;;  %v2966_v19 = vld [vmem:[#allocation8 + $0xa0] sm:$0xff] }
 0x5a5   :  { %5414 = vmatprep.subr.bf16.mxu0 %v7079_v5  ;;  %v2973_v5 = vld [vmem:[#allocation8 + $0xd8] sm:$0xff] }
 0x5a7   :  { %5352 = vmatpush1.bf16.msra.mxu1 %v6955_v30  ;;  %v7822_v30 = vld [vmem:[#allocation14_spill] sm:$0xff] }
 0x5a8   :  { %5354 = vmatprep.subr.bf16.mxu1 %v6958_v39  ;;  %5416 = vmatpush1.bf16.msra.mxu0 %v7081_v62  ;;  %v7823_v39 = vld [vmem:[#allocation15_spill] sm:$0xff]  ;;  %v2979_v62 = vld [vmem:[#allocation8 + $0x108] sm:$0xff] }
 0x5a9   :  { %5418 = vmatprep.subr.bf16.mxu0 %v7085_v17  ;;  %v7248_v17 = vpack.c.bf16 %v2966_v19, %v2960_v60  ;;  %v3039_v60 = vld [vmem:[#allocation8 + $0x2e8] sm:$0xff] }
 0x5ab   :  { %5356 = vmatpush1.bf16.msra.mxu1 %v6961_v49  ;;  %v7824_v49 = vld [vmem:[#allocation16_spill] sm:$0xff] }
 0x5ac   :  { %5358 = vmatprep.subr.bf16.mxu1 %v6964_v1  ;;  %5420 = vmatpush1.bf16.msra.mxu0 %v7087_v15  ;;  %v2949_v1 = vld [vmem:[#allocation8 + $0x18] sm:$0xff]  ;;  %v7251_v15 = vpack.c.bf16 %v2979_v62, %v2973_v5  ;;  %v3032_v62 = vld [vmem:[#allocation8 + $0x2b0] sm:$0xff] }
 0x5ad   :  { %5422 = vmatprep.subr.bf16.mxu0 %v7090_v56  ;;  %v2972_v56 = vld [vmem:[#allocation8 + $0xd0] sm:$0xff] }
 0x5af   :  { %5360 = vmatpush1.bf16.msra.mxu1 %v6967_v7  ;;  %v2955_v7 = vld [vmem:[#allocation8 + $0x48] sm:$0xff] }
 0x5b0   :  { %5362 = vmatprep.subr.bf16.mxu1 %v6970_v40  ;;  %5424 = vmatpush1.bf16.msra.mxu0 %v7093_v14  ;;  %v2948_v40 = vld [vmem:[#allocation8 + $0x10] sm:$0xff]  ;;  %v7240_v18 = vpack.c.bf16 %v2955_v7, %v2949_v1  ;;  %v2978_v14 = vld [vmem:[#allocation8 + $0x100] sm:$0xff]  ;;  %v3027_v1 = vld [vmem:[#allocation8 + $0x288] sm:$0xff] }
 0x5b1   :  { %5426 = vmatprep.subr.bf16.mxu0 %v7096_v0  ;;  %v2985_v0 = vld [vmem:[#allocation8 + $0x138] sm:$0xff] }
 0x5b3   :  { %5364 = vmatpush1.bf16.msra.mxu1 %v6973_v54  ;;  %v2954_v54 = vld [vmem:[#allocation8 + $0x40] sm:$0xff] }
 0x5b4   :  { %5366 = vmatprep.subr.bf16.mxu1 %v6976_v32  ;;  %5428 = vmatpush1.bf16.msra.mxu0 %v7099_v46  ;;  %v2967_v32 = vld [vmem:[#allocation8 + $0xa8] sm:$0xff]  ;;  %v7242_v43 = vpack.c.bf16 %v2954_v54, %v2948_v40  ;;  %v3020_v54 = vld [vmem:[#allocation8 + $0x250] sm:$0xff] }
 0x5b5   :  { %5430 = vmatprep.subr.bf16.mxu0 %v7821_v28  ;;  %v7244_v8 = vpack.c.bf16 %v2967_v32, %v2961_v53  ;;  %v2991_v46 = vld [vmem:[#allocation8 + $0x168] sm:$0xff]  ;;  %v7269_v28 = vpack.c.bf16 %v3015_v12, %v3009_v24  ;;  %v3026_v53 = vld [vmem:[#allocation8 + $0x280] sm:$0xff]  ;;  %v3033_v32 = vld [vmem:[#allocation8 + $0x2b8] sm:$0xff]  ;;  %v7294_v24 = vpack.c.bf16 %v3063_v44, %v3057_v23 }
 0x5b6   :  { %v7257_v27 = vpack.c.bf16 %v2991_v46, %v2985_v0  ;;  %v7278_v19 = vpack.c.bf16 %v3026_v53, %v3020_v54  ;;  %v7281_v5 = vpack.c.bf16 %v3039_v60, %v3033_v32  ;;  %v3045_v0 = vld [vmem:[#allocation8 + $0x318] sm:$0xff]  ;;  %v3051_v46 = vld [vmem:[#allocation8 + $0x348] sm:$0xff]  ;;  %v3056_v12 = vld [vmem:[#allocation8 + $0x370] sm:$0xff] }
 0x5b7   :  { %5368 = vmatpush1.bf16.msra.mxu1 %v7822_v30  ;;  %v3008_v30 = vld [vmem:[#allocation8 + $0x1f0] sm:$0xff]  ;;  %v7288_v11 = vpack.c.bf16 %v3051_v46, %v3045_v0  ;;  %7826 = vst [vmem:[#allocation18_spill] sm:$0xff] %v7294_v24  ;;  %v3074_v32 = vld [vmem:[#allocation8 + $0x400] sm:$0xff]  ;;  %v3093_v23 = vld [vmem:[#allocation8 + $0x498] sm:$0xff] }
 0x5b8   :  { %5432 = vmatpush1.bf16.msra.mxu0 %v7823_v39  ;;  %5434 = vmatprep.subr.bf16.mxu1 %v7240_v18  ;;  %v3014_v39 = vld [vmem:[#allocation8 + $0x220] sm:$0xff]  ;;  %v3068_v53 = vld [vmem:[#allocation8 + $0x3d0] sm:$0xff]  ;;  %v3099_v44 = vld [vmem:[#allocation8 + $0x4c8] sm:$0xff] }
 0x5b9   :  { %5498 = vmatprep.subr.bf16.mxu0 %v7824_v49  ;;  %v3021_v49 = vld [vmem:[#allocation8 + $0x258] sm:$0xff]  ;;  %v7272_v7 = vpack.c.bf16 %v3014_v39, %v3008_v30  ;;  %v3062_v30 = vld [vmem:[#allocation8 + $0x3a0] sm:$0xff]  ;;  %v7302_v60 = vpack.c.bf16 %v3074_v32, %v3068_v53  ;;  %v3080_v46 = vld [vmem:[#allocation8 + $0x430] sm:$0xff] }
 0x5ba   :  { %2851 = vmatmul.mubr.f32.vlgmr.msra.gmra.mrb[18].mxu1 %v7130_v16  ;;  %v7254_v16 = vpack.c.bf16 %v2978_v14, %v2972_v56  ;;  %v7275_v40 = vpack.c.bf16 %v3027_v1, %v3021_v49  ;;  %v3038_v56 = vld [vmem:[#allocation8 + $0x2e0] sm:$0xff]  ;;  %v7296_v39 = vpack.c.bf16 %v3062_v30, %v3056_v12  ;;  %v3069_v49 = vld [vmem:[#allocation8 + $0x3d8] sm:$0xff]  ;;  %v3075_v1 = vld [vmem:[#allocation8 + $0x408] sm:$0xff]  ;;  %v7308_v57 = vpack.c.bf16 %v3086_v47, %v3080_v46 }
 0x5bb   :  { %5436 = vmatpush1.bf16.msra.mxu1 %v7242_v43  ;;  %v7284_v14 = vpack.c.bf16 %v3038_v56, %v3032_v62  ;;  %v7300_v54 = vpack.c.bf16 %v3075_v1, %v3069_v49  ;;  %7829 = vst [vmem:[#allocation21_spill] sm:$0xff] %v7302_v60  ;;  %v3081_v62 = vld [vmem:[#allocation8 + $0x438] sm:$0xff]  ;;  %v3087_v56 = vld [vmem:[#allocation8 + $0x468] sm:$0xff]  ;;  %v7312_v12 = vpack.c.bf16 %v3099_v44, %v3093_v23  ;;  %v3092_v30 = vld [vmem:[#allocation8 + $0x490] sm:$0xff] }
 0x5bc   :  { %5438 = vmatprep.subr.bf16.mxu1 %v7244_v8  ;;  %7827 = vst [vmem:[#allocation19_spill] sm:$0xff] %v7296_v39  ;;  %v7306_v0 = vpack.c.bf16 %v3087_v56, %v3081_v62  ;;  %7831 = vst [vmem:[#allocation23_spill] sm:$0xff] %v7308_v57  ;;  %v3098_v49 = vld [vmem:[#allocation8 + $0x4c0] sm:$0xff]  ;;  %v3105_v1 = vld [vmem:[#allocation8 + $0x4f8] sm:$0xff] }
 0x5bd   :  { %7828 = vst [vmem:[#allocation20_spill] sm:$0xff] %v7300_v54  ;;  %7832 = vst [vmem:[#allocation24_spill] sm:$0xff] %v7312_v12  ;;  %v7314_v53 = vpack.c.bf16 %v3098_v49, %v3092_v30  ;;  %v3111_v32 = vld [vmem:[#allocation8 + $0x528] sm:$0xff]  ;;  %v3104_v62 = vld [vmem:[#allocation8 + $0x4f0] sm:$0xff] }
 0x5be   :  { %7830 = vst [vmem:[#allocation22_spill] sm:$0xff] %v7306_v0  ;;  %v3110_v56 = vld [vmem:[#allocation8 + $0x520] sm:$0xff]  ;;  %v7317_v46 = vpack.c.bf16 %v3111_v32, %v3105_v1  ;;  %v3117_v47 = vld [vmem:[#allocation8 + $0x558] sm:$0xff]  ;;  %v3116_v44 = vld [vmem:[#allocation8 + $0x550] sm:$0xff] }
 0x5bf   :  { %5440 = vmatpush1.bf16.msra.mxu1 %v7248_v17  ;;  %7833 = vst [vmem:[#allocation25_spill] sm:$0xff] %v7314_v53  ;;  %v3122_v30 = vld [vmem:[#allocation8 + $0x580] sm:$0xff]  ;;  %v3129_v49 = vld [vmem:[#allocation8 + $0x5b8] sm:$0xff]  ;;  %v3128_v32 = vld [vmem:[#allocation8 + $0x5b0] sm:$0xff] }
 0x5c0   :  { %5442 = vmatprep.subr.bf16.mxu1 %v7251_v15  ;;  %7834 = vst [vmem:[#allocation26_spill] sm:$0xff] %v7317_v46 }
 0x5c3   :  { %5444 = vmatpush1.bf16.msra.mxu1 %v7254_v16 }
 0x5c4   :  { %5446 = vmatprep.subr.bf16.mxu1 %v7257_v27 }
 0x5c7   :  { %5448 = vmatpush1.bf16.msra.mxu1 %v7260_v48 }
 0x5c8   :  { %5450 = vmatprep.subr.bf16.mxu1 %v7263_v34 }
 0x5cb   :  { %5452 = vmatpush1.bf16.msra.mxu1 %v7266_v21 }
 0x5cc   :  { %5454 = vmatprep.subr.bf16.mxu1 %v7269_v28 }
 0x5cf   :  { %5456 = vmatpush1.bf16.msra.mxu1 %v7272_v7 }
 0x5d0   :  { %5458 = vmatprep.subr.bf16.mxu1 %v7275_v40 }
 0x5d3   :  { %5460 = vmatpush1.bf16.msra.mxu1 %v7278_v19 }
 0x5d4   :  { %5462 = vmatprep.subr.bf16.mxu1 %v7281_v5 }
 0x5d7   :  { %5464 = vmatpush1.bf16.msra.mxu1 %v7284_v14 }
 0x5d8   :  { %5466 = vmatprep.subr.bf16.mxu1 %v7288_v11 }
 0x5db   :  { %5468 = vmatpush1.bf16.msra.mxu1 %v7290_v10 }
 0x5dc   :  { %5470 = vmatprep.subr.bf16.mxu1 %v7294_v24 }
 0x5df   :  { %5472 = vmatpush1.bf16.msra.mxu1 %v7296_v39 }
 0x5e0   :  { %5474 = vmatprep.subr.bf16.mxu1 %v7300_v54  ;;  %v7326_v54 = vpack.c.bf16 %v3122_v30, %v3116_v44 }
 0x5e2   :  { %7837 = vst [vmem:[#allocation14_spill] sm:$0xff] %v7326_v54 }
 0x5e3   :  { %5476 = vmatpush1.bf16.msra.mxu1 %v7302_v60  ;;  %v3135_v60 = vld [vmem:[#allocation8 + $0x5e8] sm:$0xff] }
 0x5e4   :  { %5478 = vmatprep.subr.bf16.mxu1 %v7306_v0  ;;  %v3123_v0 = vld [vmem:[#allocation8 + $0x588] sm:$0xff]  ;;  %v7329_v1 = vpack.c.bf16 %v3135_v60, %v3129_v49  ;;  %v2439_v60 = vld [vmem:[#allocation2 + $0x3] ss:$8 sm:$0x30] }
 0x5e5   :  { %v7323_v23 = vpack.c.bf16 %v3123_v0, %v3117_v47 }
 0x5e6   :  { %7838 = vst [vmem:[#allocation15_spill] sm:$0xff] %v7329_v1 }
 0x5e7   :  { %5480 = vmatpush1.bf16.msra.mxu1 %v7308_v57  ;;  %v7320_v57 = vpack.c.bf16 %v3110_v56, %v3104_v62  ;;  %7836 = vst [vmem:[#allocation13_spill] sm:$0xff] %v7323_v23 }
 0x5e8   :  { %5482 = vmatprep.subr.bf16.mxu1 %v7312_v12 }
 0x5e9   :  { %7835 = vst [vmem:[#allocation27_spill] sm:$0xff] %v7320_v57 }
 0x5eb   :  { %5484 = vmatpush1.bf16.msra.mxu1 %v7314_v53  ;;  %v3134_v53 = vld [vmem:[#allocation8 + $0x5e0] sm:$0xff] }
 0x5ec   :  { %5486 = vmatprep.subr.bf16.mxu1 %v7317_v46  ;;  %v7332_v62 = vpack.c.bf16 %v3134_v53, %v3128_v32  ;;  %v2438_v46 = vld [vmem:[#allocation2 + $0x3] ss:$8 sm:$0xf] }
 0x5ed   :  { %v2440_v12 = vor.u32 %v2439_v60, %v2438_v46 }
 0x5ee   :  { %7839 = vst [vmem:[#allocation16_spill] sm:$0xff] %v7332_v62 }
 0x5ef   :  { %5488 = vmatpush1.bf16.msra.mxu1 %v7320_v57 }
 0x5f0   :  { %5490 = vmatprep.subr.bf16.mxu1 %v7323_v23 }
 0x5f3   :  { %5492 = vmatpush1.bf16.msra.mxu1 %v7326_v54 }
 0x5f4   :  { %5494 = vmatprep.subr.bf16.mxu1 %v7329_v1 }
 0x5f7   :  { %5496 = vmatpush1.bf16.msra.mxu1 %v7332_v62  ;;  %v2883_v62 = vrot.slane %v2440_v12, 2 }
 0x64d   :  { %v2710_v0 = vpop.f32.mrb[16].mxu1  ;;  %v2781_v56 = vpop.f32.mrb[16].mxu0 }
 0x64e   :  { %v2712_v47 = vpop.f32.mrb[17].mxu1  ;;  %v2783_v57 = vpop.f32.mrb[17].mxu0 }
 0x64f   :  { %v2859_v44 = vcombine.low %v2710_v0, %v2712_v47  ;;  %v2887_v30 = vcombine.low %v2781_v56, %v2783_v57 }
 0x651   :  { %v2866_v23 = vrot.slane %v2859_v44, %v6668_v3  ;;  %v2894_v53 = vrot.slane %v2887_v30, %v6668_v3 }
 0x653   :  { %v2873_v49 = vrot.slane %v2866_v23, %v6668_v3  ;;  %v2901_v1 = vrot.slane %v2894_v53, %v6668_v3 }
 0x655   :  { %v2875_v54 = vadd.f32 %v2873_v49, %v2440_v12  ;;  %v2903_v39 = vadd.f32 %v2901_v1, %v2883_v62  ;;  %v2931_v1 = vrot.slane %v2440_v12, 4 }
 0x657   :  { %v4577_v32 = vmul.f32 -1.442695, %v2875_v54  ;;  %v4578_v24 = vmul.f32 -1.442695, %v2903_v39 }
 0x659   :  { %6133 = vpow2.f32 %v4577_v32 }
 0x65a   :  { %6135 = vpow2.f32 %v4578_v24 }
 0x663   :  { %v6134_v10 = vpop.eup %6133 }
 0x664   :  { %v2879_v57 = vadd.f32 1.0, %v6134_v10  ;;  %v6136_v47 = vpop.eup %6135 }
 0x665   :  { %v2907_v30 = vadd.f32 1.0, %v6136_v47  ;;  %v3137_v47 = vld [vmem:[#allocation8 + $0x5f8] sm:$0xff] }
 0x666   :  { %6137 = vrcp.f32 %v2879_v57 }
 0x667   :  { %6139 = vrcp.f32 %v2907_v30 }
 0x670   :  { %v6138_v49 = vpop.eup %6137 }
 0x671   :  { %v6140_v10 = vpop.eup %6139 }
 0x672   :  { %v2935_v62 = vsub.f32 1.0, %v6140_v10  ;;  %v2937_v57 = vmul.f32 %v6140_v10, %v7121_v20  ;;  %v3083_v20 = vld [vmem:[#allocation8 + $0x448] sm:$0xff]  ;;  %v3482_v10 = vld [vmem:[#allocation8 + $0xf8] sm:$0xff] }
 0x68d   :  { %v2852_v0 = vpop.f32.mrb[18].mxu1 }
 0x68e   :  { %v2910_v56 = vadd.f32 %v2852_v0, %v7802_v4  ;;  %v2854_v23 = vpop.f32.mrb[19].mxu1 }
 0x68f   :  { %v2911_v46 = vadd.f32 %v2854_v23, %v6679_v35  ;;  %v3124_v23 = vld [vmem:[#allocation8 + $0x590] sm:$0xff] }
 0x691   :  { %v2914_v44 = vcombine.low %v2910_v56, %v2911_v46  ;;  %v3131_v46 = vld [vmem:[#allocation8 + $0x5c8] sm:$0xff] }
 0x692   :  { %v7402_v30 = vpack.c.bf16 %v3137_v47, %v3131_v46  ;;  %v3512_v46 = vld [vmem:[#allocation8 + $0x1e8] sm:$0xff]  ;;  %v3518_v47 = vld [vmem:[#allocation8 + $0x218] sm:$0xff] }
 0x693   :  { %v2921_v54 = vrot.slane %v2914_v44, %v6668_v3 }
 0x695   :  { %v2928_v60 = vrot.slane %v2921_v54, %v6668_v3  ;;  %v3130_v54 = vld [vmem:[#allocation8 + $0x5c0] sm:$0xff] }
 0x697   :  { %v2930_v39 = vmul.f32 %v6138_v49, %v2928_v60  ;;  %v3136_v60 = vld [vmem:[#allocation8 + $0x5f0] sm:$0xff] }
 0x698   :  { %v7405_v49 = vpack.c.bf16 %v3136_v60, %v3130_v54  ;;  %v7855_v60 = vld [vmem:[#allocation16_spill] sm:$0xff] }
 0x699   :  { %v2933_v24 = vadd.f32 %v2931_v1, %v2930_v39  ;;  %v3463_v39 = vld [vmem:[#allocation8 + $0x60] sm:$0xff]  ;;  %v3469_v1 = vld [vmem:[#allocation8 + $0x90] sm:$0xff] }
 0x69a   :  { %7840 = vst [vmem:[#allocation28_spill] sm:$0xff] %v7405_v49 }
 0x69b   :  { %6141 = vtanh.f32 %v2933_v24  ;;  %v3476_v24 = vld [vmem:[#allocation8 + $0xc8] sm:$0xff] }
 0x6a5   :  { %v6142_v53 = vpop.eup %6141 }
 0x6a6   :  { %v2936_v32 = vmul.f32 %v6142_v53, %v2935_v62  ;;  %v7440_v62 = vpack.c.bf16 %v3469_v1, %v3463_v39  ;;  %v7849_v53 = vld [vmem:[#allocation25_spill] sm:$0xff]  ;;  %v3548_v39 = vld [vmem:[#allocation8 + $0x308] sm:$0xff]  ;;  %v3554_v1 = vld [vmem:[#allocation8 + $0x338] sm:$0xff] }
 0x6a8   :  { %v7345_v0 = vadd.f32 %v2937_v57, %v2936_v32  ;;  %v7444_v32 = vpack.c.bf16 %v3482_v10, %v3476_v24  ;;  %v3475_v57 = vld [vmem:[#allocation8 + $0xc0] sm:$0xff]  ;;  %v7486_v10 = vpack.c.bf16 %v3554_v1, %v3548_v39  ;;  %v3613_v1 = vld [vmem:[#allocation8 + $0x510] sm:$0xff] }
 0x6a9   :  { %v3607_v39 = vld [vmem:[#allocation8 + $0x4e0] sm:$0xff] }
 0x6aa   :  { %v3146_v56 = vrot.slane %v7345_v0, %v6367_v38  ;;  %2940 = vst.msk [vmem:[#allocation9 + $0x3] ss:$8 sm:$0x3] %vm6691_vm2, %v7345_v0  ;;  %v7354_v12 = vrot.slane %v7345_v0, %v6384_v52 }
 0x6ac   :  { %3213 = vmatprep.mubr.f32.mxu0 %v3146_v56  ;;  %3284 = vmatprep.mubr.f32.mxu1 %v3146_v56 }
 0x6ad   :  { %3214 = vmatmul.mubr.f32.vlgmr.msra.gmra.mrb[18].mxu0 %v7354_v12  ;;  %3285 = vmatmul.mubr.f32.vlgmr.msra.gmra.mrb[20].mxu1 %v7354_v12 }
 0x6ae   :  { %5500 = vmatpush1.bf16.msra.mxu0 %v7132_v22  ;;  %3355 = vmatprep.mubr.f32.mxu0 %v3146_v56  ;;  %v3089_v22 = vld [vmem:[#allocation8 + $0x478] sm:$0xff]  ;;  %v3481_v56 = vld [vmem:[#allocation8 + $0xf0] sm:$0xff] }
 0x6af   :  { %5502 = vmatprep.subr.bf16.mxu0 %v7134_v41  ;;  %v7378_v41 = vpack.c.bf16 %v3089_v22, %v3083_v20  ;;  %v3488_v20 = vld [vmem:[#allocation8 + $0x128] sm:$0xff]  ;;  %v3494_v22 = vld [vmem:[#allocation8 + $0x158] sm:$0xff] }
 0x6b2   :  { %5504 = vmatpush1.bf16.msra.mxu0 %v7139_v29  ;;  %v3082_v29 = vld [vmem:[#allocation8 + $0x440] sm:$0xff] }
 0x6b3   :  { %5506 = vmatprep.subr.bf16.mxu0 %v7142_v31  ;;  %v3088_v31 = vld [vmem:[#allocation8 + $0x470] sm:$0xff] }
 0x6b6   :  { %5508 = vmatpush1.bf16.msra.mxu0 %v7147_v61  ;;  %v3095_v61 = vld [vmem:[#allocation8 + $0x4a8] sm:$0xff] }
 0x6b7   :  { %5510 = vmatprep.subr.bf16.mxu0 %v7150_v50  ;;  %v3101_v50 = vld [vmem:[#allocation8 + $0x4d8] sm:$0xff] }
 0x6ba   :  { %5512 = vmatpush1.bf16.msra.mxu0 %v7155_v13  ;;  %v7381_v13 = vpack.c.bf16 %v3088_v31, %v3082_v29  ;;  %v7448_v29 = vpack.c.bf16 %v3481_v56, %v3475_v57  ;;  %v7851_v31 = vld [vmem:[#allocation27_spill] sm:$0xff]  ;;  %v3553_v57 = vld [vmem:[#allocation8 + $0x330] sm:$0xff] }
 0x6bb   :  { %5514 = vmatprep.subr.bf16.mxu0 %v7158_v6  ;;  %v7384_v6 = vpack.c.bf16 %v3101_v50, %v3095_v61  ;;  %v7452_v61 = vpack.c.bf16 %v3494_v22, %v3488_v20  ;;  %v3487_v50 = vld [vmem:[#allocation8 + $0x120] sm:$0xff]  ;;  %v3566_v20 = vld [vmem:[#allocation8 + $0x398] sm:$0xff] }
 0x6be   :  { %5516 = vmatpush1.bf16.msra.mxu0 %v7163_v25  ;;  %v3094_v25 = vld [vmem:[#allocation8 + $0x4a0] sm:$0xff] }
 0x6bf   :  { %5518 = vmatprep.subr.bf16.mxu0 %v7166_v2  ;;  %v3100_v2 = vld [vmem:[#allocation8 + $0x4d0] sm:$0xff] }
 0x6c2   :  { %5520 = vmatpush1.bf16.msra.mxu0 %v7171_v42  ;;  %v3107_v42 = vld [vmem:[#allocation8 + $0x508] sm:$0xff] }
 0x6c3   :  { %5522 = vmatprep.subr.bf16.mxu0 %v7174_v59  ;;  %v3113_v59 = vld [vmem:[#allocation8 + $0x538] sm:$0xff] }
 0x6c6   :  { %5524 = vmatpush1.bf16.msra.mxu0 %v7179_v9  ;;  %v7387_v9 = vpack.c.bf16 %v3100_v2, %v3094_v25  ;;  %v3493_v25 = vld [vmem:[#allocation8 + $0x150] sm:$0xff] }
 0x6c7   :  { %5526 = vmatprep.subr.bf16.mxu0 %v7182_v37  ;;  %v7390_v37 = vpack.c.bf16 %v3113_v59, %v3107_v42  ;;  %v7852_v2 = vld [vmem:[#allocation13_spill] sm:$0xff]  ;;  %v3500_v42 = vld [vmem:[#allocation8 + $0x188] sm:$0xff]  ;;  %v3506_v59 = vld [vmem:[#allocation8 + $0x1b8] sm:$0xff] }
 0x6ca   :  { %5528 = vmatpush1.bf16.msra.mxu0 %v7187_v36  ;;  %v3106_v36 = vld [vmem:[#allocation8 + $0x500] sm:$0xff] }
 0x6cb   :  { %5530 = vmatprep.subr.bf16.mxu0 %v7190_v58  ;;  %v3112_v58 = vld [vmem:[#allocation8 + $0x530] sm:$0xff] }
 0x6ce   :  { %5532 = vmatpush1.bf16.msra.mxu0 %v7195_v63  ;;  %v3119_v63 = vld [vmem:[#allocation8 + $0x568] sm:$0xff] }
 0x6cf   :  { %5534 = vmatprep.subr.bf16.mxu0 %v7198_v51  ;;  %v3125_v51 = vld [vmem:[#allocation8 + $0x598] sm:$0xff] }
 0x6d2   :  { %5536 = vmatpush1.bf16.msra.mxu0 %v7203_v45  ;;  %v7393_v45 = vpack.c.bf16 %v3112_v58, %v3106_v36  ;;  %v7456_v36 = vpack.c.bf16 %v3493_v25, %v3487_v50  ;;  %v7853_v58 = vld [vmem:[#allocation14_spill] sm:$0xff]  ;;  %v3565_v50 = vld [vmem:[#allocation8 + $0x390] sm:$0xff] }
 0x6d3   :  { %5538 = vmatprep.subr.bf16.mxu0 %v7206_v33  ;;  %v7396_v33 = vpack.c.bf16 %v3125_v51, %v3119_v63  ;;  %v7460_v63 = vpack.c.bf16 %v3506_v59, %v3500_v42  ;;  %v3499_v51 = vld [vmem:[#allocation8 + $0x180] sm:$0xff]  ;;  %v3578_v42 = vld [vmem:[#allocation8 + $0x3f8] sm:$0xff] }
 0x6d6   :  { %5540 = vmatpush1.bf16.msra.mxu0 %v7211_v26  ;;  %v3118_v26 = vld [vmem:[#allocation8 + $0x560] sm:$0xff] }
 0x6d7   :  { %5542 = vmatprep.subr.bf16.mxu0 %v7378_v41  ;;  %v7399_v44 = vpack.c.bf16 %v3124_v23, %v3118_v26  ;;  %v3505_v26 = vld [vmem:[#allocation8 + $0x1b0] sm:$0xff]  ;;  %v7854_v23 = vld [vmem:[#allocation15_spill] sm:$0xff] }
 0x6d8   :  { %v7464_v54 = vpack.c.bf16 %v3505_v26, %v3499_v51  ;;  %v3577_v51 = vld [vmem:[#allocation8 + $0x3f0] sm:$0xff] }
 0x6da   :  { %5544 = vmatpush1.bf16.msra.mxu0 %v7381_v13 }
 0x6db   :  { %5546 = vmatprep.subr.bf16.mxu0 %v7384_v6 }
 0x6de   :  { %5548 = vmatpush1.bf16.msra.mxu0 %v7387_v9 }
 0x6df   :  { %5550 = vmatprep.subr.bf16.mxu0 %v7390_v37 }
 0x6e2   :  { %5552 = vmatpush1.bf16.msra.mxu0 %v7393_v45 }
 0x6e3   :  { %5554 = vmatprep.subr.bf16.mxu0 %v7396_v33 }
 0x6e6   :  { %5556 = vmatpush1.bf16.msra.mxu0 %v7399_v44 }
 0x6e7   :  { %5558 = vmatprep.subr.bf16.mxu0 %v7402_v30 }
 0x6ea   :  { %5560 = vmatpush1.bf16.msra.mxu0 %v7405_v49 }
 0x6eb   :  { %5626 = vmatprep.subr.bf16.mxu0 %v7240_v18  ;;  %v7841_v18 = vld [vmem:[#allocation17_spill] sm:$0xff] }
 0x6ed   :  { %3356 = vmatmul.mubr.f32.vlgmr.msra.gmra.mrb[20].mxu0 %v7354_v12  ;;  %v7850_v12 = vld [vmem:[#allocation26_spill] sm:$0xff] }
 0x6ee   :  { %5628 = vmatpush1.bf16.msra.mxu0 %v7242_v43  ;;  %v7842_v43 = vld [vmem:[#allocation18_spill] sm:$0xff] }
 0x6ef   :  { %5630 = vmatprep.subr.bf16.mxu0 %v7244_v8  ;;  %v7843_v8 = vld [vmem:[#allocation19_spill] sm:$0xff] }
 0x6f2   :  { %5632 = vmatpush1.bf16.msra.mxu0 %v7248_v17  ;;  %v7844_v17 = vld [vmem:[#allocation20_spill] sm:$0xff] }
 0x6f3   :  { %5634 = vmatprep.subr.bf16.mxu0 %v7251_v15  ;;  %v7845_v15 = vld [vmem:[#allocation21_spill] sm:$0xff] }
 0x6f6   :  { %5636 = vmatpush1.bf16.msra.mxu0 %v7254_v16  ;;  %v7846_v16 = vld [vmem:[#allocation22_spill] sm:$0xff] }
 0x6f7   :  { %5638 = vmatprep.subr.bf16.mxu0 %v7257_v27  ;;  %v3452_v27 = vld [vmem:[#allocation8 + $0x8] sm:$0xff] }
 0x6fa   :  { %5640 = vmatpush1.bf16.msra.mxu0 %v7260_v48  ;;  %v3458_v48 = vld [vmem:[#allocation8 + $0x38] sm:$0xff] }
 0x6fb   :  { %5642 = vmatprep.subr.bf16.mxu0 %v7263_v34  ;;  %v3451_v34 = vld [vmem:[#allocation8] sm:$0xff] }
 0x6fe   :  { %5644 = vmatpush1.bf16.msra.mxu0 %v7266_v21  ;;  %v7847_v21 = vld [vmem:[#allocation23_spill] sm:$0xff] }
 0x6ff   :  { %5646 = vmatprep.subr.bf16.mxu0 %v7269_v28  ;;  %v5561_v28 = vpack.c.bf16 %v3458_v48, %v3452_v27  ;;  %v3523_v48 = vld [vmem:[#allocation8 + $0x240] sm:$0xff] }
 0x701   :  { %5562 = vmatprep.subr.bf16.mxu1 %v5561_v28 }
 0x702   :  { %5648 = vmatpush1.bf16.msra.mxu0 %v7272_v7  ;;  %v3457_v7 = vld [vmem:[#allocation8 + $0x30] sm:$0xff] }
 0x703   :  { %5650 = vmatprep.subr.bf16.mxu0 %v7275_v40  ;;  %v3464_v40 = vld [vmem:[#allocation8 + $0x68] sm:$0xff] }
 0x706   :  { %5652 = vmatpush1.bf16.msra.mxu0 %v7278_v19  ;;  %v3470_v19 = vld [vmem:[#allocation8 + $0x98] sm:$0xff] }
 0x707   :  { %5654 = vmatprep.subr.bf16.mxu0 %v7281_v5  ;;  %v7848_v5 = vld [vmem:[#allocation24_spill] sm:$0xff] }
 0x70a   :  { %5656 = vmatpush1.bf16.msra.mxu0 %v7284_v14  ;;  %v7435_v14 = vpack.c.bf16 %v3457_v7, %v3451_v34  ;;  %v3529_v34 = vld [vmem:[#allocation8 + $0x270] sm:$0xff]  ;;  %v3542_v7 = vld [vmem:[#allocation8 + $0x2d8] sm:$0xff] }
 0x70b   :  { %5658 = vmatprep.subr.bf16.mxu0 %v7288_v11  ;;  %v7437_v11 = vpack.c.bf16 %v3470_v19, %v3464_v40  ;;  %v7477_v40 = vpack.c.bf16 %v3529_v34, %v3523_v48  ;;  %v3535_v19 = vld [vmem:[#allocation8 + $0x2a0] sm:$0xff] }
 0x70c   :  { %5564 = vmatpush1.bf16.msra.mxu1 %v7435_v14  ;;  %v3595_v34 = vld [vmem:[#allocation8 + $0x480] sm:$0xff] }
 0x70d   :  { %5566 = vmatprep.subr.bf16.mxu1 %v7437_v11 }
 0x70e   :  { %5660 = vmatpush1.bf16.msra.mxu0 %v7841_v18  ;;  %v7468_v18 = vpack.c.bf16 %v3518_v47, %v3512_v46  ;;  %v3590_v46 = vld [vmem:[#allocation8 + $0x458] sm:$0xff] }
 0x70f   :  { %5662 = vmatprep.subr.bf16.mxu0 %v7842_v43  ;;  %v3511_v43 = vld [vmem:[#allocation8 + $0x1e0] sm:$0xff] }
 0x710   :  { %5568 = vmatpush1.bf16.msra.mxu1 %v7440_v62 }
 0x711   :  { %5570 = vmatprep.subr.bf16.mxu1 %v7444_v32 }
 0x712   :  { %5664 = vmatpush1.bf16.msra.mxu0 %v7843_v8  ;;  %v3517_v8 = vld [vmem:[#allocation8 + $0x210] sm:$0xff] }
 0x713   :  { %5666 = vmatprep.subr.bf16.mxu0 %v7844_v17  ;;  %v3524_v17 = vld [vmem:[#allocation8 + $0x248] sm:$0xff] }
 0x714   :  { %5572 = vmatpush1.bf16.msra.mxu1 %v7448_v29 }
 0x715   :  { %5574 = vmatprep.subr.bf16.mxu1 %v7452_v61 }
 0x716   :  { %5668 = vmatpush1.bf16.msra.mxu0 %v7845_v15  ;;  %v3530_v15 = vld [vmem:[#allocation8 + $0x278] sm:$0xff] }
 0x717   :  { %5670 = vmatprep.subr.bf16.mxu0 %v7846_v16  ;;  %v7471_v16 = vpack.c.bf16 %v3517_v8, %v3511_v43  ;;  %v7474_v27 = vpack.c.bf16 %v3530_v15, %v3524_v17  ;;  %v3589_v43 = vld [vmem:[#allocation8 + $0x450] sm:$0xff]  ;;  %v3596_v17 = vld [vmem:[#allocation8 + $0x488] sm:$0xff]  ;;  %v3602_v15 = vld [vmem:[#allocation8 + $0x4b8] sm:$0xff] }
 0x718   :  { %5576 = vmatpush1.bf16.msra.mxu1 %v7456_v36  ;;  %v7511_v48 = vpack.c.bf16 %v3602_v15, %v3596_v17  ;;  %v3456_v17 = vld [vmem:[#allocation8 + $0x28] sm:$0xff]  ;;  %v3462_v15 = vld [vmem:[#allocation8 + $0x58] sm:$0xff] }
 0x719   :  { %5578 = vmatprep.subr.bf16.mxu1 %v7460_v63 }
 0x71a   :  { %5672 = vmatpush1.bf16.msra.mxu0 %v7847_v21  ;;  %v3536_v21 = vld [vmem:[#allocation8 + $0x2a8] sm:$0xff] }
 0x71b   :  { %5674 = vmatprep.subr.bf16.mxu0 %v7848_v5  ;;  %v3541_v5 = vld [vmem:[#allocation8 + $0x2d0] sm:$0xff] }
 0x71c   :  { %5580 = vmatpush1.bf16.msra.mxu1 %v7464_v54  ;;  %v7483_v24 = vpack.c.bf16 %v3541_v5, %v3535_v19  ;;  %v3614_v5 = vld [vmem:[#allocation8 + $0x518] sm:$0xff] }
 0x71d   :  { %5582 = vmatprep.subr.bf16.mxu1 %v7468_v18 }
 0x71e   :  { %5676 = vmatpush1.bf16.msra.mxu0 %v7849_v53  ;;  %v3547_v53 = vld [vmem:[#allocation8 + $0x300] sm:$0xff] }
 0x71f   :  { %5678 = vmatprep.subr.bf16.mxu0 %v7850_v12  ;;  %v7490_v56 = vpack.c.bf16 %v3553_v57, %v3547_v53  ;;  %v3560_v12 = vld [vmem:[#allocation8 + $0x368] sm:$0xff] }
 0x720   :  { %5584 = vmatpush1.bf16.msra.mxu1 %v7471_v16  ;;  %v7493_v22 = vpack.c.bf16 %v3566_v20, %v3560_v12  ;;  %v3620_v57 = vld [vmem:[#allocation8 + $0x548] sm:$0xff]  ;;  %v3626_v12 = vld [vmem:[#allocation8 + $0x578] sm:$0xff]  ;;  %v7519_v20 = vpack.c.bf16 %v3613_v1, %v3607_v39 }
 0x721   :  { %5586 = vmatprep.subr.bf16.mxu1 %v7474_v27 }
 0x722   :  { %5680 = vmatpush1.bf16.msra.mxu0 %v7851_v31  ;;  %v3559_v31 = vld [vmem:[#allocation8 + $0x360] sm:$0xff] }
 0x723   :  { %5682 = vmatprep.subr.bf16.mxu0 %v7852_v2  ;;  %v7495_v25 = vpack.c.bf16 %v3565_v50, %v3559_v31  ;;  %v3572_v2 = vld [vmem:[#allocation8 + $0x3c8] sm:$0xff]  ;;  %v7522_v31 = vpack.c.bf16 %v3626_v12, %v3620_v57  ;;  %v3619_v50 = vld [vmem:[#allocation8 + $0x540] sm:$0xff] }
 0x724   :  { %5588 = vmatpush1.bf16.msra.mxu1 %v7477_v40  ;;  %v7499_v59 = vpack.c.bf16 %v3578_v42, %v3572_v2  ;;  %v3625_v2 = vld [vmem:[#allocation8 + $0x570] sm:$0xff]  ;;  %v3632_v42 = vld [vmem:[#allocation8 + $0x5a8] sm:$0xff] }
 0x726   :  { %5684 = vmatpush1.bf16.msra.mxu0 %v7853_v58  ;;  %v3571_v58 = vld [vmem:[#allocation8 + $0x3c0] sm:$0xff] }
 0x727   :  { %5686 = vmatprep.subr.bf16.mxu0 %v7854_v23  ;;  %v7501_v26 = vpack.c.bf16 %v3577_v51, %v3571_v58  ;;  %v3584_v23 = vld [vmem:[#allocation8 + $0x428] sm:$0xff]  ;;  %v3638_v58 = vld [vmem:[#allocation8 + $0x5d8] sm:$0xff]  ;;  %v7525_v51 = vpack.c.bf16 %v3625_v2, %v3619_v50 }
 0x728   :  { %v7505_v47 = vpack.c.bf16 %v3590_v46, %v3584_v23  ;;  %v7528_v23 = vpack.c.bf16 %v3638_v58, %v3632_v42  ;;  %v3631_v46 = vld [vmem:[#allocation8 + $0x5a0] sm:$0xff]  ;;  %v2944_v50 = vld [vmem:[#allocation2 + $0x4] ss:$8 sm:$0x30] }
 0x729   :  { %v2943_v42 = vld [vmem:[#allocation2 + $0x4] ss:$8 sm:$0xf] }
 0x72a   :  { %5688 = vmatpush1.bf16.msra.mxu0 %v7855_v60  ;;  %v3583_v60 = vld [vmem:[#allocation8 + $0x420] sm:$0xff]  ;;  %7856 = vst [vmem:[#allocation17_spill] sm:$0xff] %v7528_v23  ;;  %v2945_v58 = vor.u32 %v2944_v50, %v2943_v42 }
 0x72b   :  { %5754 = vmatprep.subr.bf16.mxu0 %v5561_v28  ;;  %v7480_v28 = vpack.c.bf16 %v3542_v7, %v3536_v21  ;;  %v7507_v8 = vpack.c.bf16 %v3589_v43, %v3583_v60  ;;  %v3601_v21 = vld [vmem:[#allocation8 + $0x4b0] sm:$0xff]  ;;  %v3608_v7 = vld [vmem:[#allocation8 + $0x4e8] sm:$0xff] }
 0x72c   :  { %v7513_v19 = vpack.c.bf16 %v3601_v21, %v3595_v34  ;;  %v7516_v53 = vpack.c.bf16 %v3614_v5, %v3608_v7  ;;  %v3637_v60 = vld [vmem:[#allocation8 + $0x5d0] sm:$0xff]  ;;  %v7535_v34 = vpack.c.bf16 %v3462_v15, %v3456_v17 }
 0x72d   :  { %5590 = vmatprep.subr.bf16.mxu1 %v7480_v28  ;;  %v7531_v43 = vpack.c.bf16 %v3637_v60, %v3631_v46 }
 0x72e   :  { %5592 = vmatpush1.bf16.msra.mxu1 %v7483_v24  ;;  %7858 = vst [vmem:[#allocation19_spill] sm:$0xff] %v7535_v34 }
 0x72f   :  { %5594 = vmatprep.subr.bf16.mxu1 %v7486_v10  ;;  %7857 = vst [vmem:[#allocation18_spill] sm:$0xff] %v7531_v43 }
 0x732   :  { %5596 = vmatpush1.bf16.msra.mxu1 %v7490_v56 }
 0x733   :  { %5598 = vmatprep.subr.bf16.mxu1 %v7493_v22 }
 0x736   :  { %5600 = vmatpush1.bf16.msra.mxu1 %v7495_v25 }
 0x737   :  { %5602 = vmatprep.subr.bf16.mxu1 %v7499_v59 }
 0x73a   :  { %5604 = vmatpush1.bf16.msra.mxu1 %v7501_v26 }
 0x73b   :  { %5606 = vmatprep.subr.bf16.mxu1 %v7505_v47 }
 0x73e   :  { %5608 = vmatpush1.bf16.msra.mxu1 %v7507_v8 }
 0x73f   :  { %5610 = vmatprep.subr.bf16.mxu1 %v7511_v48 }
 0x742   :  { %5612 = vmatpush1.bf16.msra.mxu1 %v7513_v19 }
 0x743   :  { %5614 = vmatprep.subr.bf16.mxu1 %v7516_v53 }
 0x746   :  { %5616 = vmatpush1.bf16.msra.mxu1 %v7519_v20 }
 0x747   :  { %5618 = vmatprep.subr.bf16.mxu1 %v7522_v31 }
 0x74a   :  { %5620 = vmatpush1.bf16.msra.mxu1 %v7525_v51 }
 0x74b   :  { %5622 = vmatprep.subr.bf16.mxu1 %v7528_v23 }
 0x74e   :  { %5624 = vmatpush1.bf16.msra.mxu1 %v7531_v43 }
 0x74f   :  { %5690 = vmatprep.subr.bf16.mxu1 %v7535_v34  ;;  %v3388_v34 = vrot.slane %v2945_v58, 2 }
 0x780   :  { %v3215_v21 = vpop.f32.mrb[18].mxu0  ;;  %v3286_v7 = vpop.f32.mrb[20].mxu1 }
 0x781   :  { %v3217_v5 = vpop.f32.mrb[19].mxu0  ;;  %v3288_v39 = vpop.f32.mrb[21].mxu1 }
 0x782   :  { %v3364_v1 = vcombine.low %v3215_v21, %v3217_v5  ;;  %v3392_v57 = vcombine.low %v3286_v7, %v3288_v39 }
 0x784   :  { %v3371_v12 = vrot.slane %v3364_v1, %v6668_v3  ;;  %v3399_v60 = vrot.slane %v3392_v57, %v6668_v3 }
 0x786   :  { %v3378_v2 = vrot.slane %v3371_v12, %v6668_v3  ;;  %v3406_v15 = vrot.slane %v3399_v60, %v6668_v3 }
 0x788   :  { %v3380_v46 = vadd.f32 %v3378_v2, %v2945_v58  ;;  %v3408_v43 = vadd.f32 %v3406_v15, %v3388_v34  ;;  %v3436_v34 = vrot.slane %v2945_v58, 4 }
 0x78a   :  { %v4579_v17 = vmul.f32 -1.442695, %v3380_v46  ;;  %v4580_v49 = vmul.f32 -1.442695, %v3408_v43 }
 0x78c   :  { %6143 = vpow2.f32 %v4579_v17 }
 0x78d   :  { %6145 = vpow2.f32 %v4580_v49 }
 0x796   :  { %v6144_v23 = vpop.eup %6143 }
 0x797   :  { %v3384_v21 = vadd.f32 1.0, %v6144_v23  ;;  %v6146_v12 = vpop.eup %6145 }
 0x798   :  { %v3412_v57 = vadd.f32 1.0, %v6146_v12  ;;  %v3474_v12 = vld [vmem:[#allocation8 + $0xb8] sm:$0xff] }
 0x799   :  { %6147 = vrcp.f32 %v3384_v21 }
 0x79a   :  { %6149 = vrcp.f32 %v3412_v57 }
 0x7a3   :  { %v6148_v46 = vpop.eup %6147 }
 0x7a4   :  { %v6150_v23 = vpop.eup %6149 }
 0x7a5   :  { %v3440_v60 = vsub.f32 1.0, %v6150_v23  ;;  %v3442_v21 = vmul.f32 %v6150_v23, %v7345_v0  ;;  %v3479_v23 = vld [vmem:[#allocation8 + $0xe0] sm:$0xff] }
 0x7c0   :  { %v3357_v7 = vpop.f32.mrb[20].mxu0 }
 0x7c1   :  { %v3415_v5 = vadd.f32 %v3357_v7, %v7802_v4  ;;  %v3359_v39 = vpop.f32.mrb[21].mxu0  ;;  %v3455_v7 = vld [vmem:[#allocation8 + $0x20] sm:$0xff] }
 0x7c2   :  { %v3416_v1 = vadd.f32 %v3359_v39, %v6679_v35  ;;  %v3461_v39 = vld [vmem:[#allocation8 + $0x50] sm:$0xff] }
 0x7c3   :  { %v7558_v57 = vpack.c.bf16 %v3461_v39, %v3455_v7  ;;  %v3491_v39 = vld [vmem:[#allocation8 + $0x140] sm:$0xff] }
 0x7c4   :  { %v3419_v50 = vcombine.low %v3415_v5, %v3416_v1  ;;  %v3468_v1 = vld [vmem:[#allocation8 + $0x88] sm:$0xff] }
 0x7c5   :  { %v7560_v0 = vpack.c.bf16 %v3474_v12, %v3468_v1  ;;  %v3497_v1 = vld [vmem:[#allocation8 + $0x170] sm:$0xff]  ;;  %v3504_v12 = vld [vmem:[#allocation8 + $0x1a8] sm:$0xff] }
 0x7c6   :  { %v3426_v2 = vrot.slane %v3419_v50, %v6668_v3 }
 0x7c8   :  { %v3433_v42 = vrot.slane %v3426_v2, %v6668_v3  ;;  %v3467_v2 = vld [vmem:[#allocation8 + $0x80] sm:$0xff] }
 0x7ca   :  { %v3435_v43 = vmul.f32 %v6148_v46, %v3433_v42  ;;  %v3473_v42 = vld [vmem:[#allocation8 + $0xb0] sm:$0xff]  ;;  %v3480_v46 = vld [vmem:[#allocation8 + $0xe8] sm:$0xff] }
 0x7cc   :  { %v3438_v49 = vadd.f32 %v3436_v34, %v3435_v43  ;;  %v3486_v43 = vld [vmem:[#allocation8 + $0x118] sm:$0xff]  ;;  %v7565_v34 = vpack.c.bf16 %v3473_v42, %v3467_v2  ;;  %v3503_v2 = vld [vmem:[#allocation8 + $0x1a0] sm:$0xff]  ;;  %v3509_v42 = vld [vmem:[#allocation8 + $0x1d0] sm:$0xff] }
 0x7ce   :  { %6151 = vtanh.f32 %v3438_v49  ;;  %v7568_v49 = vpack.c.bf16 %v3486_v43, %v3480_v46  ;;  %v3516_v46 = vld [vmem:[#allocation8 + $0x208] sm:$0xff]  ;;  %v3522_v43 = vld [vmem:[#allocation8 + $0x238] sm:$0xff] }
 0x7d8   :  { %v6152_v17 = vpop.eup %6151 }
 0x7d9   :  { %v3441_v15 = vmul.f32 %v6152_v17, %v3440_v60  ;;  %v3485_v60 = vld [vmem:[#allocation8 + $0x110] sm:$0xff]  ;;  %v3492_v17 = vld [vmem:[#allocation8 + $0x148] sm:$0xff] }
 0x7db   :  { %v7547_v5 = vadd.f32 %v3442_v21, %v3441_v15  ;;  %v3498_v15 = vld [vmem:[#allocation8 + $0x178] sm:$0xff]  ;;  %v7573_v21 = vpack.c.bf16 %v3485_v60, %v3479_v23  ;;  %v3515_v23 = vld [vmem:[#allocation8 + $0x200] sm:$0xff]  ;;  %v3521_v60 = vld [vmem:[#allocation8 + $0x230] sm:$0xff] }
 0x7dc   :  { %v7576_v7 = vpack.c.bf16 %v3498_v15, %v3492_v17  ;;  %v3528_v17 = vld [vmem:[#allocation8 + $0x268] sm:$0xff]  ;;  %v3534_v15 = vld [vmem:[#allocation8 + $0x298] sm:$0xff] }
 0x7dd   :  { %v3651_v50 = vrot.slane %v7547_v5, %v6367_v38  ;;  %3445 = vst.msk [vmem:[#allocation9 + $0x4] ss:$8 sm:$0x3] %vm6691_vm2, %v7547_v5  ;;  %v7556_v58 = vrot.slane %v7547_v5, %v6384_v52 }
 0x7df   :  { %3718 = vmatprep.mubr.f32.mxu1 %v3651_v50  ;;  %3789 = vmatprep.mubr.f32.mxu0 %v3651_v50 }
 0x7e0   :  { %3719 = vmatmul.mubr.f32.vlgmr.msra.gmra.mrb[22].mxu1 %v7556_v58  ;;  %3790 = vmatmul.mubr.f32.vlgmr.msra.gmra.mrb[22].mxu0 %v7556_v58 }
 0x7e1   :  { %5692 = vmatpush1.bf16.msra.mxu1 %v7558_v57  ;;  %3860 = vmatprep.mubr.f32.mxu1 %v3651_v50  ;;  %v3510_v50 = vld [vmem:[#allocation8 + $0x1d8] sm:$0xff] }
 0x7e2   :  { %5694 = vmatprep.subr.bf16.mxu1 %v7560_v0  ;;  %5756 = vmatpush1.bf16.msra.mxu0 %v7435_v14  ;;  %v7581_v14 = vpack.c.bf16 %v3497_v1, %v3491_v39  ;;  %v3527_v39 = vld [vmem:[#allocation8 + $0x260] sm:$0xff]  ;;  %v3533_v1 = vld [vmem:[#allocation8 + $0x290] sm:$0xff] }
 0x7e3   :  { %5758 = vmatprep.subr.bf16.mxu0 %v7437_v11  ;;  %v7584_v11 = vpack.c.bf16 %v3510_v50, %v3504_v12  ;;  %v3540_v12 = vld [vmem:[#allocation8 + $0x2c8] sm:$0xff]  ;;  %v3546_v50 = vld [vmem:[#allocation8 + $0x2f8] sm:$0xff] }
 0x7e5   :  { %5696 = vmatpush1.bf16.msra.mxu1 %v7565_v34 }
 0x7e6   :  { %5698 = vmatprep.subr.bf16.mxu1 %v7568_v49  ;;  %5760 = vmatpush1.bf16.msra.mxu0 %v7440_v62  ;;  %v7589_v62 = vpack.c.bf16 %v3509_v42, %v3503_v2  ;;  %v3539_v2 = vld [vmem:[#allocation8 + $0x2c0] sm:$0xff]  ;;  %v3545_v42 = vld [vmem:[#allocation8 + $0x2f0] sm:$0xff] }
 0x7e7   :  { %5762 = vmatprep.subr.bf16.mxu0 %v7444_v32  ;;  %v7592_v32 = vpack.c.bf16 %v3522_v43, %v3516_v46  ;;  %v3552_v46 = vld [vmem:[#allocation8 + $0x328] sm:$0xff]  ;;  %v3558_v43 = vld [vmem:[#allocation8 + $0x358] sm:$0xff] }
 0x7e9   :  { %5700 = vmatpush1.bf16.msra.mxu1 %v7573_v21 }
 0x7ea   :  { %5702 = vmatprep.subr.bf16.mxu1 %v7576_v7  ;;  %5764 = vmatpush1.bf16.msra.mxu0 %v7448_v29  ;;  %v7597_v29 = vpack.c.bf16 %v3521_v60, %v3515_v23  ;;  %v3551_v23 = vld [vmem:[#allocation8 + $0x320] sm:$0xff]  ;;  %v3557_v60 = vld [vmem:[#allocation8 + $0x350] sm:$0xff] }
 0x7eb   :  { %5766 = vmatprep.subr.bf16.mxu0 %v7452_v61  ;;  %v7600_v61 = vpack.c.bf16 %v3534_v15, %v3528_v17  ;;  %v3564_v17 = vld [vmem:[#allocation8 + $0x388] sm:$0xff]  ;;  %v3570_v15 = vld [vmem:[#allocation8 + $0x3b8] sm:$0xff] }
 0x7ed   :  { %5704 = vmatpush1.bf16.msra.mxu1 %v7581_v14 }
 0x7ee   :  { %5706 = vmatprep.subr.bf16.mxu1 %v7584_v11  ;;  %5768 = vmatpush1.bf16.msra.mxu0 %v7456_v36  ;;  %v7605_v36 = vpack.c.bf16 %v3533_v1, %v3527_v39  ;;  %v3563_v39 = vld [vmem:[#allocation8 + $0x380] sm:$0xff]  ;;  %v3569_v1 = vld [vmem:[#allocation8 + $0x3b0] sm:$0xff] }
 0x7ef   :  { %5770 = vmatprep.subr.bf16.mxu0 %v7460_v63  ;;  %v7608_v63 = vpack.c.bf16 %v3546_v50, %v3540_v12  ;;  %v3576_v12 = vld [vmem:[#allocation8 + $0x3e8] sm:$0xff]  ;;  %v3582_v50 = vld [vmem:[#allocation8 + $0x418] sm:$0xff] }
 0x7f1   :  { %5708 = vmatpush1.bf16.msra.mxu1 %v7589_v62 }
 0x7f2   :  { %5710 = vmatprep.subr.bf16.mxu1 %v7592_v32  ;;  %5772 = vmatpush1.bf16.msra.mxu0 %v7464_v54  ;;  %v7613_v54 = vpack.c.bf16 %v3545_v42, %v3539_v2  ;;  %v3575_v2 = vld [vmem:[#allocation8 + $0x3e0] sm:$0xff]  ;;  %v3581_v42 = vld [vmem:[#allocation8 + $0x410] sm:$0xff] }
 0x7f3   :  { %5774 = vmatprep.subr.bf16.mxu0 %v7468_v18  ;;  %v7616_v18 = vpack.c.bf16 %v3558_v43, %v3552_v46  ;;  %v3994_v43 = vld [vmem:[#allocation8 + $0x130] sm:$0xff] }
 0x7f5   :  { %5712 = vmatpush1.bf16.msra.mxu1 %v7597_v29 }
 0x7f6   :  { %5714 = vmatprep.subr.bf16.mxu1 %v7600_v61  ;;  %5776 = vmatpush1.bf16.msra.mxu0 %v7471_v16  ;;  %v7621_v16 = vpack.c.bf16 %v3557_v60, %v3551_v23  ;;  %v4000_v23 = vld [vmem:[#allocation8 + $0x160] sm:$0xff]  ;;  %v4007_v60 = vld [vmem:[#allocation8 + $0x198] sm:$0xff] }
 0x7f7   :  { %5778 = vmatprep.subr.bf16.mxu0 %v7474_v27  ;;  %v7624_v27 = vpack.c.bf16 %v3570_v15, %v3564_v17  ;;  %v4013_v17 = vld [vmem:[#allocation8 + $0x1c8] sm:$0xff]  ;;  %v5831_v15 = vpack.c.bf16 %v4000_v23, %v3994_v43  ;;  %v4066_v43 = vld [vmem:[#allocation8 + $0x370] sm:$0xff]  ;;  %v4072_v23 = vld [vmem:[#allocation8 + $0x3a0] sm:$0xff] }
 0x7f9   :  { %5716 = vmatpush1.bf16.msra.mxu1 %v7605_v36 }
 0x7fa   :  { %5718 = vmatprep.subr.bf16.mxu1 %v7608_v63  ;;  %5780 = vmatpush1.bf16.msra.mxu0 %v7477_v40  ;;  %v7629_v40 = vpack.c.bf16 %v3569_v1, %v3563_v39  ;;  %v5833_v39 = vpack.c.bf16 %v4013_v17, %v4007_v60  ;;  %v4006_v1 = vld [vmem:[#allocation8 + $0x190] sm:$0xff]  ;;  %v5855_v60 = vpack.c.bf16 %v4072_v23, %v4066_v43  ;;  %v4079_v17 = vld [vmem:[#allocation8 + $0x3d8] sm:$0xff]  ;;  %v4144_v23 = vld [vmem:[#allocation8 + $0x5e0] sm:$0xff] }
 0x7fb   :  { %5782 = vmatprep.subr.bf16.mxu0 %v7480_v28  ;;  %v7632_v28 = vpack.c.bf16 %v3582_v50, %v3576_v12  ;;  %v4012_v12 = vld [vmem:[#allocation8 + $0x1c0] sm:$0xff]  ;;  %v4019_v50 = vld [vmem:[#allocation8 + $0x1f8] sm:$0xff]  ;;  %v4138_v43 = vld [vmem:[#allocation8 + $0x5b0] sm:$0xff] }
 0x7fd   :  { %5720 = vmatpush1.bf16.msra.mxu1 %v7613_v54 }
 0x7fe   :  { %5722 = vmatprep.subr.bf16.mxu1 %v7616_v18  ;;  %5784 = vmatpush1.bf16.msra.mxu0 %v7483_v24  ;;  %v7637_v24 = vpack.c.bf16 %v3581_v42, %v3575_v2  ;;  %v4025_v2 = vld [vmem:[#allocation8 + $0x228] sm:$0xff]  ;;  %v5835_v42 = vpack.c.bf16 %v4012_v12, %v4006_v1  ;;  %v4078_v1 = vld [vmem:[#allocation8 + $0x3d0] sm:$0xff]  ;;  %v4084_v12 = vld [vmem:[#allocation8 + $0x400] sm:$0xff] }
 0x7ff   :  { %5786 = vmatprep.subr.bf16.mxu0 %v7486_v10 }
 0x801   :  { %5724 = vmatpush1.bf16.msra.mxu1 %v7621_v16 }
 0x802   :  { %5726 = vmatprep.subr.bf16.mxu1 %v7624_v27  ;;  %5788 = vmatpush1.bf16.msra.mxu0 %v7490_v56  ;;  %v3964_v56 = vld [vmem:[#allocation8 + $0x40] sm:$0xff] }
 0x803   :  { %5790 = vmatprep.subr.bf16.mxu0 %v7493_v22  ;;  %v3977_v22 = vld [vmem:[#allocation8 + $0xa8] sm:$0xff] }
 0x805   :  { %5728 = vmatpush1.bf16.msra.mxu1 %v7629_v40 }
 0x806   :  { %5730 = vmatprep.subr.bf16.mxu1 %v7632_v28  ;;  %5792 = vmatpush1.bf16.msra.mxu0 %v7495_v25 }
 0x807   :  { %5794 = vmatprep.subr.bf16.mxu0 %v7499_v59  ;;  %v3970_v59 = vld [vmem:[#allocation8 + $0x70] sm:$0xff] }
 0x809   :  { %5732 = vmatpush1.bf16.msra.mxu1 %v7637_v24 }
 0x80a   :  { %5734 = vmatprep.subr.bf16.mxu1 %v7378_v41  ;;  %5796 = vmatpush1.bf16.msra.mxu0 %v7501_v26  ;;  %v7859_v41 = vld [vmem:[#allocation17_spill] sm:$0xff]  ;;  %v3976_v26 = vld [vmem:[#allocation8 + $0xa0] sm:$0xff] }
 0x80b   :  { %5798 = vmatprep.subr.bf16.mxu0 %v7505_v47  ;;  %v3983_v47 = vld [vmem:[#allocation8 + $0xd8] sm:$0xff] }
 0x80d   :  { %5736 = vmatpush1.bf16.msra.mxu1 %v7381_v13  ;;  %v7860_v13 = vld [vmem:[#allocation28_spill] sm:$0xff] }
 0x80e   :  { %5738 = vmatprep.subr.bf16.mxu1 %v7384_v6  ;;  %5800 = vmatpush1.bf16.msra.mxu0 %v7507_v8  ;;  %v7861_v6 = vld [vmem:[#allocation18_spill] sm:$0xff]  ;;  %v3989_v8 = vld [vmem:[#allocation8 + $0x108] sm:$0xff] }
 0x80f   :  { %5802 = vmatprep.subr.bf16.mxu0 %v7511_v48  ;;  %v5823_v48 = vpack.c.bf16 %v3976_v26, %v3970_v59  ;;  %v4042_v59 = vld [vmem:[#allocation8 + $0x2b0] sm:$0xff]  ;;  %v4048_v26 = vld [vmem:[#allocation8 + $0x2e0] sm:$0xff] }
 0x811   :  { %5740 = vmatpush1.bf16.msra.mxu1 %v7387_v9  ;;  %v7862_v9 = vld [vmem:[#allocation19_spill] sm:$0xff] }
 0x812   :  { %5742 = vmatprep.subr.bf16.mxu1 %v7390_v37  ;;  %5804 = vmatpush1.bf16.msra.mxu0 %v7513_v19  ;;  %v3959_v37 = vld [vmem:[#allocation8 + $0x18] sm:$0xff]  ;;  %v5825_v19 = vpack.c.bf16 %v3989_v8, %v3983_v47  ;;  %v5847_v47 = vpack.c.bf16 %v4048_v26, %v4042_v59  ;;  %v4114_v59 = vld [vmem:[#allocation8 + $0x4f0] sm:$0xff]  ;;  %v4120_v26 = vld [vmem:[#allocation8 + $0x520] sm:$0xff] }
 0x813   :  { %5806 = vmatprep.subr.bf16.mxu0 %v7516_v53  ;;  %v3982_v53 = vld [vmem:[#allocation8 + $0xd0] sm:$0xff]  ;;  %v4055_v8 = vld [vmem:[#allocation8 + $0x318] sm:$0xff] }
 0x815   :  { %5744 = vmatpush1.bf16.msra.mxu1 %v7393_v45  ;;  %v3965_v45 = vld [vmem:[#allocation8 + $0x48] sm:$0xff] }
 0x816   :  { %5746 = vmatprep.subr.bf16.mxu1 %v7396_v33  ;;  %5808 = vmatpush1.bf16.msra.mxu0 %v7519_v20  ;;  %v3958_v33 = vld [vmem:[#allocation8 + $0x10] sm:$0xff]  ;;  %v5817_v10 = vpack.c.bf16 %v3965_v45, %v3959_v37  ;;  %v3988_v20 = vld [vmem:[#allocation8 + $0x100] sm:$0xff]  ;;  %v4037_v37 = vld [vmem:[#allocation8 + $0x288] sm:$0xff] }
 0x817   :  { %5810 = vmatprep.subr.bf16.mxu0 %v7522_v31  ;;  %v3995_v31 = vld [vmem:[#allocation8 + $0x138] sm:$0xff] }
 0x819   :  { %5748 = vmatpush1.bf16.msra.mxu1 %v7399_v44  ;;  %v3971_v44 = vld [vmem:[#allocation8 + $0x78] sm:$0xff] }
 0x81a   :  { %5750 = vmatprep.subr.bf16.mxu1 %v7402_v30  ;;  %5812 = vmatpush1.bf16.msra.mxu0 %v7525_v51  ;;  %v5819_v30 = vpack.c.bf16 %v3964_v56, %v3958_v33  ;;  %v5821_v25 = vpack.c.bf16 %v3977_v22, %v3971_v44  ;;  %v4001_v51 = vld [vmem:[#allocation8 + $0x168] sm:$0xff]  ;;  %v4036_v56 = vld [vmem:[#allocation8 + $0x280] sm:$0xff]  ;;  %v4043_v44 = vld [vmem:[#allocation8 + $0x2b8] sm:$0xff] }
 0x81b   :  { %5814 = vmatprep.subr.bf16.mxu0 %v7859_v41  ;;  %v5829_v46 = vpack.c.bf16 %v4001_v51, %v3995_v31  ;;  %v5837_v41 = vpack.c.bf16 %v4025_v2, %v4019_v50  ;;  %v4049_v22 = vld [vmem:[#allocation8 + $0x2e8] sm:$0xff]  ;;  %v4067_v51 = vld [vmem:[#allocation8 + $0x378] sm:$0xff]  ;;  %v5859_v50 = vpack.c.bf16 %v4084_v12, %v4078_v1 }
 0x81c   :  { %v4091_v2 = vld [vmem:[#allocation8 + $0x438] sm:$0xff] }
 0x81d   :  { %5752 = vmatpush1.bf16.msra.mxu1 %v7860_v13  ;;  %v4018_v13 = vld [vmem:[#allocation8 + $0x1f0] sm:$0xff] }
 0x81e   :  { %5816 = vmatpush1.bf16.msra.mxu0 %v7861_v6  ;;  %5818 = vmatprep.subr.bf16.mxu1 %v5817_v10  ;;  %v4024_v6 = vld [vmem:[#allocation8 + $0x220] sm:$0xff]  ;;  %v4030_v10 = vld [vmem:[#allocation8 + $0x250] sm:$0xff] }
 0x81f   :  { %5882 = vmatprep.subr.bf16.mxu0 %v7862_v9  ;;  %v4031_v9 = vld [vmem:[#allocation8 + $0x258] sm:$0xff]  ;;  %v5839_v45 = vpack.c.bf16 %v4024_v6, %v4018_v13  ;;  %v4090_v13 = vld [vmem:[#allocation8 + $0x430] sm:$0xff]  ;;  %v4096_v6 = vld [vmem:[#allocation8 + $0x460] sm:$0xff] }
 0x820   :  { %3861 = vmatmul.mubr.f32.vlgmr.msra.gmra.mrb[24].mxu1 %v7556_v58  ;;  %v5827_v58 = vpack.c.bf16 %v3988_v20, %v3982_v53  ;;  %v5841_v33 = vpack.c.bf16 %v4037_v37, %v4031_v9  ;;  %v4054_v53 = vld [vmem:[#allocation8 + $0x310] sm:$0xff]  ;;  %v4060_v20 = vld [vmem:[#allocation8 + $0x340] sm:$0xff]  ;;  %v5863_v9 = vpack.c.bf16 %v4096_v6, %v4090_v13  ;;  %v4103_v37 = vld [vmem:[#allocation8 + $0x498] sm:$0xff] }
 0x821   :  { %5820 = vmatpush1.bf16.msra.mxu1 %v5819_v30  ;;  %v5843_v30 = vpack.c.bf16 %v4036_v56, %v4030_v10  ;;  %v5851_v31 = vpack.c.bf16 %v4060_v20, %v4054_v53  ;;  %v4108_v56 = vld [vmem:[#allocation8 + $0x4c0] sm:$0xff]  ;;  %v4126_v53 = vld [vmem:[#allocation8 + $0x550] sm:$0xff] }
 0x822   :  { %5822 = vmatprep.subr.bf16.mxu1 %v5821_v25  ;;  %v5845_v25 = vpack.c.bf16 %v4049_v22, %v4043_v44  ;;  %v4115_v44 = vld [vmem:[#allocation8 + $0x4f8] sm:$0xff]  ;;  %v4121_v22 = vld [vmem:[#allocation8 + $0x528] sm:$0xff]  ;;  %v4132_v20 = vld [vmem:[#allocation8 + $0x580] sm:$0xff] }
 0x823   :  { %v3448_v13 = vld [vmem:[#allocation2 + $0x5] ss:$8 sm:$0xf] }
 0x825   :  { %5824 = vmatpush1.bf16.msra.mxu1 %v5823_v48  ;;  %v4061_v48 = vld [vmem:[#allocation8 + $0x348] sm:$0xff] }
 0x826   :  { %5826 = vmatprep.subr.bf16.mxu1 %v5825_v19  ;;  %v5849_v19 = vpack.c.bf16 %v4061_v48, %v4055_v8  ;;  %v4133_v8 = vld [vmem:[#allocation8 + $0x588] sm:$0xff]  ;;  %v5871_v48 = vpack.c.bf16 %v4120_v26, %v4114_v59 }
 0x829   :  { %5828 = vmatpush1.bf16.msra.mxu1 %v5827_v58  ;;  %v4073_v58 = vld [vmem:[#allocation8 + $0x3a8] sm:$0xff] }
 0x82a   :  { %5830 = vmatprep.subr.bf16.mxu1 %v5829_v46  ;;  %v5853_v46 = vpack.c.bf16 %v4073_v58, %v4067_v51  ;;  %v4145_v51 = vld [vmem:[#allocation8 + $0x5e8] sm:$0xff]  ;;  %v5875_v58 = vpack.c.bf16 %v4132_v20, %v4126_v53 }
 0x82d   :  { %5832 = vmatpush1.bf16.msra.mxu1 %v5831_v15  ;;  %v4085_v15 = vld [vmem:[#allocation8 + $0x408] sm:$0xff] }
 0x82e   :  { %5834 = vmatprep.subr.bf16.mxu1 %v5833_v39  ;;  %v5857_v39 = vpack.c.bf16 %v4085_v15, %v4079_v17 }
 0x831   :  { %5836 = vmatpush1.bf16.msra.mxu1 %v5835_v42  ;;  %v4097_v42 = vld [vmem:[#allocation8 + $0x468] sm:$0xff] }
 0x832   :  { %5838 = vmatprep.subr.bf16.mxu1 %v5837_v41  ;;  %v5861_v41 = vpack.c.bf16 %v4097_v42, %v4091_v2  ;;  %v3449_v42 = vld [vmem:[#allocation2 + $0x5] ss:$8 sm:$0x30] }
 0x833   :  { %v3450_v6 = vor.u32 %v3449_v42, %v3448_v13  ;;  %v4146_v13 = vld [vmem:[#allocation8 + $0x5f0] sm:$0xff] }
 0x835   :  { %5840 = vmatpush1.bf16.msra.mxu1 %v5839_v45  ;;  %v4109_v45 = vld [vmem:[#allocation8 + $0x4c8] sm:$0xff] }
 0x836   :  { %5842 = vmatprep.subr.bf16.mxu1 %v5841_v33  ;;  %v4102_v33 = vld [vmem:[#allocation8 + $0x490] sm:$0xff]  ;;  %v5865_v10 = vpack.c.bf16 %v4109_v45, %v4103_v37 }
 0x839   :  { %5844 = vmatpush1.bf16.msra.mxu1 %v5843_v30  ;;  %v5867_v30 = vpack.c.bf16 %v4108_v56, %v4102_v33 }
 0x83a   :  { %5846 = vmatprep.subr.bf16.mxu1 %v5845_v25  ;;  %v5869_v25 = vpack.c.bf16 %v4121_v22, %v4115_v44 }
 0x83d   :  { %5848 = vmatpush1.bf16.msra.mxu1 %v5847_v47  ;;  %v4127_v47 = vld [vmem:[#allocation8 + $0x558] sm:$0xff] }
 0x83e   :  { %5850 = vmatprep.subr.bf16.mxu1 %v5849_v19  ;;  %v5873_v19 = vpack.c.bf16 %v4133_v8, %v4127_v47 }
 0x841   :  { %5852 = vmatpush1.bf16.msra.mxu1 %v5851_v31  ;;  %v4139_v31 = vld [vmem:[#allocation8 + $0x5b8] sm:$0xff] }
 0x842   :  { %5854 = vmatprep.subr.bf16.mxu1 %v5853_v46  ;;  %v5877_v46 = vpack.c.bf16 %v4145_v51, %v4139_v31 }
 0x845   :  { %5856 = vmatpush1.bf16.msra.mxu1 %v5855_v60  ;;  %v5879_v60 = vpack.c.bf16 %v4144_v23, %v4138_v43 }
 0x846   :  { %5858 = vmatprep.subr.bf16.mxu1 %v5857_v39 }
 0x849   :  { %5860 = vmatpush1.bf16.msra.mxu1 %v5859_v50 }
 0x84a   :  { %5862 = vmatprep.subr.bf16.mxu1 %v5861_v41 }
 0x84d   :  { %5864 = vmatpush1.bf16.msra.mxu1 %v5863_v9 }
 0x84e   :  { %5866 = vmatprep.subr.bf16.mxu1 %v5865_v10  ;;  %v3893_v10 = vrot.slane %v3450_v6, 2 }
 0x851   :  { %5868 = vmatpush1.bf16.msra.mxu1 %v5867_v30 }
 0x852   :  { %5870 = vmatprep.subr.bf16.mxu1 %v5869_v25 }
 0x855   :  { %5872 = vmatpush1.bf16.msra.mxu1 %v5871_v48 }
 0x856   :  { %5874 = vmatprep.subr.bf16.mxu1 %v5873_v19 }
 0x859   :  { %5876 = vmatpush1.bf16.msra.mxu1 %v5875_v58  ;;  %v3941_v58 = vrot.slane %v3450_v6, 4 }
 0x85a   :  { %5878 = vmatprep.subr.bf16.mxu1 %v5877_v46 }
 0x85d   :  { %5880 = vmatpush1.bf16.msra.mxu1 %v5879_v60 }
 0x8b3   :  { %v3720_v17 = vpop.f32.mrb[22].mxu1  ;;  %v3791_v15 = vpop.f32.mrb[22].mxu0 }
 0x8b4   :  { %v3722_v39 = vpop.f32.mrb[23].mxu1  ;;  %v3793_v1 = vpop.f32.mrb[23].mxu0 }
 0x8b5   :  { %v3869_v12 = vcombine.low %v3720_v17, %v3722_v39  ;;  %v3897_v50 = vcombine.low %v3791_v15, %v3793_v1 }
 0x8b7   :  { %v3876_v2 = vrot.slane %v3869_v12, %v6668_v3  ;;  %v3904_v37 = vrot.slane %v3897_v50, %v6668_v3  ;;  %v4147_v50 = vld [vmem:[#allocation8 + $0x5f8] sm:$0xff] }
 0x8b9   :  { %v3883_v41 = vrot.slane %v3876_v2, %v6668_v3  ;;  %v3911_v33 = vrot.slane %v3904_v37, %v6668_v3 }
 0x8bb   :  { %v3885_v9 = vadd.f32 %v3883_v41, %v3450_v6  ;;  %v3913_v56 = vadd.f32 %v3911_v33, %v3893_v10  ;;  %v4140_v41 = vld [vmem:[#allocation8 + $0x5c0] sm:$0xff] }
 0x8bc   :  { %v5943_v6 = vpack.c.bf16 %v4146_v13, %v4140_v41 }
 0x8bd   :  { %v4581_v45 = vmul.f32 -1.442695, %v3885_v9  ;;  %v4582_v44 = vmul.f32 -1.442695, %v3913_v56 }
 0x8bf   :  { %6153 = vpow2.f32 %v4581_v45 }
 0x8c0   :  { %6155 = vpow2.f32 %v4582_v44 }
 0x8c9   :  { %v6154_v22 = vpop.eup %6153 }
 0x8ca   :  { %v3889_v30 = vadd.f32 1.0, %v6154_v22  ;;  %v6156_v8 = vpop.eup %6155  ;;  %v3954_v22 = vld [vmem:[#allocation2 + $0x6] ss:$8 sm:$0x30] }
 0x8cb   :  { %v3917_v19 = vadd.f32 1.0, %v6156_v8 }
 0x8cc   :  { %6157 = vrcp.f32 %v3889_v30 }
 0x8cd   :  { %6159 = vrcp.f32 %v3917_v19 }
 0x8d6   :  { %v6158_v31 = vpop.eup %6157 }
 0x8d7   :  { %v6160_v43 = vpop.eup %6159 }
 0x8d8   :  { %v3945_v23 = vsub.f32 1.0, %v6160_v43  ;;  %v3947_v15 = vmul.f32 %v6160_v43, %v7547_v5 }
 0x8f3   :  { %v3862_v25 = vpop.f32.mrb[24].mxu1 }
 0x8f4   :  { %v3920_v59 = vadd.f32 %v3862_v25, %v7802_v4  ;;  %v3864_v26 = vpop.f32.mrb[25].mxu1  ;;  %v3953_v25 = vld [vmem:[#allocation2 + $0x6] ss:$8 sm:$0xf] }
 0x8f5   :  { %v3921_v47 = vadd.f32 %v3864_v26, %v6679_v35 }
 0x8f7   :  { %v3924_v48 = vcombine.low %v3920_v59, %v3921_v47  ;;  %v3955_v59 = vor.u32 %v3954_v22, %v3953_v25 }
 0x8f9   :  { %v3931_v53 = vrot.slane %v3924_v48, %v6668_v3  ;;  %v4398_v19 = vrot.slane %v3955_v59, 2 }
 0x8fb   :  { %v3938_v20 = vrot.slane %v3931_v53, %v6668_v3 }
 0x8fd   :  { %v3940_v51 = vmul.f32 %v6158_v31, %v3938_v20 }
 0x8ff   :  { %v3943_v46 = vadd.f32 %v3941_v58, %v3940_v51 }
 0x901   :  { %6161 = vtanh.f32 %v3943_v46 }
 0x90b   :  { %v6162_v60 = vpop.eup %6161 }
 0x90c   :  { %v3946_v17 = vmul.f32 %v6162_v60, %v3945_v23 }
 0x90e   :  { %v7675_v39 = vadd.f32 %v3947_v15, %v3946_v17 }
 0x910   :  { %v4156_v1 = vrot.slane %v7675_v39, %v6367_v38  ;;  %3950 = vst.msk [vmem:[#allocation9 + $0x5] ss:$8 sm:$0x3] %vm6691_vm2, %v7675_v39  ;;  %v7684_v12 = vrot.slane %v7675_v39, %v6384_v52  ;;  %v4093_v38 = vld [vmem:[#allocation8 + $0x448] sm:$0xff]  ;;  %v4099_v52 = vld [vmem:[#allocation8 + $0x478] sm:$0xff] }
 0x911   :  { %v5925_v5 = vpack.c.bf16 %v4099_v52, %v4093_v38 }
 0x912   :  { %4223 = vmatprep.mubr.f32.mxu0 %v4156_v1  ;;  %4294 = vmatprep.mubr.f32.mxu1 %v4156_v1 }
 0x913   :  { %4224 = vmatmul.mubr.f32.vlgmr.msra.gmra.mrb[24].mxu0 %v7684_v12  ;;  %4295 = vmatmul.mubr.f32.vlgmr.msra.gmra.mrb[26].mxu1 %v7684_v12 }
 0x914   :  { %5884 = vmatpush1.bf16.msra.mxu0 %v7558_v57  ;;  %4365 = vmatprep.mubr.f32.mxu0 %v4156_v1  ;;  %v4092_v57 = vld [vmem:[#allocation8 + $0x440] sm:$0xff] }
 0x915   :  { %5886 = vmatprep.subr.bf16.mxu0 %v7560_v0  ;;  %v4098_v0 = vld [vmem:[#allocation8 + $0x470] sm:$0xff] }
 0x918   :  { %5888 = vmatpush1.bf16.msra.mxu0 %v7565_v34  ;;  %v4105_v34 = vld [vmem:[#allocation8 + $0x4a8] sm:$0xff] }
 0x919   :  { %5890 = vmatprep.subr.bf16.mxu0 %v7568_v49  ;;  %v4111_v49 = vld [vmem:[#allocation8 + $0x4d8] sm:$0xff] }
 0x91c   :  { %5892 = vmatpush1.bf16.msra.mxu0 %v7573_v21  ;;  %v5927_v21 = vpack.c.bf16 %v4098_v0, %v4092_v57 }
 0x91d   :  { %5894 = vmatprep.subr.bf16.mxu0 %v7576_v7  ;;  %v5929_v7 = vpack.c.bf16 %v4111_v49, %v4105_v34 }
 0x920   :  { %5896 = vmatpush1.bf16.msra.mxu0 %v7581_v14  ;;  %v4104_v14 = vld [vmem:[#allocation8 + $0x4a0] sm:$0xff] }
 0x921   :  { %5898 = vmatprep.subr.bf16.mxu0 %v7584_v11  ;;  %v4110_v11 = vld [vmem:[#allocation8 + $0x4d0] sm:$0xff] }
 0x924   :  { %5900 = vmatpush1.bf16.msra.mxu0 %v7589_v62  ;;  %v4117_v62 = vld [vmem:[#allocation8 + $0x508] sm:$0xff] }
 0x925   :  { %5902 = vmatprep.subr.bf16.mxu0 %v7592_v32  ;;  %v4123_v32 = vld [vmem:[#allocation8 + $0x538] sm:$0xff] }
 0x928   :  { %5904 = vmatpush1.bf16.msra.mxu0 %v7597_v29  ;;  %v5931_v29 = vpack.c.bf16 %v4110_v11, %v4104_v14 }
 0x929   :  { %5906 = vmatprep.subr.bf16.mxu0 %v7600_v61  ;;  %v5933_v61 = vpack.c.bf16 %v4123_v32, %v4117_v62 }
 0x92c   :  { %5908 = vmatpush1.bf16.msra.mxu0 %v7605_v36  ;;  %v4116_v36 = vld [vmem:[#allocation8 + $0x500] sm:$0xff] }
 0x92d   :  { %5910 = vmatprep.subr.bf16.mxu0 %v7608_v63  ;;  %v4122_v63 = vld [vmem:[#allocation8 + $0x530] sm:$0xff] }
 0x930   :  { %5912 = vmatpush1.bf16.msra.mxu0 %v7613_v54  ;;  %v4129_v54 = vld [vmem:[#allocation8 + $0x568] sm:$0xff] }
 0x931   :  { %5914 = vmatprep.subr.bf16.mxu0 %v7616_v18  ;;  %v4135_v18 = vld [vmem:[#allocation8 + $0x598] sm:$0xff] }
 0x934   :  { %5916 = vmatpush1.bf16.msra.mxu0 %v7621_v16  ;;  %v5935_v16 = vpack.c.bf16 %v4122_v63, %v4116_v36 }
 0x935   :  { %5918 = vmatprep.subr.bf16.mxu0 %v7624_v27  ;;  %v5937_v27 = vpack.c.bf16 %v4135_v18, %v4129_v54 }
 0x938   :  { %5920 = vmatpush1.bf16.msra.mxu0 %v7629_v40  ;;  %v4128_v40 = vld [vmem:[#allocation8 + $0x560] sm:$0xff] }
 0x939   :  { %5922 = vmatprep.subr.bf16.mxu0 %v7632_v28  ;;  %v4134_v28 = vld [vmem:[#allocation8 + $0x590] sm:$0xff] }
 0x93a   :  { %v5939_v2 = vpack.c.bf16 %v4134_v28, %v4128_v40 }
 0x93c   :  { %5924 = vmatpush1.bf16.msra.mxu0 %v7637_v24  ;;  %v4141_v24 = vld [vmem:[#allocation8 + $0x5c8] sm:$0xff] }
 0x93d   :  { %5926 = vmatprep.subr.bf16.mxu0 %v5925_v5  ;;  %v5941_v42 = vpack.c.bf16 %v4147_v50, %v4141_v24  ;;  %v4446_v5 = vrot.slane %v3955_v59, 4 }
 0x940   :  { %5928 = vmatpush1.bf16.msra.mxu0 %v5927_v21 }
 0x941   :  { %5930 = vmatprep.subr.bf16.mxu0 %v5929_v7 }
 0x944   :  { %5932 = vmatpush1.bf16.msra.mxu0 %v5931_v29 }
 0x945   :  { %5934 = vmatprep.subr.bf16.mxu0 %v5933_v61 }
 0x948   :  { %5936 = vmatpush1.bf16.msra.mxu0 %v5935_v16 }
 0x949   :  { %5938 = vmatprep.subr.bf16.mxu0 %v5937_v27 }
 0x94c   :  { %5940 = vmatpush1.bf16.msra.mxu0 %v5939_v2 }
 0x94d   :  { %5942 = vmatprep.subr.bf16.mxu0 %v5941_v42 }
 0x950   :  { %5944 = vmatpush1.bf16.msra.mxu0 %v5943_v6 }
 0x953   :  { %4366 = vmatmul.mubr.f32.vlgmr.msra.gmra.mrb[26].mxu0 %v7684_v12 }
 0x9e6   :  { %v4225_v9 = vpop.f32.mrb[24].mxu0  ;;  %v4296_v37 = vpop.f32.mrb[26].mxu1 }
 0x9e7   :  { %v4227_v45 = vpop.f32.mrb[25].mxu0  ;;  %v4298_v33 = vpop.f32.mrb[27].mxu1 }
 0x9e8   :  { %v4374_v10 = vcombine.low %v4225_v9, %v4227_v45  ;;  %v4402_v56 = vcombine.low %v4296_v37, %v4298_v33 }
 0x9ea   :  { %v4381_v44 = vrot.slane %v4374_v10, %v6668_v3  ;;  %v4409_v47 = vrot.slane %v4402_v56, %v6668_v3 }
 0x9ec   :  { %v4388_v30 = vrot.slane %v4381_v44, %v6668_v3  ;;  %v4416_v48 = vrot.slane %v4409_v47, %v6668_v3 }
 0x9ee   :  { %v4390_v26 = vadd.f32 %v4388_v30, %v3955_v59  ;;  %v4418_v53 = vadd.f32 %v4416_v48, %v4398_v19 }
 0x9f0   :  { %v4583_v8 = vmul.f32 -1.442695, %v4390_v26  ;;  %v4584_v20 = vmul.f32 -1.442695, %v4418_v53 }
 0x9f2   :  { %6163 = vpow2.f32 %v4583_v8 }
 0x9f3   :  { %6165 = vpow2.f32 %v4584_v20 }
 0x9fc   :  { %v6164_v31 = vpop.eup %6163 }
 0x9fd   :  { %v4394_v51 = vadd.f32 1.0, %v6164_v31  ;;  %v6166_v60 = vpop.eup %6165 }
 0x9fe   :  { %v4422_v15 = vadd.f32 1.0, %v6166_v60 }
 0x9ff   :  { %6167 = vrcp.f32 %v4394_v51 }
 0xa00   :  { %6169 = vrcp.f32 %v4422_v15 }
 0xa09   :  { %v6168_v38 = vpop.eup %6167 }
 0xa0a   :  { %v6170_v0 = vpop.eup %6169 }
 0xa0b   :  { %v4450_v34 = vsub.f32 1.0, %v6170_v0 }
 0xa26   :  { %v4367_v58 = vpop.f32.mrb[26].mxu0 }
 0xa27   :  { %v4425_v46 = vadd.f32 %v4367_v58, %v7802_v4  ;;  %v4369_v43 = vpop.f32.mrb[27].mxu0 }
 0xa28   :  { %v4426_v23 = vadd.f32 %v4369_v43, %v6679_v35  ;;  %v4452_v35 = vmul.f32 %v6170_v0, %v7675_v39 }
 0xa2a   :  { %v4429_v17 = vcombine.low %v4425_v46, %v4426_v23 }
 0xa2c   :  { %v4436_v1 = vrot.slane %v4429_v17, %v6668_v3 }
 0xa2e   :  { %v4443_v12 = vrot.slane %v4436_v1, %v6668_v3 }
 0xa30   :  { %v4445_v52 = vmul.f32 %v6168_v38, %v4443_v12 }
 0xa32   :  { %v4448_v57 = vadd.f32 %v4446_v5, %v4445_v52 }
 0xa34   :  { %6171 = vtanh.f32 %v4448_v57 }
 0xa3e   :  { %v6172_v49 = vpop.eup %6171 }
 0xa3f   :  { %v4451_v4 = vmul.f32 %v6172_v49, %v4450_v34 }
 0xa41   :  { %v4453_v21 = vadd.f32 %v4452_v35, %v4451_v4 }
 0xa43   :  { %4455 = vst.msk [vmem:[#allocation9 + $0x6] ss:$8 sm:$0x3] %vm6691_vm2, %v4453_v21 }
 0xa44   :  { %6251 = shalt.err (!%p6248_p0)
}
 0xa45   :  { %s6252_s27 = scalar_lea.hbm %s7740_s7, 256 }
 0xa46   :  { %p6253_p1 = scmp.ne.s32.totalorder %s7740_s7, %s6252_s27  ;;  %p6256_p2 = scmp.lt.u32.totalorder %s6252_s27, %s7740_s7 }
 0xa48   :  { %p6258_p3 = pnand %p6256_p2, %p6253_p1 }
 0xa4a   :  { %6261 = shalt.err (!%p6258_p3)
}
 0xa4b   :  { %4466 = dma.vmem_to_hbm [thread:$0]  %s4464_s24, 256, %s7740_s7, [#allocation5]  }
 0xa4c   :  { %6266 = dma.done.wait [#allocation5], 256  }
 0xa4d   :  { %6267 = vsyncadd [#allocation5], 4294967040 }
 0xa4e   :  { %4470 = vsyncpa [#allocation4], 1 }
 0xa4f   :  { %4471 = vsyncpa [#allocation7], 1 }
 0xa50   :  { %4472 = vsyncpa [#allocation5], 1 }

</bundles_post_ra>
